<compile_context>
chip_gen: v5e
topology: v5e:2x2
jax: 0.10.0
libtpu: 0.0.40
codegen_flags: <defaults>
</compile_context>

<pallas_src>
import jax
import jax.numpy as jnp
from jax.experimental import pallas as pl
from jax.experimental.pallas import tpu as pltpu


# ---------------------------------------------------------------------------
# Fused Pallas kernel: (split 1x1 conv over the virtual concat) + two 3x3 convs,
# each bias + ReLU.  One grid step processes NB batch elements (M = NB*H*W rows).
# ---------------------------------------------------------------------------
def _base23_kernel(up_ref, s1_ref, w1u_ref, w1s_ref, b1_ref, w2_ref, b2_ref,
                   w3_ref, b3_ref, out_ref, pad_ref):
    NB, H, W, C_UP = up_ref.shape
    C_MID = pad_ref.shape[-1]            # 64: input channels of both 3x3 convs
    M = NB * H * W

    # ---- conv5_2: 1x1 conv on concat([up, s1]) WITHOUT materializing the
    #      256-channel concat: two K=128 matmuls into the same f32 accumulator.
    up = up_ref[...].reshape(M, C_UP)                       # bf16 already
    s1 = s1_ref[...].reshape(M, s1_ref.shape[-1])           # bf16 already
    z1 = jnp.dot(up, w1u_ref[...], preferred_element_type=jnp.float32)
    z1 = z1 + jnp.dot(s1, w1s_ref[...], preferred_element_type=jnp.float32)
    y = jnp.maximum(z1 + b1_ref[...], 0.0)                  # (M, 64) f32

    # Zero the padded scratch; only the interior is ever written below, so the
    # 1-pixel halo stays zero for both 3x3 convs.  The grid has at most 2 steps
    # (one per TensorCore on v7x), so this ~13 KiB bf16 zeroing is negligible.
    # It is intentionally NOT gated on program_id: on v7x "parallel" steps can
    # run on different cores, each with its own (uninitialized) scratch.
    pad_ref[...] = jnp.zeros_like(pad_ref)

    # ---- 3x3 conv (stride 1, pad 1) as ONE im2col matmul (K = 9*C_MID) -----
    def conv3x3(y_in, w_ref, b_ref):
        # cast to bf16 BEFORE the scratch write (64 ch), not on the 9x patches.
        pad_ref[:, pl.ds(1, H), pl.ds(1, W), :] = (
            y_in.reshape(NB, H, W, C_MID).astype(jnp.bfloat16))
        taps = [pad_ref[:, pl.ds(dy, H), pl.ds(dx, W), :]
                for dy in range(3) for dx in range(3)]
        patches = jnp.concatenate(taps, axis=-1).reshape(M, 9 * C_MID)   # bf16
        z = jnp.dot(patches, w_ref[...], preferred_element_type=jnp.float32)
        return jnp.maximum(z + b_ref[...], 0.0)

    y = conv3x3(y, w2_ref, b2_ref)        # conv6_2: 64 -> 64
    y = conv3x3(y, w3_ref, b3_ref)        # conv7_2: 64 -> 128 (32 real + 96 pad)
    out_ref[...] = y.reshape(out_ref.shape)


def _const_spec(shape):
    """Whole-array block, same block for every grid step (no re-DMA)."""
    return pl.BlockSpec(tuple(shape), lambda n: (0,) * len(shape))


# ---------------------------------------------------------------------------
# Wrapper: bilinear upsample (align_corners=True, default precision, bf16 out)
# fused with the fd2 layout change, then the fused Pallas kernel.
# Public interface stays NCHW (PyTorch).
# ---------------------------------------------------------------------------
def _bilinear_matrix(n_in, n_out, dtype=jnp.float32):
    # align_corners=True: src = i * (n_in - 1) / (n_out - 1)
    i = jnp.arange(n_out, dtype=dtype)
    src = i * (n_in - 1) / max(n_out - 1, 1)
    lo = jnp.clip(jnp.floor(src).astype(jnp.int32), 0, n_in - 1)
    hi = jnp.clip(lo + 1, 0, n_in - 1)
    frac = src - lo.astype(dtype)
    m = jnp.zeros((n_out, n_in), dtype)
    m = m.at[jnp.arange(n_out), lo].add(1.0 - frac)
    m = m.at[jnp.arange(n_out), hi].add(frac)
    return m


def _num_batch_blocks(n):
    # v7x has 2 TensorCores per chip that only get work via a parallel grid axis;
    # v5e/v6e have a single TC, where one big grid step (M = N*H*W rows per
    # matmul) minimizes per-step overhead and fills the MXU.
    try:
        kind = jax.devices()[0].device_kind.lower()
    except Exception:
        kind = ""
    if "v7" in kind and n >= 2 and n % 2 == 0:
        return 2
    return 1


def base23_forward(s1_nchw, fd2_nchw, kernel_params):
    """s1: (N,128,H,W), fd2: (N,128,H/2,W/2) float32 -> fd3: (N,32,H,W)."""
    w1u, w1s, b1, w2, b2, w3, b3 = kernel_params
    N, C_S1, H, W = s1_nchw.shape
    _, C_FD, h, w = fd2_nchw.shape
    C_OUT = 32                       # real output channels
    C_PAD = w3.shape[-1]             # 128: lane-dense padded output channels

    mh = _bilinear_matrix(h, H)
    mw = _bilinear_matrix(w, W)
    # Upsample fd2 and emit NHWC bf16 directly (folds fd2's layout transpose;
    # default matmul precision — the result feeds bf16 MXU operands anyway).
    up_nhwc = jnp.einsum('nchw,Hh,Ww->nHWc', fd2_nchw, mh, mw).astype(jnp.bfloat16)
    # s1 transpose + final output transpose are kept because the public API is
    # NCHW (PyTorch semantics); both are tiny and fuse under jit.
    s1_nhwc = jnp.transpose(s1_nchw, (0, 2, 3, 1)).astype(jnp.bfloat16)

    nblk = _num_batch_blocks(N)
    nb = N // nblk

    flops = 2 * N * H * W * (2 * C_FD * 64 + 576 * 64 + 576 * C_PAD)
    bytes_accessed = ((up_nhwc.size + s1_nhwc.size) * 2
                      + (w1u.size + w1s.size + w2.size + w3.size) * 2
                      + (b1.size + b2.size + b3.size) * 4
                      + N * H * W * C_PAD * 4)

    out_nhwc = pl.pallas_call(
        _base23_kernel,
        out_shape=jax.ShapeDtypeStruct((N, H, W, C_PAD), jnp.float32),
        grid=(nblk,),
        in_specs=[
            pl.BlockSpec((nb, H, W, C_FD), lambda n: (n, 0, 0, 0)),   # up
            pl.BlockSpec((nb, H, W, C_S1), lambda n: (n, 0, 0, 0)),   # s1
            _const_spec(w1u.shape), _const_spec(w1s.shape), _const_spec(b1.shape),
            _const_spec(w2.shape), _const_spec(b2.shape),
            _const_spec(w3.shape), _const_spec(b3.shape),
        ],
        out_specs=pl.BlockSpec((nb, H, W, C_PAD), lambda n: (n, 0, 0, 0)),
        scratch_shapes=[pltpu.VMEM((nb, H + 2, W + 2, 64), jnp.bfloat16)],
        compiler_params=pltpu.CompilerParams(
            dimension_semantics=("parallel",)),
        cost_estimate=pl.CostEstimate(flops=int(flops), transcendentals=0,
                                      bytes_accessed=int(bytes_accessed)),
    )(up_nhwc, s1_nhwc, w1u, w1s, b1, w2, b2, w3, b3)

    # Drop the lane-padding channels and return the PyTorch NCHW layout.
    return jnp.transpose(out_nhwc[..., :C_OUT], (0, 3, 1, 2))


# ---------------------------------------------------------------------------
# Deterministic parameter init (mirrors BaseConv.__init__ + eval-mode BN fold)
# ---------------------------------------------------------------------------
def init_params(key):
    eps = 1e-5
    k1, k2, k3 = jax.random.split(key, 3)
    # PyTorch layout (Cout, Cin, kh, kw), weight ~ N(0, 0.01), bias = 0
    w1_t = 0.01 * jax.random.normal(k1, (64, 256, 1, 1), jnp.float32)
    w2_t = 0.01 * jax.random.normal(k2, (64, 64, 3, 3), jnp.float32)
    w3_t = 0.01 * jax.random.normal(k3, (32, 64, 3, 3), jnp.float32)
    b1_t = jnp.zeros((64,), jnp.float32)
    b2_t = jnp.zeros((64,), jnp.float32)
    b3_t = jnp.zeros((32,), jnp.float32)

    def fold_bn(w_t, b_t):
        cout = w_t.shape[0]
        gamma = jnp.ones((cout,), jnp.float32)
        beta = jnp.zeros((cout,), jnp.float32)
        mean = jnp.zeros((cout,), jnp.float32)
        var = jnp.ones((cout,), jnp.float32)
        s = gamma / jnp.sqrt(var + eps)
        return w_t * s[:, None, None, None], (b_t - mean) * s + beta

    w1_t, b1 = fold_bn(w1_t, b1_t)
    w2_t, b2 = fold_bn(w2_t, b2_t)
    w3_t, b3 = fold_bn(w3_t, b3_t)

    torch_params = (w1_t, b1, w2_t, b2, w3_t, b3)   # f32, OIHW, for reference

    # kernel layout: (kh*kw*Cin, Cout) bf16 weights (MXU-native), f32 (1, Cout) biases
    w1_k = jnp.transpose(w1_t, (2, 3, 1, 0)).reshape(256, 64).astype(jnp.bfloat16)
    w1u = w1_k[:128, :]          # input channels of the upsampled fd2 (concat order)
    w1s = w1_k[128:, :]          # input channels of s1
    w2_k = jnp.transpose(w2_t, (2, 3, 1, 0)).reshape(9 * 64, 64).astype(jnp.bfloat16)
    # Pad conv7_2's 32 output channels to 128 so the last matmul + output store
    # are lane-dense (unmasked vst); the wrapper slices [..., :32].
    w3_k = jnp.transpose(w3_t, (2, 3, 1, 0)).reshape(9 * 64, 32)
    w3_k = jnp.pad(w3_k, ((0, 0), (0, 96))).astype(jnp.bfloat16)
    b3_k = jnp.pad(b3.reshape(1, 32), ((0, 0), (0, 96)))

    kernel_params = (w1u, w1s, b1.reshape(1, 64), w2_k, b2.reshape(1, 64),
                     w3_k, b3_k)
    return kernel_params, torch_params


def reference_convs(x_nchw, torch_params):
    w1, b1, w2, b2, w3, b3 = torch_params

    def conv(x, w, b, pad):
        y = jax.lax.conv_general_dilated(
            x, w, (1, 1), [(pad, pad), (pad, pad)],
            dimension_numbers=('NCHW', 'OIHW', 'NCHW'),
            precision=jax.lax.Precision.HIGHEST)
        return jax.nn.relu(y + b[None, :, None, None])

    x = conv(x_nchw, w1, b1, 0)
    x = conv(x, w2, b2, 1)
    x = conv(x, w3, b3, 1)
    return x


if __name__ == "__main__":
    key = jax.random.PRNGKey(0)
    kp, kd1, kd2 = jax.random.split(key, 3)
    kernel_params, torch_params = init_params(kp)

    # s1 provides 128 ch at full res, fd2 provides 128 ch at half res
    # (upsampled x2 -> concat = 256 channels), matching the module.
    s1 = jax.random.normal(kd1, (2, 128, 8, 8), jnp.float32)
    fd2 = jax.random.normal(kd2, (2, 128, 4, 4), jnp.float32)

    fwd = jax.jit(base23_forward)
    fd3 = jax.block_until_ready(fwd(s1, fd2, kernel_params))

    # Reference path: upsample + concat + f32 HIGHEST-precision convs.
    mh = _bilinear_matrix(fd2.shape[2], s1.shape[2])
    mw = _bilinear_matrix(fd2.shape[3], s1.shape[3])
    up_ref = jnp.einsum('nchw,Hh,Ww->ncHW', fd2, mh, mw,
                        precision=jax.lax.Precision.HIGHEST)
    x_cat = jnp.concatenate([up_ref, s1], axis=1)          # (2, 256, 8, 8)
    ref = jax.block_until_ready(reference_convs(x_cat, torch_params))

    max_diff = float(jnp.max(jnp.abs(fd3 - ref)))
    assert fd3.shape == (2, 32, 8, 8), fd3.shape
    # Tolerance accounts for bf16 MXU operands (f32 accumulation) and the
    # default-precision bf16 upsample; genuine tap/layout bugs produce O(1e-2)+
    # errors here.
    assert max_diff < 5e-3, f"mismatch vs reference: {max_diff}"

    print("KERNEL_OK")
</pallas_src>

<mosaic_0001>
module attributes {stable_mosaic.version = 11 : i64} {
  func.func @_base23_kernel(%arg0: i32, %arg1: memref<2x8x8x128xbf16, #tpu.memory_space<vmem>>, %arg2: memref<2x8x8x128xbf16, #tpu.memory_space<vmem>>, %arg3: memref<128x64xbf16, #tpu.memory_space<vmem>>, %arg4: memref<128x64xbf16, #tpu.memory_space<vmem>>, %arg5: memref<1x64xf32, #tpu.memory_space<vmem>>, %arg6: memref<576x64xbf16, #tpu.memory_space<vmem>>, %arg7: memref<1x64xf32, #tpu.memory_space<vmem>>, %arg8: memref<576x128xbf16, #tpu.memory_space<vmem>>, %arg9: memref<1x128xf32, #tpu.memory_space<vmem>>, %arg10: memref<2x8x8x128xf32, #tpu.memory_space<vmem>>, %arg11: memref<2x10x10x64xbf16, #tpu.memory_space<vmem>>) attributes {dimension_semantics = [#tpu.dimension_semantics<parallel>], iteration_bounds = array<i64: 1>, scalar_prefetch = 0 : i64, scratch_operands = 1 : i64, tpu.core_type = #tpu.core_type<tc>, window_params = [{transform_indices = @transform_0, window_bounds = array<i64: 2, 8, 8, 128>}, {transform_indices = @transform_1, window_bounds = array<i64: 2, 8, 8, 128>}, {pipeline_mode = #tpu.pipeline_mode<synchronous>, transform_indices = @transform_2, window_bounds = array<i64: 128, 64>}, {pipeline_mode = #tpu.pipeline_mode<synchronous>, transform_indices = @transform_3, window_bounds = array<i64: 128, 64>}, {pipeline_mode = #tpu.pipeline_mode<synchronous>, transform_indices = @transform_4, window_bounds = array<i64: 1, 64>}, {pipeline_mode = #tpu.pipeline_mode<synchronous>, transform_indices = @transform_5, window_bounds = array<i64: 576, 64>}, {pipeline_mode = #tpu.pipeline_mode<synchronous>, transform_indices = @transform_6, window_bounds = array<i64: 1, 64>}, {pipeline_mode = #tpu.pipeline_mode<synchronous>, transform_indices = @transform_7, window_bounds = array<i64: 576, 128>}, {pipeline_mode = #tpu.pipeline_mode<synchronous>, transform_indices = @transform_8, window_bounds = array<i64: 1, 128>}, {transform_indices = @transform_9, window_bounds = array<i64: 2, 8, 8, 128>}]} {
    %c0 = arith.constant 0 : index
    %c0_0 = arith.constant 0 : index
    %c0_1 = arith.constant 0 : index
    %c0_2 = arith.constant 0 : index
    %0 = vector.load %arg1[%c0, %c0_0, %c0_1, %c0_2] : memref<2x8x8x128xbf16, #tpu.memory_space<vmem>>, vector<2x8x8x128xbf16>
    %1 = vector.shape_cast %0 : vector<2x8x8x128xbf16> to vector<128x128xbf16>
    %c0_3 = arith.constant 0 : index
    %c0_4 = arith.constant 0 : index
    %c0_5 = arith.constant 0 : index
    %c0_6 = arith.constant 0 : index
    %2 = vector.load %arg2[%c0_3, %c0_4, %c0_5, %c0_6] : memref<2x8x8x128xbf16, #tpu.memory_space<vmem>>, vector<2x8x8x128xbf16>
    %3 = vector.shape_cast %2 : vector<2x8x8x128xbf16> to vector<128x128xbf16>
    %c0_7 = arith.constant 0 : index
    %c0_8 = arith.constant 0 : index
    %4 = vector.load %arg3[%c0_7, %c0_8] : memref<128x64xbf16, #tpu.memory_space<vmem>>, vector<128x64xbf16>
    %cst = arith.constant dense<0.000000e+00> : vector<128x64xf32>
    %5 = tpu.matmul %1, %4, %cst {dimension_numbers = #tpu.dot_dimension_numbers<[1], [0], [0], [1], [0, 0, 1, 1], [], []>} : vector<128x128xbf16>, vector<128x64xbf16>, vector<128x64xf32> -> vector<128x64xf32>
    %c0_9 = arith.constant 0 : index
    %c0_10 = arith.constant 0 : index
    %6 = vector.load %arg4[%c0_9, %c0_10] : memref<128x64xbf16, #tpu.memory_space<vmem>>, vector<128x64xbf16>
    %cst_11 = arith.constant dense<0.000000e+00> : vector<128x64xf32>
    %7 = tpu.matmul %3, %6, %cst_11 {dimension_numbers = #tpu.dot_dimension_numbers<[1], [0], [0], [1], [0, 0, 1, 1], [], []>} : vector<128x128xbf16>, vector<128x64xbf16>, vector<128x64xf32> -> vector<128x64xf32>
    %8 = arith.addf %5, %7 : vector<128x64xf32>
    %c0_12 = arith.constant 0 : index
    %c0_13 = arith.constant 0 : index
    %9 = vector.load %arg5[%c0_12, %c0_13] : memref<1x64xf32, #tpu.memory_space<vmem>>, vector<1x64xf32>
    %10 = vector.broadcast %9 : vector<1x64xf32> to vector<128x64xf32>
    %11 = arith.addf %8, %10 : vector<128x64xf32>
    %cst_14 = arith.constant 0.000000e+00 : f32
    %12 = vector.broadcast %cst_14 : f32 to vector<128x64xf32>
    %13 = arith.maximumf %11, %12 : vector<128x64xf32>
    %cst_15 = arith.constant 0.000000e+00 : bf16
    %14 = vector.broadcast %cst_15 : bf16 to vector<2x10x10x64xbf16>
    %c0_16 = arith.constant 0 : index
    %c0_17 = arith.constant 0 : index
    %c0_18 = arith.constant 0 : index
    %c0_19 = arith.constant 0 : index
    %15 = vector.load %arg11[%c0_16, %c0_17, %c0_18, %c0_19] : memref<2x10x10x64xbf16, #tpu.memory_space<vmem>>, vector<2x10x10x64xbf16>
    tpu.vector_store %arg11[%c0_16, %c0_17, %c0_18, %c0_19], %14 {strides = array<i32>} : memref<2x10x10x64xbf16, #tpu.memory_space<vmem>>, vector<2x10x10x64xbf16>,
    %16 = vector.shape_cast %13 : vector<128x64xf32> to vector<2x8x8x64xf32>
    %17 = arith.truncf %16 : vector<2x8x8x64xf32> to vector<2x8x8x64xbf16>
    %c0_20 = arith.constant 0 : index
    %c1 = arith.constant 1 : index
    %c1_21 = arith.constant 1 : index
    %c0_22 = arith.constant 0 : index
    %18 = vector.load %arg11[%c0_20, %c1, %c1_21, %c0_22] : memref<2x10x10x64xbf16, #tpu.memory_space<vmem>>, vector<2x8x8x64xbf16>
    tpu.vector_store %arg11[%c0_20, %c1, %c1_21, %c0_22], %17 {strides = array<i32>} : memref<2x10x10x64xbf16, #tpu.memory_space<vmem>>, vector<2x8x8x64xbf16>,
    %c0_23 = arith.constant 0 : index
    %c0_24 = arith.constant 0 : index
    %c0_25 = arith.constant 0 : index
    %c0_26 = arith.constant 0 : index
    %19 = vector.load %arg11[%c0_23, %c0_24, %c0_25, %c0_26] : memref<2x10x10x64xbf16, #tpu.memory_space<vmem>>, vector<2x8x8x64xbf16>
    %c0_27 = arith.constant 0 : index
    %c0_28 = arith.constant 0 : index
    %c1_29 = arith.constant 1 : index
    %c0_30 = arith.constant 0 : index
    %20 = vector.load %arg11[%c0_27, %c0_28, %c1_29, %c0_30] : memref<2x10x10x64xbf16, #tpu.memory_space<vmem>>, vector<2x8x8x64xbf16>
    %c0_31 = arith.constant 0 : index
    %c0_32 = arith.constant 0 : index
    %c2 = arith.constant 2 : index
    %c0_33 = arith.constant 0 : index
    %21 = vector.load %arg11[%c0_31, %c0_32, %c2, %c0_33] : memref<2x10x10x64xbf16, #tpu.memory_space<vmem>>, vector<2x8x8x64xbf16>
    %c0_34 = arith.constant 0 : index
    %c1_35 = arith.constant 1 : index
    %c0_36 = arith.constant 0 : index
    %c0_37 = arith.constant 0 : index
    %22 = vector.load %arg11[%c0_34, %c1_35, %c0_36, %c0_37] : memref<2x10x10x64xbf16, #tpu.memory_space<vmem>>, vector<2x8x8x64xbf16>
    %c0_38 = arith.constant 0 : index
    %c1_39 = arith.constant 1 : index
    %c1_40 = arith.constant 1 : index
    %c0_41 = arith.constant 0 : index
    %23 = vector.load %arg11[%c0_38, %c1_39, %c1_40, %c0_41] : memref<2x10x10x64xbf16, #tpu.memory_space<vmem>>, vector<2x8x8x64xbf16>
    %c0_42 = arith.constant 0 : index
    %c1_43 = arith.constant 1 : index
    %c2_44 = arith.constant 2 : index
    %c0_45 = arith.constant 0 : index
    %24 = vector.load %arg11[%c0_42, %c1_43, %c2_44, %c0_45] : memref<2x10x10x64xbf16, #tpu.memory_space<vmem>>, vector<2x8x8x64xbf16>
    %c0_46 = arith.constant 0 : index
    %c2_47 = arith.constant 2 : index
    %c0_48 = arith.constant 0 : index
    %c0_49 = arith.constant 0 : index
    %25 = vector.load %arg11[%c0_46, %c2_47, %c0_48, %c0_49] : memref<2x10x10x64xbf16, #tpu.memory_space<vmem>>, vector<2x8x8x64xbf16>
    %c0_50 = arith.constant 0 : index
    %c2_51 = arith.constant 2 : index
    %c1_52 = arith.constant 1 : index
    %c0_53 = arith.constant 0 : index
    %26 = vector.load %arg11[%c0_50, %c2_51, %c1_52, %c0_53] : memref<2x10x10x64xbf16, #tpu.memory_space<vmem>>, vector<2x8x8x64xbf16>
    %c0_54 = arith.constant 0 : index
    %c2_55 = arith.constant 2 : index
    %c2_56 = arith.constant 2 : index
    %c0_57 = arith.constant 0 : index
    %27 = vector.load %arg11[%c0_54, %c2_55, %c2_56, %c0_57] : memref<2x10x10x64xbf16, #tpu.memory_space<vmem>>, vector<2x8x8x64xbf16>
    %28 = tpu.concatenate %19, %20, %21, %22, %23, %24, %25, %26, %27 in 3 : vector<2x8x8x64xbf16>, vector<2x8x8x64xbf16>, vector<2x8x8x64xbf16>, vector<2x8x8x64xbf16>, vector<2x8x8x64xbf16>, vector<2x8x8x64xbf16>, vector<2x8x8x64xbf16>, vector<2x8x8x64xbf16>, vector<2x8x8x64xbf16> -> vector<2x8x8x576xbf16>
    %29 = vector.shape_cast %28 : vector<2x8x8x576xbf16> to vector<128x576xbf16>
    %c0_58 = arith.constant 0 : index
    %c0_59 = arith.constant 0 : index
    %30 = vector.load %arg6[%c0_58, %c0_59] : memref<576x64xbf16, #tpu.memory_space<vmem>>, vector<576x64xbf16>
    %cst_60 = arith.constant dense<0.000000e+00> : vector<128x64xf32>
    %31 = tpu.matmul %29, %30, %cst_60 {dimension_numbers = #tpu.dot_dimension_numbers<[1], [0], [0], [1], [0, 0, 1, 1], [], []>} : vector<128x576xbf16>, vector<576x64xbf16>, vector<128x64xf32> -> vector<128x64xf32>
    %c0_61 = arith.constant 0 : index
    %c0_62 = arith.constant 0 : index
    %32 = vector.load %arg7[%c0_61, %c0_62] : memref<1x64xf32, #tpu.memory_space<vmem>>, vector<1x64xf32>
    %33 = vector.broadcast %32 : vector<1x64xf32> to vector<128x64xf32>
    %34 = arith.addf %31, %33 : vector<128x64xf32>
    %cst_63 = arith.constant 0.000000e+00 : f32
    %35 = vector.broadcast %cst_63 : f32 to vector<128x64xf32>
    %36 = arith.maximumf %34, %35 : vector<128x64xf32>
    %37 = vector.shape_cast %36 : vector<128x64xf32> to vector<2x8x8x64xf32>
    %38 = arith.truncf %37 : vector<2x8x8x64xf32> to vector<2x8x8x64xbf16>
    %c0_64 = arith.constant 0 : index
    %c1_65 = arith.constant 1 : index
    %c1_66 = arith.constant 1 : index
    %c0_67 = arith.constant 0 : index
    %39 = vector.load %arg11[%c0_64, %c1_65, %c1_66, %c0_67] : memref<2x10x10x64xbf16, #tpu.memory_space<vmem>>, vector<2x8x8x64xbf16>
    tpu.vector_store %arg11[%c0_64, %c1_65, %c1_66, %c0_67], %38 {strides = array<i32>} : memref<2x10x10x64xbf16, #tpu.memory_space<vmem>>, vector<2x8x8x64xbf16>,
    %c0_68 = arith.constant 0 : index
    %c0_69 = arith.constant 0 : index
    %c0_70 = arith.constant 0 : index
    %c0_71 = arith.constant 0 : index
    %40 = vector.load %arg11[%c0_68, %c0_69, %c0_70, %c0_71] : memref<2x10x10x64xbf16, #tpu.memory_space<vmem>>, vector<2x8x8x64xbf16>
    %c0_72 = arith.constant 0 : index
    %c0_73 = arith.constant 0 : index
    %c1_74 = arith.constant 1 : index
    %c0_75 = arith.constant 0 : index
    %41 = vector.load %arg11[%c0_72, %c0_73, %c1_74, %c0_75] : memref<2x10x10x64xbf16, #tpu.memory_space<vmem>>, vector<2x8x8x64xbf16>
    %c0_76 = arith.constant 0 : index
    %c0_77 = arith.constant 0 : index
    %c2_78 = arith.constant 2 : index
    %c0_79 = arith.constant 0 : index
    %42 = vector.load %arg11[%c0_76, %c0_77, %c2_78, %c0_79] : memref<2x10x10x64xbf16, #tpu.memory_space<vmem>>, vector<2x8x8x64xbf16>
    %c0_80 = arith.constant 0 : index
    %c1_81 = arith.constant 1 : index
    %c0_82 = arith.constant 0 : index
    %c0_83 = arith.constant 0 : index
    %43 = vector.load %arg11[%c0_80, %c1_81, %c0_82, %c0_83] : memref<2x10x10x64xbf16, #tpu.memory_space<vmem>>, vector<2x8x8x64xbf16>
    %c0_84 = arith.constant 0 : index
    %c1_85 = arith.constant 1 : index
    %c1_86 = arith.constant 1 : index
    %c0_87 = arith.constant 0 : index
    %44 = vector.load %arg11[%c0_84, %c1_85, %c1_86, %c0_87] : memref<2x10x10x64xbf16, #tpu.memory_space<vmem>>, vector<2x8x8x64xbf16>
    %c0_88 = arith.constant 0 : index
    %c1_89 = arith.constant 1 : index
    %c2_90 = arith.constant 2 : index
    %c0_91 = arith.constant 0 : index
    %45 = vector.load %arg11[%c0_88, %c1_89, %c2_90, %c0_91] : memref<2x10x10x64xbf16, #tpu.memory_space<vmem>>, vector<2x8x8x64xbf16>
    %c0_92 = arith.constant 0 : index
    %c2_93 = arith.constant 2 : index
    %c0_94 = arith.constant 0 : index
    %c0_95 = arith.constant 0 : index
    %46 = vector.load %arg11[%c0_92, %c2_93, %c0_94, %c0_95] : memref<2x10x10x64xbf16, #tpu.memory_space<vmem>>, vector<2x8x8x64xbf16>
    %c0_96 = arith.constant 0 : index
    %c2_97 = arith.constant 2 : index
    %c1_98 = arith.constant 1 : index
    %c0_99 = arith.constant 0 : index
    %47 = vector.load %arg11[%c0_96, %c2_97, %c1_98, %c0_99] : memref<2x10x10x64xbf16, #tpu.memory_space<vmem>>, vector<2x8x8x64xbf16>
    %c0_100 = arith.constant 0 : index
    %c2_101 = arith.constant 2 : index
    %c2_102 = arith.constant 2 : index
    %c0_103 = arith.constant 0 : index
    %48 = vector.load %arg11[%c0_100, %c2_101, %c2_102, %c0_103] : memref<2x10x10x64xbf16, #tpu.memory_space<vmem>>, vector<2x8x8x64xbf16>
    %49 = tpu.concatenate %40, %41, %42, %43, %44, %45, %46, %47, %48 in 3 : vector<2x8x8x64xbf16>, vector<2x8x8x64xbf16>, vector<2x8x8x64xbf16>, vector<2x8x8x64xbf16>, vector<2x8x8x64xbf16>, vector<2x8x8x64xbf16>, vector<2x8x8x64xbf16>, vector<2x8x8x64xbf16>, vector<2x8x8x64xbf16> -> vector<2x8x8x576xbf16>
    %50 = vector.shape_cast %49 : vector<2x8x8x576xbf16> to vector<128x576xbf16>
    %c0_104 = arith.constant 0 : index
    %c0_105 = arith.constant 0 : index
    %51 = vector.load %arg8[%c0_104, %c0_105] : memref<576x128xbf16, #tpu.memory_space<vmem>>, vector<576x128xbf16>
    %cst_106 = arith.constant dense<0.000000e+00> : vector<128x128xf32>
    %52 = tpu.matmul %50, %51, %cst_106 {dimension_numbers = #tpu.dot_dimension_numbers<[1], [0], [0], [1], [0, 0, 1, 1], [], []>} : vector<128x576xbf16>, vector<576x128xbf16>, vector<128x128xf32> -> vector<128x128xf32>
    %c0_107 = arith.constant 0 : index
    %c0_108 = arith.constant 0 : index
    %53 = vector.load %arg9[%c0_107, %c0_108] : memref<1x128xf32, #tpu.memory_space<vmem>>, vector<1x128xf32>
    %54 = vector.broadcast %53 : vector<1x128xf32> to vector<128x128xf32>
    %55 = arith.addf %52, %54 : vector<128x128xf32>
    %cst_109 = arith.constant 0.000000e+00 : f32
    %56 = vector.broadcast %cst_109 : f32 to vector<128x128xf32>
    %57 = arith.maximumf %55, %56 : vector<128x128xf32>
    %58 = vector.shape_cast %57 : vector<128x128xf32> to vector<2x8x8x128xf32>
    %c0_110 = arith.constant 0 : index
    %c0_111 = arith.constant 0 : index
    %c0_112 = arith.constant 0 : index
    %c0_113 = arith.constant 0 : index
    %59 = vector.load %arg10[%c0_110, %c0_111, %c0_112, %c0_113] : memref<2x8x8x128xf32, #tpu.memory_space<vmem>>, vector<2x8x8x128xf32>
    tpu.vector_store %arg10[%c0_110, %c0_111, %c0_112, %c0_113], %58 {strides = array<i32>} : memref<2x8x8x128xf32, #tpu.memory_space<vmem>>, vector<2x8x8x128xf32>,
    return
  }
  func.func @transform_0(%arg0: i32) -> (i32, i32, i32, i32) {
    %c0_i32 = arith.constant 0 : i32
    %c0_i32_0 = arith.constant 0 : i32
    %c0_i32_1 = arith.constant 0 : i32
    %c0_i32_2 = arith.constant 0 : i32
    return %arg0, %c0_i32, %c0_i32_0, %c0_i32_1 : i32, i32, i32, i32
  }
  func.func @transform_1(%arg0: i32) -> (i32, i32, i32, i32) {
    %c0_i32 = arith.constant 0 : i32
    %c0_i32_0 = arith.constant 0 : i32
    %c0_i32_1 = arith.constant 0 : i32
    %c0_i32_2 = arith.constant 0 : i32
    return %arg0, %c0_i32, %c0_i32_0, %c0_i32_1 : i32, i32, i32, i32
  }
  func.func @transform_2(%arg0: i32) -> (i32, i32) {
    %c0_i32 = arith.constant 0 : i32
    %c0_i32_0 = arith.constant 0 : i32
    %c0_i32_1 = arith.constant 0 : i32
    return %c0_i32, %c0_i32_0 : i32, i32
  }
  func.func @transform_3(%arg0: i32) -> (i32, i32) {
    %c0_i32 = arith.constant 0 : i32
    %c0_i32_0 = arith.constant 0 : i32
    %c0_i32_1 = arith.constant 0 : i32
    return %c0_i32, %c0_i32_0 : i32, i32
  }
  func.func @transform_4(%arg0: i32) -> (i32, i32) {
    %c0_i32 = arith.constant 0 : i32
    %c0_i32_0 = arith.constant 0 : i32
    %c0_i32_1 = arith.constant 0 : i32
    return %c0_i32, %c0_i32_0 : i32, i32
  }
  func.func @transform_5(%arg0: i32) -> (i32, i32) {
    %c0_i32 = arith.constant 0 : i32
    %c0_i32_0 = arith.constant 0 : i32
    %c0_i32_1 = arith.constant 0 : i32
    return %c0_i32, %c0_i32_0 : i32, i32
  }
  func.func @transform_6(%arg0: i32) -> (i32, i32) {
    %c0_i32 = arith.constant 0 : i32
    %c0_i32_0 = arith.constant 0 : i32
    %c0_i32_1 = arith.constant 0 : i32
    return %c0_i32, %c0_i32_0 : i32, i32
  }
  func.func @transform_7(%arg0: i32) -> (i32, i32) {
    %c0_i32 = arith.constant 0 : i32
    %c0_i32_0 = arith.constant 0 : i32
    %c0_i32_1 = arith.constant 0 : i32
    return %c0_i32, %c0_i32_0 : i32, i32
  }
  func.func @transform_8(%arg0: i32) -> (i32, i32) {
    %c0_i32 = arith.constant 0 : i32
    %c0_i32_0 = arith.constant 0 : i32
    %c0_i32_1 = arith.constant 0 : i32
    return %c0_i32, %c0_i32_0 : i32, i32
  }
  func.func @transform_9(%arg0: i32) -> (i32, i32, i32, i32) {
    %c0_i32 = arith.constant 0 : i32
    %c0_i32_0 = arith.constant 0 : i32
    %c0_i32_1 = arith.constant 0 : i32
    %c0_i32_2 = arith.constant 0 : i32
    return %arg0, %c0_i32, %c0_i32_0, %c0_i32_1 : i32, i32, i32, i32
  }
}

</mosaic_0001>

<bundles_post_ra>
// kernel: base23_forward.1
= control target key start
LH: loop header
LB: loop body
LE: loop exit
PB: predicated region body
PF: predicated region fallthrough
CT: control target
= control target key end

     0   :  { %vm423_vm0 = vcmask 519168   ;;  %vm425_vm1 = vcmask 516096   ;;  %v5686_v30 = vmov 0   ;;  %vm643_vm2 = vsmask.f32 7938  ;;  %s7933_s3 = inlined_call_operand.vmem [shape: bf16[128,64], index: 3, kind: input, shape index: {}]   ;;  %s7934_s2 = inlined_call_operand.vmem [shape: bf16[128,64], index: 2, kind: input, shape index: {}]   ;;  %s7935_s1 = inlined_call_operand.vmem [shape: bf16[2,8,8,128], index: 1, kind: input, shape index: {}]   ;;  %s7936_s0 = inlined_call_operand.vmem [shape: bf16[2,8,8,128], index: 0, kind: input, shape index: {}]   ;;  %s7937_s4 = inlined_call_operand.vmem [shape: f32[1,64], index: 4, kind: input, shape index: {}]   ;;  %s7938_s5 = inlined_call_operand.vmem [shape: bf16[576,64], index: 5, kind: input, shape index: {}]   ;;  %s7939_s6 = inlined_call_operand.vmem [shape: f32[1,64], index: 6, kind: input, shape index: {}]   ;;  %s7940_s7 = inlined_call_operand.vmem [shape: bf16[576,128], index: 7, kind: input, shape index: {}]   ;;  %s7941_s8 = inlined_call_operand.vmem [shape: f32[1,128], index: 8, kind: input, shape index: {}]   ;;  %s7942_s9 = inlined_call_operand.vmem [shape: f32[2,8,8,128], index: 9, kind: output, shape index: {}]  }
   0x1   :  { %v5582_v0 = vld [vmem:[%s7933_s3 + $0x38] sm:$0xff]  ;;  %v5581_v2 = vld [vmem:[%s7933_s3 + $0x30] sm:$0xff]  ;;  %v5580_v4 = vld [vmem:[%s7933_s3 + $0x28] sm:$0xff]  ;;  %427 = vst.msk [vmem:[#allocation2 + $0x8] sm:$0xf] %vm423_vm0, %v5686_v30  ;;  %v8081_v55 = vmov 0 }
   0x2   :  { %v5574_v1 = vld [vmem:[%s7934_s2 + $0x38] sm:$0xff]  ;;  %193 = vmatpush.bf16.msra.mxu0 %v5582_v0  ;;  %v5573_v3 = vld [vmem:[%s7934_s2 + $0x30] sm:$0xff]  ;;  %v5572_v5 = vld [vmem:[%s7934_s2 + $0x28] sm:$0xff]  ;;  %428 = vst.msk [vmem:[#allocation2 + $0xc] sm:$0x1] %vm425_vm1, %v5686_v30  ;;  %v8084_v58 = vmov 0 }
   0x3   :  { %338 = vmatpush.bf16.msra.mxu1 %v5574_v1  ;;  %v5579_v6 = vld [vmem:[%s7933_s3 + $0x20] sm:$0xff]  ;;  %v5578_v8 = vld [vmem:[%s7933_s3 + $0x18] sm:$0xff]  ;;  %v5577_v10 = vld [vmem:[%s7933_s3 + $0x10] sm:$0xff]  ;;  %424 = vst.msk [vmem:[#allocation2] sm:$0xf] %vm423_vm0, %v5686_v30  ;;  %vm1801_vm6 = vcmask 523264  }
   0x4   :  { %v5571_v7 = vld [vmem:[%s7934_s2 + $0x20] sm:$0xff]  ;;  %v5570_v9 = vld [vmem:[%s7934_s2 + $0x18] sm:$0xff]  ;;  %v5569_v11 = vld [vmem:[%s7934_s2 + $0x10] sm:$0xff]  ;;  %426 = vst.msk [vmem:[#allocation2 + $0x4] sm:$0x1] %vm425_vm1, %v5686_v30 }
   0x5   :  { %v5576_v12 = vld [vmem:[%s7933_s3 + $0x8] sm:$0xff]  ;;  %v5575_v14 = vld [vmem:[%s7933_s3] sm:$0xff]  ;;  %v5561_v20 = vld [vmem:[%s7935_s1 + $0x10] sm:$0xff]  ;;  %429 = vst.msk [vmem:[#allocation2 + $0x10] sm:$0xf] %vm423_vm0, %v5686_v30 }
   0x6   :  { %194 = vmatpush.bf16.msra.mxu0 %v5581_v2  ;;  %v5568_v13 = vld [vmem:[%s7934_s2 + $0x8] sm:$0xff]  ;;  %v5567_v15 = vld [vmem:[%s7934_s2] sm:$0xff]  ;;  %v5553_v21 = vld [vmem:[%s7936_s0 + $0x10] sm:$0xff]  ;;  %430 = vst.msk [vmem:[#allocation2 + $0x14] sm:$0x1] %vm425_vm1, %v5686_v30 }
   0x7   :  { %339 = vmatpush.bf16.msra.mxu1 %v5573_v3  ;;  %v5559_v16 = vld [vmem:[%s7935_s1] sm:$0xff]  ;;  %v5560_v18 = vld [vmem:[%s7935_s1 + $0x8] sm:$0xff]  ;;  %v5562_v22 = vld [vmem:[%s7935_s1 + $0x18] sm:$0xff]  ;;  %431 = vst.msk [vmem:[#allocation2 + $0x18] sm:$0xf] %vm423_vm0, %v5686_v30 }
   0x8   :  { %v5551_v17 = vld [vmem:[%s7936_s0] sm:$0xff]  ;;  %v5552_v19 = vld [vmem:[%s7936_s0 + $0x8] sm:$0xff]  ;;  %v5554_v23 = vld [vmem:[%s7936_s0 + $0x18] sm:$0xff]  ;;  %432 = vst.msk [vmem:[#allocation2 + $0x1c] sm:$0x1] %vm425_vm1, %v5686_v30 }
   0x9   :  { %v5563_v24 = vld [vmem:[%s7935_s1 + $0x20] sm:$0xff]  ;;  %v5564_v26 = vld [vmem:[%s7935_s1 + $0x28] sm:$0xff]  ;;  %v5565_v28 = vld [vmem:[%s7935_s1 + $0x30] sm:$0xff]  ;;  %433 = vst.msk [vmem:[#allocation2 + $0x20] sm:$0xf] %vm423_vm0, %v5686_v30 }
   0xa   :  { %195 = vmatpush.bf16.msra.mxu0 %v5580_v4  ;;  %v5555_v25 = vld [vmem:[%s7936_s0 + $0x20] sm:$0xff]  ;;  %v5556_v27 = vld [vmem:[%s7936_s0 + $0x28] sm:$0xff]  ;;  %v5557_v29 = vld [vmem:[%s7936_s0 + $0x30] sm:$0xff]  ;;  %434 = vst.msk [vmem:[#allocation2 + $0x24] sm:$0x1] %vm425_vm1, %v5686_v30 }
   0xb   :  { %340 = vmatpush.bf16.msra.mxu1 %v5572_v5  ;;  %v5566_v31 = vld [vmem:[%s7935_s1 + $0x38] sm:$0xff]  ;;  %v744_v33 = vld [vmem:[#allocation2] sm:$0xf]  ;;  %v5854_v34 = vld [vmem:[#allocation2 + $0x4] sm:$0x1] }
   0xc   :  { %v5558_v32 = vld [vmem:[%s7936_s0 + $0x38] sm:$0xff]  ;;  %435 = vst.msk [vmem:[#allocation2 + $0x28] sm:$0xf] %vm423_vm0, %v5686_v30  ;;  %v921_v35 = vunpack.c.l.b16 %v744_v33  ;;  %v7949_v36 = vunpack.c.l.b16 %v5854_v34  ;;  %s5687_s0 = smov 64   ;;  %v5891_v42 = vld [vmem:[%s7937_s4] ss:$0 sm:$0xff]  ;;  %vm5919_vm4 = vmand %vm423_vm0, %vm643_vm2 }
   0xd   :  { %436 = vst.msk [vmem:[#allocation2 + $0x2c] sm:$0x1] %vm425_vm1, %v5686_v30  ;;  %vm649_vm3 = vsmask.f32 256  ;;  %v8082_v55 = vsel %vm5919_vm4, 4294967295, %v8081_v55 }
   0xe   :  { %196 = vmatpush.bf16.msra.mxu0 %v5579_v6  ;;  %437 = vst.msk [vmem:[#allocation2 + $0x30] sm:$0xf] %vm423_vm0, %v5686_v30  ;;  %v953_v37 = vpack.c.b16 %v7949_v36, %v921_v35  ;;  %v645_v57 = vld [vmem:[#allocation2 + $0x8] sm:$0xf]  ;;  %vm5927_vm5 = vmand %vm425_vm1, %vm649_vm3  ;;  %v651_v59 = vld [vmem:[#allocation2 + $0xc] sm:$0x1] }
   0xf   :  { %341 = vmatpush.bf16.msra.mxu1 %v5571_v7  ;;  %438 = vst.msk [vmem:[#allocation2 + $0x34] sm:$0x1] %vm425_vm1, %v5686_v30  ;;  %v8085_v58 = vsel %vm5927_vm5, 4294967295, %v8084_v58  ;;  %v660_v33 = vld [vmem:[#allocation2 + $0x18] sm:$0xf] }
  0x10   :  { %439 = vst.msk [vmem:[#allocation2 + $0x38] sm:$0xf] %vm423_vm0, %v5686_v30  ;;  %v972_v38 = vshll.u32 %v953_v37, 16  ;;  %v970_v39 = vshrl.u32 %v953_v37, 16  ;;  %v663_v35 = vld [vmem:[#allocation2 + $0x1c] sm:$0x1] }
  0x11   :  { %440 = vst.msk [vmem:[#allocation2 + $0x3c] sm:$0x1] %vm425_vm1, %v5686_v30 }
  0x12   :  { %197 = vmatpush.bf16.msra.mxu0 %v5578_v8  ;;  %441 = vst.msk [vmem:[#allocation2 + $0x40] sm:$0xf] %vm423_vm0, %v5686_v30  ;;  %v974_v40 = vrot.slane %v972_v38, 1 }
  0x13   :  { %342 = vmatpush.bf16.msra.mxu1 %v5570_v9  ;;  %442 = vst.msk [vmem:[#allocation2 + $0x44] sm:$0x1] %vm425_vm1, %v5686_v30  ;;  %v654_v9 = vld [vmem:[#allocation2 + $0x10] sm:$0xf] }
  0x14   :  { %443 = vst.msk [vmem:[#allocation2 + $0x48] sm:$0xf] %vm423_vm0, %v5686_v30  ;;  %v975_v41 = vor.u32 %v974_v40, %v970_v39 }
  0x15   :  { %444 = vst.msk [vmem:[#allocation2 + $0x4c] sm:$0x1] %vm425_vm1, %v5686_v30 }
  0x16   :  { %198 = vmatpush.bf16.msra.mxu0 %v5577_v10  ;;  %445 = vst.msk [vmem:[#allocation2 + $0x50] sm:$0xf] %vm423_vm0, %v5686_v30  ;;  %1081 = vrot.lane.b32.xlu0 %v975_v41, %s5687_s0  ;;  %v657_v10 = vld [vmem:[#allocation2 + $0x14] sm:$0x1] }
  0x17   :  { %343 = vmatpush.bf16.msra.mxu1 %v5569_v11  ;;  %446 = vst.msk [vmem:[#allocation2 + $0x54] sm:$0x1] %vm425_vm1, %v5686_v30 }
  0x18   :  { %447 = vst.msk [vmem:[#allocation2 + $0x58] sm:$0xf] %vm423_vm0, %v5686_v30 }
  0x19   :  { %448 = vst.msk [vmem:[#allocation2 + $0x5c] sm:$0x1] %vm425_vm1, %v5686_v30 }
  0x1a   :  { %199 = vmatpush.bf16.msra.mxu0 %v5576_v12  ;;  %449 = vst.msk [vmem:[#allocation2 + $0x60] sm:$0xf] %vm423_vm0, %v5686_v30 }
  0x1b   :  { %344 = vmatpush.bf16.msra.mxu1 %v5568_v13  ;;  %450 = vst.msk [vmem:[#allocation2 + $0x64] sm:$0x1] %vm425_vm1, %v5686_v30 }
  0x1c   :  { %451 = vst.msk [vmem:[#allocation2 + $0x68] sm:$0xf] %vm423_vm0, %v5686_v30 }
  0x1d   :  { %452 = vst.msk [vmem:[#allocation2 + $0x6c] sm:$0x1] %vm425_vm1, %v5686_v30 }
  0x1e   :  { %200 = vmatpush.bf16.msra.mxu0 %v5575_v14  ;;  %453 = vst.msk [vmem:[#allocation2 + $0x70] sm:$0xf] %vm423_vm0, %v5686_v30 }
  0x1f   :  { %345 = vmatpush.bf16.msra.mxu1 %v5567_v15  ;;  %454 = vst.msk [vmem:[#allocation2 + $0x74] sm:$0x1] %vm425_vm1, %v5686_v30 }
  0x20   :  { %455 = vst.msk [vmem:[#allocation2 + $0x78] sm:$0xf] %vm423_vm0, %v5686_v30 }
  0x21   :  { %201 = vmatmul.bf16.vlgmr.msra.gmra.mxu0 %v5559_v16  ;;  %456 = vst.msk [vmem:[#allocation2 + $0x7c] sm:$0x1] %vm425_vm1, %v5686_v30 }
  0x22   :  { %346 = vmatmul.bf16.vlgmr.msra.gmra.mxu1 %v5551_v17  ;;  %457 = vst.msk [vmem:[#allocation2 + $0x80] sm:$0xf] %vm423_vm0, %v5686_v30 }
  0x23   :  { %458 = vst.msk [vmem:[#allocation2 + $0x84] sm:$0x1] %vm425_vm1, %v5686_v30 }
  0x24   :  { %459 = vst.msk [vmem:[#allocation2 + $0x88] sm:$0xf] %vm423_vm0, %v5686_v30 }
  0x25   :  { %460 = vst.msk [vmem:[#allocation2 + $0x8c] sm:$0x1] %vm425_vm1, %v5686_v30 }
  0x26   :  { %8083 = vst [vmem:[#allocation3_spill] sm:$0xff] %v8082_v55 }
  0x27   :  { %461 = vst.msk [vmem:[#allocation2 + $0x90] sm:$0xf] %vm423_vm0, %v5686_v30 }
  0x28   :  { %8086 = vst [vmem:[#allocation4_spill] sm:$0xff] %v8085_v58 }
  0x29   :  { %462 = vst.msk [vmem:[#allocation2 + $0x94] sm:$0x1] %vm425_vm1, %v5686_v30 }
  0x2a   :  { %463 = vst.msk [vmem:[#allocation2 + $0x98] sm:$0xf] %vm423_vm0, %v5686_v30 }
  0x2b   :  { %464 = vst.msk [vmem:[#allocation2 + $0x9c] sm:$0x1] %vm425_vm1, %v5686_v30 }
  0x31   :  { %206 = vmatmul.bf16.gmra.mxu0 %v5560_v18 }
  0x32   :  { %351 = vmatmul.bf16.gmra.mxu1 %v5552_v19 }
  0x41   :  { %211 = vmatmul.bf16.gmra.mxu0 %v5561_v20 }
  0x42   :  { %356 = vmatmul.bf16.gmra.mxu1 %v5553_v21 }
  0x51   :  { %216 = vmatmul.bf16.gmra.mxu0 %v5562_v22 }
  0x52   :  { %361 = vmatmul.bf16.gmra.mxu1 %v5554_v23 }
  0x61   :  { %221 = vmatmul.bf16.gmra.mxu0 %v5563_v24 }
  0x62   :  { %366 = vmatmul.bf16.gmra.mxu1 %v5555_v25 }
  0x71   :  { %226 = vmatmul.bf16.gmra.mxu0 %v5564_v26 }
  0x72   :  { %371 = vmatmul.bf16.gmra.mxu1 %v5556_v27 }
  0x81   :  { %231 = vmatmul.bf16.gmra.mxu0 %v5565_v28 }
  0x82   :  { %376 = vmatmul.bf16.gmra.mxu1 %v5557_v29 }
  0x91   :  { %236 = vmatmul.bf16.gmra.mxu0 %v5566_v31 }
  0x92   :  { %381 = vmatmul.bf16.gmra.mxu1 %v5558_v32 }
  0x9e   :  { %v202_v43 = vpop.f32.mrf.mxu0 }
  0x9f   :  { %v347_v44 = vpop.f32.mrf.mxu1 }
  0xa0   :  { %v348_v45 = vadd.f32 %v347_v44, %v202_v43 }
  0xa2   :  { %v391_v46 = vadd.f32 %v5891_v42, %v348_v45 }
  0xa4   :  { %v407_v47 = vmax.f32 %v391_v46, 0.0 }
  0xa6   :  { %v465_v48 = vpack.c.bf16 %v407_v47, %v407_v47  ;;  %v204_v49 = vpop.f32.mrf.mxu0 }
  0xa7   :  { %v349_v50 = vpop.f32.mrf.mxu1 }
  0xa8   :  { %v482_v51 = vshrl.u32 %v465_v48, 16  ;;  %v350_v52 = vadd.f32 %v349_v50, %v204_v49  ;;  %v485_v54 = vshll.u32 %v465_v48, 16 }
  0xaa   :  { %v484_v53 = vrot.slane %v482_v51, 7  ;;  %v392_v56 = vadd.f32 %v5891_v42, %v350_v52 }
  0xac   :  { %v487_v60 = vor.u32 %v485_v54, %v484_v53  ;;  %v488_v61 = vrot.slane %v484_v53, 4  ;;  %v408_v62 = vmax.f32 %v392_v56, 0.0 }
  0xae   :  { %v646_v63 = vsel %vm5919_vm4, %v487_v60, %v645_v57  ;;  %v652_v0 = vsel %vm5927_vm5, %v488_v61, %v651_v59  ;;  %v466_v1 = vpack.c.bf16 %v408_v62, %v408_v62  ;;  %v207_v2 = vpop.f32.mrf.mxu0 }
  0xaf   :  { %647 = vst [vmem:[#allocation2 + $0x8] sm:$0xf] %v646_v63  ;;  %v352_v3 = vpop.f32.mrf.mxu1 }
  0xb0   :  { %653 = vst [vmem:[#allocation2 + $0xc] sm:$0x1] %v652_v0  ;;  %v490_v4 = vshrl.u32 %v466_v1, 16  ;;  %v353_v5 = vadd.f32 %v352_v3, %v207_v2  ;;  %v493_v7 = vshll.u32 %v466_v1, 16  ;;  %v666_v3 = vld [vmem:[#allocation2 + $0x20] sm:$0xf] }
  0xb2   :  { %v492_v6 = vrot.slane %v490_v4, 7  ;;  %v393_v8 = vadd.f32 %v5891_v42, %v353_v5  ;;  %v669_v4 = vld [vmem:[#allocation2 + $0x24] sm:$0x1] }
  0xb4   :  { %v495_v11 = vor.u32 %v493_v7, %v492_v6  ;;  %v496_v12 = vrot.slane %v492_v6, 4  ;;  %v409_v13 = vmax.f32 %v393_v8, 0.0 }
  0xb6   :  { %v655_v14 = vsel %vm5919_vm4, %v495_v11, %v654_v9  ;;  %v658_v15 = vsel %vm5927_vm5, %v496_v12, %v657_v10  ;;  %v467_v16 = vpack.c.bf16 %v409_v13, %v409_v13  ;;  %v745_v17 = vld [vmem:[#allocation2 + $0x8] sm:$0xf]  ;;  %v209_v19 = vpop.f32.mrf.mxu0 }
  0xb7   :  { %v792_v18 = vld [vmem:[#allocation2 + $0x8] sm:$0xf]  ;;  %656 = vst [vmem:[#allocation2 + $0x10] sm:$0xf] %v655_v14  ;;  %v354_v20 = vpop.f32.mrf.mxu1  ;;  %v5946_v21 = vld [vmem:[#allocation2 + $0xc] sm:$0x1]  ;;  %v923_v22 = vunpack.c.l.b16 %v745_v17 }
  0xb8   :  { %v5948_v23 = vunpack.c.l.b16 %v792_v18  ;;  %659 = vst [vmem:[#allocation2 + $0x14] sm:$0x1] %v658_v15  ;;  %v498_v24 = vshrl.u32 %v467_v16, 16  ;;  %v355_v25 = vadd.f32 %v354_v20, %v209_v19  ;;  %v7951_v26 = vunpack.c.l.b16 %v5946_v21  ;;  %v5951_v27 = vld [vmem:[#allocation2 + $0xc] sm:$0x1] }
  0xb9   :  { %v7960_v28 = vunpack.c.l.b16 %v5951_v27  ;;  %v501_v30 = vshll.u32 %v467_v16, 16 }
  0xba   :  { %v500_v29 = vrot.slane %v498_v24, 7  ;;  %v394_v31 = vadd.f32 %v5891_v42, %v355_v25  ;;  %v954_v32 = vpack.c.b16 %v7951_v26, %v923_v22 }
  0xbb   :  { %v5960_v37 = vpack.c.b16 %v7960_v28, %v5948_v23 }
  0xbc   :  { %v503_v38 = vor.u32 %v501_v30, %v500_v29  ;;  %v504_v39 = vrot.slane %v500_v29, 4  ;;  %v410_v40 = vmax.f32 %v394_v31, 0.0  ;;  %v979_v41 = vshll.u32 %v954_v32, 16 }
  0xbd   :  { %v977_v50 = vshrl.u32 %v954_v32, 16 }
  0xbe   :  { %v661_v43 = vsel %vm5919_vm4, %v503_v38, %v660_v33  ;;  %v664_v44 = vsel %vm5927_vm5, %v504_v39, %v663_v35  ;;  %v468_v45 = vpack.c.bf16 %v410_v40, %v410_v40  ;;  %v746_v46 = vld [vmem:[#allocation2 + $0x10] sm:$0xf]  ;;  %v212_v48 = vpop.f32.mrf.mxu0  ;;  %v981_v51 = vrot.slane %v979_v41, 1  ;;  %v672_v39 = vld [vmem:[#allocation2 + $0x28] sm:$0xf] }
  0xbf   :  { %v793_v47 = vld [vmem:[#allocation2 + $0x10] sm:$0xf]  ;;  %662 = vst [vmem:[#allocation2 + $0x18] sm:$0xf] %v661_v43  ;;  %v357_v49 = vpop.f32.mrf.mxu1  ;;  %v5966_v52 = vld [vmem:[#allocation2 + $0x14] sm:$0x1]  ;;  %v925_v53 = vunpack.c.l.b16 %v746_v46 }
  0xc0   :  { %8087 = vst [vmem:[#allocation5_spill] sm:$0xff] %v5966_v52  ;;  %v506_v54 = vshrl.u32 %v468_v45, 16  ;;  %v358_v56 = vadd.f32 %v357_v49, %v212_v48  ;;  %v7947_v57 = vunpack.c.l.b16 %v5966_v52  ;;  %v509_v59 = vshll.u32 %v468_v45, 16  ;;  %v5971_v62 = vld [vmem:[#allocation2 + $0x14] sm:$0x1] }
  0xc1   :  { %665 = vst [vmem:[#allocation2 + $0x1c] sm:$0x1] %v664_v44  ;;  %v982_v60 = vor.u32 %v981_v51, %v977_v50  ;;  %v5969_v61 = vunpack.c.l.b16 %v793_v47  ;;  %v7961_v2 = vunpack.c.l.b16 %v5971_v62  ;;  %v675_v40 = vld [vmem:[#allocation2 + $0x2c] sm:$0x1] }
  0xc2   :  { %v508_v63 = vrot.slane %v506_v54, 7  ;;  %v395_v0 = vadd.f32 %v5891_v42, %v358_v56  ;;  %v955_v1 = vpack.c.b16 %v7947_v57, %v925_v53 }
  0xc3   :  { %1083 = vrot.lane.b32.xlu0 %v982_v60, %s5687_s0  ;;  %v5981_v9 = vpack.c.b16 %v7961_v2, %v5969_v61  ;;  %v1210_v58 = vpack.c.b16 %v5969_v61, %v5969_v61  ;;  %v5617_v61 = vld [vmem:[%s7938_s5 + $0x110] sm:$0xff] }
  0xc4   :  { %v511_v5 = vor.u32 %v509_v59, %v508_v63  ;;  %v512_v6 = vrot.slane %v508_v63, 4  ;;  %v411_v7 = vmax.f32 %v395_v0, 0.0  ;;  %v986_v8 = vshll.u32 %v955_v1, 16 }
  0xc5   :  { %v984_v17 = vshrl.u32 %v955_v1, 16 }
  0xc6   :  { %v667_v10 = vsel %vm5919_vm4, %v511_v5, %v666_v3  ;;  %v670_v11 = vsel %vm5927_vm5, %v512_v6, %v669_v4  ;;  %v469_v12 = vpack.c.bf16 %v411_v7, %v411_v7  ;;  %v5987_v13 = vld [vmem:[#allocation2 + $0x18] sm:$0xf]  ;;  %v214_v15 = vpop.f32.mrf.mxu0  ;;  %v988_v18 = vrot.slane %v986_v8, 1 }
  0xc7   :  { %v794_v14 = vld [vmem:[#allocation2 + $0x18] sm:$0xf]  ;;  %668 = vst [vmem:[#allocation2 + $0x20] sm:$0xf] %v667_v10  ;;  %v359_v16 = vpop.f32.mrf.mxu1  ;;  %v927_v20 = vunpack.c.l.b16 %v5987_v13 }
  0xc8   :  { %v5989_v19 = vld [vmem:[#allocation2 + $0x1c] sm:$0x1]  ;;  %671 = vst [vmem:[#allocation2 + $0x24] sm:$0x1] %v670_v11  ;;  %v514_v22 = vshrl.u32 %v469_v12, 16  ;;  %v360_v24 = vadd.f32 %v359_v16, %v214_v15  ;;  %v989_v29 = vor.u32 %v988_v18, %v984_v17  ;;  %v5993_v30 = vunpack.c.l.b16 %v794_v14 }
  0xc9   :  { %v7948_v25 = vunpack.c.l.b16 %v5989_v19  ;;  %v5995_v31 = vld [vmem:[#allocation2 + $0x1c] sm:$0x1]  ;;  %v517_v33 = vshll.u32 %v469_v12, 16  ;;  %v678_v15 = vld [vmem:[#allocation2 + $0x30] sm:$0xf] }
  0xca   :  { %v516_v32 = vrot.slane %v514_v22, 7  ;;  %v396_v35 = vadd.f32 %v5891_v42, %v360_v24  ;;  %1085 = vrot.lane.b32.xlu1 %v989_v29, %s5687_s0  ;;  %v7956_v41 = vunpack.c.l.b16 %v5995_v31  ;;  %v681_v16 = vld [vmem:[#allocation2 + $0x34] sm:$0x1] }
  0xcb   :  { %v956_v38 = vpack.c.b16 %v7948_v25, %v927_v20 }
  0xcc   :  { %v519_v43 = vor.u32 %v517_v33, %v516_v32  ;;  %v520_v44 = vrot.slane %v516_v32, 4  ;;  %v412_v45 = vmax.f32 %v396_v35, 0.0  ;;  %v6005_v47 = vpack.c.b16 %v7956_v41, %v5993_v30 }
  0xcd   :  { %v993_v46 = vshll.u32 %v956_v38, 16  ;;  %v991_v59 = vshrl.u32 %v956_v38, 16 }
  0xce   :  { %8088 = vst [vmem:[#allocation6_spill] sm:$0xff] %v6005_v47  ;;  %v673_v48 = vsel %vm5919_vm4, %v519_v43, %v672_v39  ;;  %v676_v49 = vsel %vm5927_vm5, %v520_v44, %v675_v40  ;;  %v470_v50 = vpack.c.bf16 %v412_v45, %v412_v45  ;;  %v748_v51 = vld [vmem:[#allocation2 + $0x20] sm:$0xf]  ;;  %v217_v54 = vpop.f32.mrf.mxu0 }
  0xcf   :  { %v795_v53 = vld [vmem:[#allocation2 + $0x20] sm:$0xf]  ;;  %674 = vst [vmem:[#allocation2 + $0x28] sm:$0xf] %v673_v48  ;;  %v362_v56 = vpop.f32.mrf.mxu1  ;;  %v995_v60 = vrot.slane %v993_v46, 1  ;;  %v929_v0 = vunpack.c.l.b16 %v748_v51 }
  0xd0   :  { %v6011_v63 = vld [vmem:[#allocation2 + $0x24] sm:$0x1]  ;;  %677 = vst [vmem:[#allocation2 + $0x2c] sm:$0x1] %v676_v49  ;;  %v522_v1 = vshrl.u32 %v470_v50, 16  ;;  %v363_v3 = vadd.f32 %v362_v56, %v217_v54  ;;  %v525_v5 = vshll.u32 %v470_v50, 16  ;;  %v6014_v7 = vunpack.c.l.b16 %v795_v53 }
  0xd1   :  { %8089 = vst [vmem:[#allocation7_spill] sm:$0xff] %v6011_v63  ;;  %v7945_v4 = vunpack.c.l.b16 %v6011_v63  ;;  %v996_v6 = vor.u32 %v995_v60, %v991_v59  ;;  %v6016_v8 = vld [vmem:[#allocation2 + $0x24] sm:$0x1] }
  0xd2   :  { %v524_v10 = vrot.slane %v522_v1, 7  ;;  %v397_v11 = vadd.f32 %v5891_v42, %v363_v3  ;;  %v7958_v14 = vunpack.c.l.b16 %v6016_v8  ;;  %v684_v1 = vld [vmem:[#allocation2 + $0x38] sm:$0xf]  ;;  %v687_v3 = vld [vmem:[#allocation2 + $0x3c] sm:$0x1] }
  0xd3   :  { %v957_v12 = vpack.c.b16 %v7945_v4, %v929_v0  ;;  %1087 = vrot.lane.b32.xlu1 %v996_v6, %s5687_s0 }
  0xd4   :  { %v527_v17 = vor.u32 %v525_v5, %v524_v10  ;;  %v528_v18 = vrot.slane %v524_v10, 4  ;;  %v413_v20 = vmax.f32 %v397_v11, 0.0  ;;  %v6026_v24 = vpack.c.b16 %v7958_v14, %v6014_v7 }
  0xd5   :  { %v1000_v22 = vshll.u32 %v957_v12, 16  ;;  %v998_v43 = vshrl.u32 %v957_v12, 16 }
  0xd6   :  { %8090 = vst [vmem:[#allocation8_spill] sm:$0xff] %v6026_v24  ;;  %v679_v29 = vsel %vm5919_vm4, %v527_v17, %v678_v15  ;;  %v682_v32 = vsel %vm5927_vm5, %v528_v18, %v681_v16  ;;  %v471_v33 = vpack.c.bf16 %v413_v20, %v413_v20  ;;  %v6032_v35 = vld [vmem:[#allocation2 + $0x28] sm:$0xf]  ;;  %v219_v39 = vpop.f32.mrf.mxu0 }
  0xd7   :  { %v796_v38 = vld [vmem:[#allocation2 + $0x28] sm:$0xf]  ;;  %680 = vst [vmem:[#allocation2 + $0x30] sm:$0xf] %v679_v29  ;;  %v364_v40 = vpop.f32.mrf.mxu1  ;;  %v1002_v44 = vrot.slane %v1000_v22, 1  ;;  %v931_v46 = vunpack.c.l.b16 %v6032_v35 }
  0xd8   :  { %v6034_v45 = vld [vmem:[#allocation2 + $0x2c] sm:$0x1]  ;;  %683 = vst [vmem:[#allocation2 + $0x34] sm:$0x1] %v682_v32  ;;  %v530_v48 = vshrl.u32 %v471_v33, 16  ;;  %v365_v49 = vadd.f32 %v364_v40, %v219_v39  ;;  %v6038_v53 = vunpack.c.l.b16 %v796_v38  ;;  %v533_v59 = vshll.u32 %v471_v33, 16 }
  0xd9   :  { %8091 = vst [vmem:[#allocation9_spill] sm:$0xff] %v6034_v45  ;;  %v7946_v50 = vunpack.c.l.b16 %v6034_v45  ;;  %v1003_v51 = vor.u32 %v1002_v44, %v998_v43  ;;  %v6040_v54 = vld [vmem:[#allocation2 + $0x2c] sm:$0x1] }
  0xda   :  { %v532_v56 = vrot.slane %v530_v48, 7  ;;  %v398_v60 = vadd.f32 %v5891_v42, %v365_v49  ;;  %v7954_v5 = vunpack.c.l.b16 %v6040_v54 }
  0xdb   :  { %v958_v0 = vpack.c.b16 %v7946_v50, %v931_v46  ;;  %1089 = vrot.lane.b32.xlu2 %v1003_v51, %s5687_s0  ;;  %v752_v51 = vld [vmem:[#allocation2 + $0x50] sm:$0xf]  ;;  %v699_v50 = vld [vmem:[#allocation2 + $0x5c] sm:$0x1] }
  0xdc   :  { %v535_v6 = vor.u32 %v533_v59, %v532_v56  ;;  %v536_v10 = vrot.slane %v532_v56, 4  ;;  %v414_v11 = vmax.f32 %v398_v60, 0.0  ;;  %v6050_v15 = vpack.c.b16 %v7954_v5, %v6038_v53  ;;  %v6062_v56 = vld [vmem:[#allocation2 + $0x54] sm:$0x1]  ;;  %v711_v5 = vld [vmem:[#allocation2 + $0x6c] sm:$0x1] }
  0xdd   :  { %v1007_v12 = vshll.u32 %v958_v0, 16  ;;  %v1005_v33 = vshrl.u32 %v958_v0, 16  ;;  %8094 = vst [vmem:[#allocation12_spill] sm:$0xff] %v6062_v56 }
  0xde   :  { %8092 = vst [vmem:[#allocation10_spill] sm:$0xff] %v6050_v15  ;;  %v685_v16 = vsel %vm5919_vm4, %v535_v6, %v684_v1  ;;  %v688_v17 = vsel %vm5927_vm5, %v536_v10, %v687_v3  ;;  %v472_v18 = vpack.c.bf16 %v414_v11, %v414_v11  ;;  %v6056_v20 = vld [vmem:[#allocation2 + $0x30] sm:$0xf]  ;;  %v222_v29 = vpop.f32.mrf.mxu0  ;;  %v937_v6 = vunpack.c.l.b16 %v752_v51  ;;  %v690_v10 = vld [vmem:[#allocation2 + $0x40] sm:$0xf] }
  0xdf   :  { %v797_v22 = vld [vmem:[#allocation2 + $0x30] sm:$0xf]  ;;  %686 = vst [vmem:[#allocation2 + $0x38] sm:$0xf] %v685_v16  ;;  %v367_v32 = vpop.f32.mrf.mxu1  ;;  %v1009_v38 = vrot.slane %v1007_v12, 1  ;;  %v933_v40 = vunpack.c.l.b16 %v6056_v20  ;;  %v7943_v12 = vunpack.c.l.b16 %v6062_v56 }
  0xe0   :  { %v6058_v39 = vld [vmem:[#allocation2 + $0x34] sm:$0x1]  ;;  %689 = vst [vmem:[#allocation2 + $0x3c] sm:$0x1] %v688_v17  ;;  %v538_v43 = vshrl.u32 %v472_v18, 16  ;;  %v541_v44 = vshll.u32 %v472_v18, 16  ;;  %v368_v46 = vadd.f32 %v367_v32, %v222_v29  ;;  %v6064_v59 = vunpack.c.l.b16 %v797_v22 }
  0xe1   :  { %8093 = vst [vmem:[#allocation11_spill] sm:$0xff] %v6058_v39  ;;  %v7944_v48 = vunpack.c.l.b16 %v6058_v39  ;;  %v1010_v49 = vor.u32 %v1009_v38, %v1005_v33  ;;  %v6066_v60 = vld [vmem:[#allocation2 + $0x34] sm:$0x1]  ;;  %v693_v11 = vld [vmem:[#allocation2 + $0x44] sm:$0x1]  ;;  %v961_v32 = vpack.c.b16 %v7943_v12, %v937_v6 }
  0xe2   :  { %v540_v0 = vrot.slane %v538_v43, 7  ;;  %v399_v1 = vadd.f32 %v5891_v42, %v368_v46  ;;  %v7955_v16 = vunpack.c.l.b16 %v6066_v60 }
  0xe3   :  { %v959_v3 = vpack.c.b16 %v7944_v48, %v933_v40  ;;  %1091 = vrot.lane.b32.xlu2 %v1010_v49, %s5687_s0  ;;  %v1026_v4 = vshrl.u32 %v961_v32, 16 }
  0xe4   :  { %v543_v17 = vor.u32 %v541_v44, %v540_v0  ;;  %v544_v18 = vrot.slane %v540_v0, 4  ;;  %v415_v22 = vmax.f32 %v399_v1, 0.0  ;;  %v6079_v33 = vpack.c.b16 %v7955_v16, %v6064_v59 }
  0xe5   :  { %v1014_v29 = vshll.u32 %v959_v3, 16  ;;  %v1012_v51 = vshrl.u32 %v959_v3, 16 }
  0xe6   :  { %8095 = vst [vmem:[#allocation13_spill] sm:$0xff] %v6079_v33  ;;  %v691_v38 = vsel %vm5919_vm4, %v543_v17, %v690_v10  ;;  %v694_v40 = vsel %vm5927_vm5, %v544_v18, %v693_v11  ;;  %v473_v43 = vpack.c.bf16 %v415_v22, %v415_v22  ;;  %v6085_v46 = vld [vmem:[#allocation2 + $0x38] sm:$0xf]  ;;  %v224_v44 = vpop.f32.mrf.mxu0  ;;  %v1028_v11 = vshll.u32 %v961_v32, 16 }
  0xe7   :  { %692 = vst [vmem:[#allocation2 + $0x40] sm:$0xf] %v691_v38  ;;  %v369_v49 = vpop.f32.mrf.mxu1  ;;  %v1016_v0 = vrot.slane %v1014_v29, 1  ;;  %v6087_v1 = vld [vmem:[#allocation2 + $0x3c] sm:$0x1]  ;;  %v935_v6 = vunpack.c.l.b16 %v6085_v46 }
  0xe8   :  { %8096 = vst [vmem:[#allocation14_spill] sm:$0xff] %v6087_v1  ;;  %v546_v12 = vshrl.u32 %v473_v43, 16  ;;  %v370_v48 = vadd.f32 %v369_v49, %v224_v44  ;;  %v7950_v10 = vunpack.c.l.b16 %v6087_v1  ;;  %v549_v22 = vshll.u32 %v473_v43, 16  ;;  %v696_v29 = vld [vmem:[#allocation2 + $0x58] sm:$0xf] }
  0xe9   :  { %695 = vst [vmem:[#allocation2 + $0x44] sm:$0x1] %v694_v40  ;;  %v1017_v17 = vor.u32 %v1016_v0, %v1012_v51  ;;  %v1030_v57 = vrot.slane %v1028_v11, 1  ;;  %v798_v43 = vld [vmem:[#allocation2 + $0x38] sm:$0xf] }
  0xea   :  { %v548_v18 = vrot.slane %v546_v12, 7  ;;  %v400_v38 = vadd.f32 %v5891_v42, %v370_v48  ;;  %v960_v3 = vpack.c.b16 %v7950_v10, %v935_v6 }
  0xeb   :  { %1093 = vrot.lane.b32.xlu0 %v1017_v17, %s5687_s0  ;;  %v1031_v36 = vor.u32 %v1030_v57, %v1026_v4  ;;  %v6100_v57 = vld [vmem:[#allocation2 + $0x3c] sm:$0x1] }
  0xec   :  { %v551_v40 = vor.u32 %v549_v22, %v548_v18  ;;  %v552_v25 = vrot.slane %v548_v18, 4  ;;  %v416_v44 = vmax.f32 %v400_v38, 0.0  ;;  %v1021_v49 = vshll.u32 %v960_v3, 16 }
  0xed   :  { %v1019_v10 = vshrl.u32 %v960_v3, 16  ;;  %1097 = vrot.lane.b32.xlu2 %v1031_v36, %s5687_s0  ;;  %v6102_v22 = vunpack.c.l.b16 %v798_v43  ;;  %v705_v36 = vld [vmem:[#allocation2 + $0x64] sm:$0x1] }
  0xee   :  { %v697_v32 = vsel %vm5919_vm4, %v551_v40, %v696_v29  ;;  %v700_v12 = vsel %vm5927_vm5, %v552_v25, %v699_v50  ;;  %v474_v48 = vpack.c.bf16 %v416_v44, %v416_v44  ;;  %v799_v51 = vld [vmem:[#allocation2 + $0x40] sm:$0xf]  ;;  %v227_v0 = vpop.f32.mrf.mxu0  ;;  %v1023_v17 = vrot.slane %v1021_v49, 1 }
  0xef   :  { %698 = vst [vmem:[#allocation2 + $0x58] sm:$0xf] %v697_v32  ;;  %v372_v6 = vpop.f32.mrf.mxu1  ;;  %v6104_v38 = vunpack.c.l.b16 %v799_v51  ;;  %v702_v44 = vld [vmem:[#allocation2 + $0x60] sm:$0xf]  ;;  %v7952_v49 = vunpack.c.l.b16 %v6100_v57 }
  0xf0   :  { %701 = vst [vmem:[#allocation2 + $0x5c] sm:$0x1] %v700_v12  ;;  %v554_v11 = vshrl.u32 %v474_v48, 16  ;;  %v373_v18 = vadd.f32 %v372_v6, %v227_v0  ;;  %v1024_v4 = vor.u32 %v1023_v17, %v1019_v10  ;;  %v6106_v25 = vld [vmem:[#allocation2 + $0x44] sm:$0x1]  ;;  %v557_v29 = vshll.u32 %v474_v48, 16 }
  0xf1   :  { %v7953_v3 = vunpack.c.l.b16 %v6106_v25 }
  0xf2   :  { %v556_v50 = vrot.slane %v554_v11, 7  ;;  %v401_v40 = vadd.f32 %v5891_v42, %v373_v18  ;;  %1095 = vrot.lane.b32.xlu1 %v1024_v4, %s5687_s0  ;;  %v6126_v11 = vpack.c.b16 %v7952_v49, %v6102_v22 }
  0xf3   :  { %v6115_v43 = vpack.c.b16 %v7953_v3, %v6104_v38  ;;  %v5590_v3 = vld [vmem:[%s7938_s5 + $0x38] sm:$0xff] }
  0xf4   :  { %v559_v32 = vor.u32 %v557_v29, %v556_v50  ;;  %v560_v10 = vrot.slane %v556_v50, 4  ;;  %v417_v12 = vmax.f32 %v401_v40, 0.0  ;;  %8098 = vst [vmem:[#allocation16_spill] sm:$0xff] %v6126_v11  ;;  %2526 = vmatpush.bf16.msra.mxu2 %v5590_v3 }
  0xf5   :  { %8097 = vst [vmem:[#allocation15_spill] sm:$0xff] %v6115_v43  ;;  %v723_v43 = vld [vmem:[#allocation2 + $0x7c] sm:$0x1] }
  0xf6   :  { %v703_v48 = vsel %vm5919_vm4, %v559_v32, %v702_v44  ;;  %v706_v51 = vsel %vm5927_vm5, %v560_v10, %v705_v36  ;;  %v475_v0 = vpack.c.bf16 %v417_v12, %v417_v12  ;;  %v6121_v6 = vld [vmem:[#allocation2 + $0x58] sm:$0xf]  ;;  %v229_v18 = vpop.f32.mrf.mxu0 }
  0xf7   :  { %v800_v17 = vld [vmem:[#allocation2 + $0x58] sm:$0xf]  ;;  %704 = vst [vmem:[#allocation2 + $0x60] sm:$0xf] %v703_v48  ;;  %v374_v4 = vpop.f32.mrf.mxu1  ;;  %v6128_v50 = vld [vmem:[#allocation2 + $0x5c] sm:$0x1]  ;;  %v939_v29 = vunpack.c.l.b16 %v6121_v6 }
  0xf8   :  { %8099 = vst [vmem:[#allocation17_spill] sm:$0xff] %v6128_v50  ;;  %v562_v40 = vshrl.u32 %v475_v0, 16  ;;  %v375_v44 = vadd.f32 %v374_v4, %v229_v18  ;;  %v7957_v36 = vunpack.c.l.b16 %v6128_v50  ;;  %v6132_v32 = vld [vmem:[#allocation2 + $0x5c] sm:$0x1]  ;;  %v6134_v10 = vunpack.c.l.b16 %v800_v17 }
  0xf9   :  { %707 = vst [vmem:[#allocation2 + $0x64] sm:$0x1] %v706_v51  ;;  %v565_v26 = vshll.u32 %v475_v0, 16  ;;  %v708_v51 = vld [vmem:[#allocation2 + $0x68] sm:$0xf]  ;;  %v7959_v18 = vunpack.c.l.b16 %v6132_v32 }
  0xfa   :  { %v564_v12 = vrot.slane %v562_v40, 7  ;;  %v402_v49 = vadd.f32 %v5891_v42, %v375_v44  ;;  %v962_v48 = vpack.c.b16 %v7957_v36, %v939_v29 }
  0xfb   :  { %v6146_v0 = vpack.c.b16 %v7959_v18, %v6134_v10 }
  0xfc   :  { %v567_v4 = vor.u32 %v565_v26, %v564_v12  ;;  %v568_v16 = vrot.slane %v564_v12, 4  ;;  %v418_v41 = vmax.f32 %v402_v49, 0.0  ;;  %v1035_v17 = vshll.u32 %v962_v48, 16  ;;  %v5589_v26 = vld [vmem:[%s7938_s5 + $0x30] sm:$0xff] }
  0xfd   :  { %8100 = vst [vmem:[#allocation18_spill] sm:$0xff] %v6146_v0  ;;  %v1033_v14 = vshrl.u32 %v962_v48, 16  ;;  %2527 = vmatpush.bf16.msra.mxu2 %v5589_v26  ;;  %v717_v26 = vld [vmem:[#allocation2 + $0x74] sm:$0x1] }
  0xfe   :  { %v709_v29 = vsel %vm5919_vm4, %v567_v4, %v708_v51  ;;  %v712_v40 = vsel %vm5927_vm5, %v568_v16, %v711_v5  ;;  %v476_v44 = vpack.c.bf16 %v418_v41, %v418_v41  ;;  %v6152_v36 = vld [vmem:[#allocation2 + $0x60] sm:$0xf]  ;;  %v232_v49 = vpop.f32.mrf.mxu0  ;;  %v1037_v18 = vrot.slane %v1035_v17, 1 }
  0xff   :  { %v801_v3 = vld [vmem:[#allocation2 + $0x60] sm:$0xf]  ;;  %710 = vst [vmem:[#allocation2 + $0x68] sm:$0xf] %v709_v29  ;;  %v377_v12 = vpop.f32.mrf.mxu1  ;;  %v941_v51 = vunpack.c.l.b16 %v6152_v36 }
 0x100   :  { %v6157_v28 = vld [vmem:[#allocation2 + $0x64] sm:$0x1]  ;;  %713 = vst [vmem:[#allocation2 + $0x6c] sm:$0x1] %v712_v40  ;;  %v570_v4 = vshrl.u32 %v476_v44, 16  ;;  %v378_v5 = vadd.f32 %v377_v12, %v232_v49  ;;  %v573_v16 = vshll.u32 %v476_v44, 16  ;;  %v1038_v2 = vor.u32 %v1037_v18, %v1033_v14 }
 0x101   :  { %8101 = vst [vmem:[#allocation19_spill] sm:$0xff] %v6157_v28  ;;  %v7964_v41 = vunpack.c.l.b16 %v6157_v28  ;;  %v6161_v0 = vunpack.c.l.b16 %v801_v3  ;;  %v6163_v56 = vld [vmem:[#allocation2 + $0x64] sm:$0x1]  ;;  %v5588_v40 = vld [vmem:[%s7938_s5 + $0x28] sm:$0xff]  ;;  %v714_v12 = vld [vmem:[#allocation2 + $0x70] sm:$0xf] }
 0x102   :  { %v572_v29 = vrot.slane %v570_v4, 7  ;;  %v403_v48 = vadd.f32 %v5891_v42, %v378_v5  ;;  %v7966_v49 = vunpack.c.l.b16 %v6163_v56  ;;  %1099 = vrot.lane.b32.xlu0 %v1038_v2, %s5687_s0  ;;  %2528 = vmatpush.bf16.msra.mxu2 %v5588_v40  ;;  %v5587_v2 = vld [vmem:[%s7938_s5 + $0x20] sm:$0xff] }
 0x103   :  { %v963_v17 = vpack.c.b16 %v7964_v41, %v941_v51 }
 0x104   :  { %v575_v14 = vor.u32 %v573_v16, %v572_v29  ;;  %v576_v18 = vrot.slane %v572_v29, 4  ;;  %v419_v44 = vmax.f32 %v403_v48, 0.0  ;;  %v6176_v4 = vpack.c.b16 %v7966_v49, %v6161_v0 }
 0x105   :  { %v1042_v3 = vshll.u32 %v963_v17, 16  ;;  %v1040_v48 = vshrl.u32 %v963_v17, 16  ;;  %v5586_v17 = vld [vmem:[%s7938_s5 + $0x18] sm:$0xff] }
 0x106   :  { %8102 = vst [vmem:[#allocation20_spill] sm:$0xff] %v6176_v4  ;;  %v715_v51 = vsel %vm5919_vm4, %v575_v14, %v714_v12  ;;  %v718_v5 = vsel %vm5927_vm5, %v576_v18, %v717_v26  ;;  %v477_v41 = vpack.c.bf16 %v419_v44, %v419_v44  ;;  %v6182_v28 = vld [vmem:[#allocation2 + $0x68] sm:$0xf]  ;;  %v234_v16 = vpop.f32.mrf.mxu0  ;;  %2529 = vmatpush.bf16.msra.mxu2 %v5587_v2 }
 0x107   :  { %716 = vst [vmem:[#allocation2 + $0x70] sm:$0xf] %v715_v51  ;;  %v379_v29 = vpop.f32.mrf.mxu1  ;;  %v1044_v40 = vrot.slane %v1042_v3, 1  ;;  %v6187_v49 = vld [vmem:[#allocation2 + $0x6c] sm:$0x1]  ;;  %v943_v4 = vunpack.c.l.b16 %v6182_v28 }
 0x108   :  { %8103 = vst [vmem:[#allocation21_spill] sm:$0xff] %v6187_v49  ;;  %v578_v12 = vshrl.u32 %v477_v41, 16  ;;  %v380_v14 = vadd.f32 %v379_v29, %v234_v16  ;;  %v7971_v26 = vunpack.c.l.b16 %v6187_v49  ;;  %v581_v50 = vshll.u32 %v477_v41, 16  ;;  %v720_v3 = vld [vmem:[#allocation2 + $0x78] sm:$0xf]  ;;  %v5585_v41 = vld [vmem:[%s7938_s5 + $0x10] sm:$0xff] }
 0x109   :  { %719 = vst [vmem:[#allocation2 + $0x74] sm:$0x1] %v718_v5  ;;  %v1045_v18 = vor.u32 %v1044_v40, %v1040_v48  ;;  %v802_v48 = vld [vmem:[#allocation2 + $0x68] sm:$0xf] }
 0x10a   :  { %v580_v44 = vrot.slane %v578_v12, 7  ;;  %v404_v11 = vadd.f32 %v5891_v42, %v380_v14  ;;  %v964_v51 = vpack.c.b16 %v7971_v26, %v943_v4  ;;  %2530 = vmatpush.bf16.msra.mxu2 %v5586_v17 }
 0x10b   :  { %1101 = vrot.lane.b32.xlu1 %v1045_v18, %s5687_s0 }
 0x10c   :  { %v583_v5 = vor.u32 %v581_v50, %v580_v44  ;;  %v584_v16 = vrot.slane %v580_v44, 4  ;;  %v420_v29 = vmax.f32 %v404_v11, 0.0  ;;  %v1049_v2 = vshll.u32 %v964_v51, 16  ;;  %v6207_v50 = vld [vmem:[#allocation2 + $0x6c] sm:$0x1] }
 0x10d   :  { %v1047_v17 = vshrl.u32 %v964_v51, 16 }
 0x10e   :  { %v721_v4 = vsel %vm5919_vm4, %v583_v5, %v720_v3  ;;  %v724_v40 = vsel %vm5927_vm5, %v584_v16, %v723_v43  ;;  %v478_v12 = vpack.c.bf16 %v420_v29, %v420_v29  ;;  %v6205_v14 = vld [vmem:[#allocation2 + $0x70] sm:$0xf]  ;;  %v237_v11 = vpop.f32.mrf.mxu0  ;;  %v1051_v26 = vrot.slane %v1049_v2, 1  ;;  %2531 = vmatpush.bf16.msra.mxu2 %v5585_v41 }
 0x10f   :  { %v803_v18 = vld [vmem:[#allocation2 + $0x70] sm:$0xf]  ;;  %722 = vst [vmem:[#allocation2 + $0x78] sm:$0xf] %v721_v4  ;;  %v382_v44 = vpop.f32.mrf.mxu1  ;;  %v945_v39 = vunpack.c.l.b16 %v6205_v14  ;;  %v6217_v4 = vunpack.c.l.b16 %v802_v48 }
 0x110   :  { %v6209_v49 = vld [vmem:[#allocation2 + $0x74] sm:$0x1]  ;;  %v6212_v1 = vunpack.c.l.b16 %v803_v18  ;;  %725 = vst [vmem:[#allocation2 + $0x7c] sm:$0x1] %v724_v40  ;;  %v586_v3 = vshrl.u32 %v478_v12, 16  ;;  %v383_v43 = vadd.f32 %v382_v44, %v237_v11  ;;  %v1052_v29 = vor.u32 %v1051_v26, %v1047_v17  ;;  %v5584_v26 = vld [vmem:[%s7938_s5 + $0x8] sm:$0xff] }
 0x111   :  { %8104 = vst [vmem:[#allocation22_spill] sm:$0xff] %v6209_v49  ;;  %v7977_v5 = vunpack.c.l.b16 %v6209_v49  ;;  %v6215_v16 = vld [vmem:[#allocation2 + $0x74] sm:$0x1]  ;;  %v589_v33 = vshll.u32 %v478_v12, 16  ;;  %v726_v11 = vld [vmem:[#allocation2 + $0x80] sm:$0xf] }
 0x112   :  { %v7979_v51 = vunpack.c.l.b16 %v6215_v16  ;;  %v588_v15 = vrot.slane %v586_v3, 7  ;;  %v405_v18 = vadd.f32 %v5891_v42, %v383_v43  ;;  %v729_v44 = vld [vmem:[#allocation2 + $0x84] sm:$0x1]  ;;  %1103 = vrot.lane.b32.xlu2 %v1052_v29, %s5687_s0  ;;  %2532 = vmatpush.bf16.msra.mxu2 %v5584_v26 }
 0x113   :  { %v965_v40 = vpack.c.b16 %v7977_v5, %v945_v39 }
 0x114   :  { %v6231_v41 = vpack.c.b16 %v7979_v51, %v6212_v1  ;;  %v591_v48 = vor.u32 %v589_v33, %v588_v15  ;;  %v592_v12 = vrot.slane %v588_v15, 4  ;;  %v421_v17 = vmax.f32 %v405_v18, 0.0 }
 0x115   :  { %v1054_v3 = vshrl.u32 %v965_v40, 16  ;;  %v1056_v43 = vshll.u32 %v965_v40, 16  ;;  %v8106_v51 = vunpack.c.l.b16 %v6207_v50 }
 0x116   :  { %8105 = vst [vmem:[#allocation23_spill] sm:$0xff] %v6231_v41  ;;  %v727_v39 = vsel %vm5919_vm4, %v591_v48, %v726_v11  ;;  %v730_v29 = vsel %vm5927_vm5, %v592_v12, %v729_v44  ;;  %v479_v5 = vpack.c.bf16 %v421_v17, %v421_v17  ;;  %v6237_v2 = vld [vmem:[#allocation2 + $0x78] sm:$0xf]  ;;  %v239_v15 = vpop.f32.mrf.mxu0  ;;  %v5583_v44 = vld [vmem:[%s7938_s5] sm:$0xff] }
 0x117   :  { %v804_v49 = vld [vmem:[#allocation2 + $0x78] sm:$0xf]  ;;  %v6242_v41 = vpack.c.b16 %v8106_v51, %v6217_v4  ;;  %728 = vst [vmem:[#allocation2 + $0x80] sm:$0xf] %v727_v39  ;;  %v384_v33 = vpop.f32.mrf.mxu1  ;;  %v1058_v18 = vrot.slane %v1056_v43, 1  ;;  %v947_v11 = vunpack.c.l.b16 %v6237_v2  ;;  %2533 = vmatpush.bf16.msra.mxu2 %v5583_v44 }
 0x118   :  { %v6244_v40 = vld [vmem:[#allocation2 + $0x7c] sm:$0x1]  ;;  %731 = vst [vmem:[#allocation2 + $0x84] sm:$0x1] %v730_v29  ;;  %v594_v26 = vshrl.u32 %v479_v5, 16  ;;  %v385_v48 = vadd.f32 %v384_v33, %v239_v15  ;;  %v6254_v43 = vunpack.c.l.b16 %v804_v49  ;;  %v597_v63 = vshll.u32 %v479_v5, 16 }
 0x119   :  { %8107 = vst [vmem:[#allocation24_spill] sm:$0xff] %v6242_v41  ;;  %v7985_v12 = vunpack.c.l.b16 %v6244_v40  ;;  %v5618_v51 = vld [vmem:[%s7938_s5 + $0x118] sm:$0xff]  ;;  %v1059_v17 = vor.u32 %v1058_v18, %v1054_v3  ;;  %v732_v15 = vld [vmem:[#allocation2 + $0x88] sm:$0xf]  ;;  %v735_v33 = vld [vmem:[#allocation2 + $0x8c] sm:$0x1] }
 0x11a   :  { %8108 = vst [vmem:[#allocation25_spill] sm:$0xff] %v6244_v40  ;;  %v6256_v39 = vld [vmem:[#allocation2 + $0x7c] sm:$0x1]  ;;  %v596_v41 = vrot.slane %v594_v26, 7  ;;  %v406_v45 = vadd.f32 %v5891_v42, %v385_v48  ;;  %v741_v40 = vld [vmem:[#allocation2 + $0x94] sm:$0x1] }
 0x11b   :  { %v966_v29 = vpack.c.b16 %v7985_v12, %v947_v11  ;;  %2726 = vmatpush.bf16.msrb.mxu2 %v5618_v51  ;;  %1105 = vrot.lane.b32.xlu0 %v1059_v17, %s5687_s0  ;;  %v5606_v3 = vld [vmem:[%s7938_s5 + $0xb8] sm:$0xff]  ;;  %v7986_v49 = vunpack.c.l.b16 %v6256_v39 }
 0x11c   :  { %v599_v18 = vor.u32 %v597_v63, %v596_v41  ;;  %v600_v44 = vrot.slane %v596_v41, 4  ;;  %v422_v26 = vmax.f32 %v406_v45, 0.0  ;;  %2624 = vmatpush.bf16.msrb.mxu0 %v5606_v3 }
 0x11d   :  { %v1061_v5 = vshrl.u32 %v966_v29, 16  ;;  %v1063_v47 = vshll.u32 %v966_v29, 16  ;;  %v6275_v12 = vpack.c.b16 %v7986_v49, %v6254_v43  ;;  %v5614_v29 = vld [vmem:[%s7938_s5 + $0xf8] sm:$0xff] }
 0x11e   :  { %v733_v42 = vsel %vm5919_vm4, %v599_v18, %v732_v15  ;;  %v736_v11 = vsel %vm5927_vm5, %v600_v44, %v735_v33  ;;  %v480_v48 = vpack.c.bf16 %v422_v26, %v422_v26  ;;  %v6270_v51 = vld [vmem:[#allocation2 + $0x80] sm:$0xf]  ;;  %2673 = vmatpush.bf16.msrb.mxu1 %v5614_v29 }
 0x11f   :  { %v805_v17 = vld [vmem:[#allocation2 + $0x80] sm:$0xf]  ;;  %8109 = vst [vmem:[#allocation26_spill] sm:$0xff] %v6275_v12  ;;  %v1065_v63 = vrot.slane %v1063_v47, 1  ;;  %v6277_v45 = vld [vmem:[#allocation2 + $0x84] sm:$0x1]  ;;  %v949_v41 = vunpack.c.l.b16 %v6270_v51  ;;  %2727 = vmatpush.bf16.msrb.mxu2 %v5617_v61 }
 0x120   :  { %734 = vst [vmem:[#allocation2 + $0x88] sm:$0xf] %v733_v42  ;;  %v602_v15 = vshrl.u32 %v480_v48, 16  ;;  %v7991_v33 = vunpack.c.l.b16 %v6277_v45  ;;  %v6284_v18 = vunpack.c.l.b16 %v805_v17  ;;  %v6286_v44 = vld [vmem:[#allocation2 + $0x84] sm:$0x1]  ;;  %v605_v47 = vshll.u32 %v480_v48, 16 }
 0x121   :  { %8110 = vst [vmem:[#allocation27_spill] sm:$0xff] %v6277_v45  ;;  %v1066_v3 = vor.u32 %v1065_v63, %v1061_v5  ;;  %v7993_v49 = vunpack.c.l.b16 %v6286_v44  ;;  %v738_v12 = vld [vmem:[#allocation2 + $0x90] sm:$0xf]  ;;  %v6294_v17 = vld [vmem:[#allocation2 + $0x14] sm:$0x1] }
 0x122   :  { %737 = vst [vmem:[#allocation2 + $0x8c] sm:$0x1] %v736_v11  ;;  %v604_v26 = vrot.slane %v602_v15, 7  ;;  %v967_v42 = vpack.c.b16 %v7991_v33, %v949_v41  ;;  %v6292_v5 = vld [vmem:[#allocation2 + $0x10] sm:$0xf] }
 0x123   :  { %1107 = vrot.lane.b32.xlu1 %v1066_v3, %s5687_s0  ;;  %8111 = vst [vmem:[#allocation28_spill] sm:$0xff] %v6292_v5  ;;  %v6299_v48 = vpack.c.b16 %v7993_v49, %v6284_v18  ;;  %v825_v3 = vld [vmem:[#allocation2 + $0x10] sm:$0xe]  ;;  %v1545_v55 = vunpack.c.l.b16 %v6292_v5 }
 0x124   :  { %v607_v11 = vor.u32 %v605_v47, %v604_v26  ;;  %v608_v24 = vrot.slane %v604_v26, 4  ;;  %v1070_v52 = vshll.u32 %v967_v42, 16  ;;  %8112 = vst [vmem:[#allocation29_spill] sm:$0xff] %v6294_v17  ;;  %v1068_v29 = vshrl.u32 %v967_v42, 16  ;;  %v1082_v42 = vpop.permute.xlu0 %1081 }
 0x125   :  { %8113 = vst [vmem:[#allocation30_spill] sm:$0xff] %v6299_v48 }
 0x126   :  { %v739_v63 = vsel %vm5919_vm4, %v607_v11, %v738_v12  ;;  %v742_v41 = vsel %vm5927_vm5, %v608_v24, %v741_v40  ;;  %v1072_v15 = vrot.slane %v1070_v52, 1  ;;  %v8002_v12 = vunpack.c.l.b16 %v6294_v17  ;;  %v5605_v11 = vld [vmem:[%s7938_s5 + $0xb0] sm:$0xff] }
 0x127   :  { %v6305_v26 = vld [vmem:[#allocation2 + $0x88] sm:$0xf]  ;;  %740 = vst [vmem:[#allocation2 + $0x90] sm:$0xf] %v739_v63  ;;  %v1209_v24 = vpack.c.b16 %v5948_v23, %v5948_v23  ;;  %v1434_v52 = vunpack.c.l.b16 %v825_v3  ;;  %v5613_v63 = vld [vmem:[%s7938_s5 + $0xf0] sm:$0xff]  ;;  %2625 = vmatpush.bf16.msrb.mxu0 %v5605_v11 }
 0x128   :  { %v951_v33 = vunpack.c.l.b16 %v6305_v26  ;;  %743 = vst [vmem:[#allocation2 + $0x94] sm:$0x1] %v742_v41  ;;  %v1073_v45 = vor.u32 %v1072_v15, %v1068_v29  ;;  %v1577_v23 = vpack.c.b16 %v8002_v12, %v1545_v55  ;;  %v824_v29 = vld [vmem:[#allocation2 + $0x8] sm:$0xe]  ;;  %v6331_v3 = vld [vmem:[#allocation2 + $0x1c] sm:$0x1]  ;;  %2674 = vmatpush.bf16.msrb.mxu1 %v5613_v63 }
 0x129   :  { %v6307_v47 = vld [vmem:[#allocation2 + $0x8c] sm:$0x1]  ;;  %v8004_v12 = vunpack.c.l.b16 %v6331_v3 }
 0x12a   :  { %8114 = vst [vmem:[#allocation31_spill] sm:$0xff] %v6307_v47  ;;  %v7996_v49 = vunpack.c.l.b16 %v6307_v47  ;;  %1109 = vrot.lane.b32.xlu2 %v1073_v45, %s5687_s0  ;;  %v8115_v45 = vunpack.c.l.b16 %v5971_v62  ;;  %v1433_v47 = vunpack.c.l.b16 %v824_v29  ;;  %v1596_v5 = vshll.u32 %v1577_v23, 16 }
 0x12b   :  { %1225 = vrot.lane.b32.xlu1 %v1209_v24, %s5687_s0 }
 0x12c   :  { %v968_v40 = vpack.c.b16 %v7996_v49, %v951_v33  ;;  %v1450_v15 = vpack.c.b16 %v8115_v45, %v1434_v52  ;;  %v6329_v33 = vld [vmem:[#allocation2 + $0x18] sm:$0xf]  ;;  %v8117_v52 = vunpack.c.l.b16 %v5951_v27  ;;  %v1598_v63 = vrot.slane %v1596_v5, 1  ;;  %v5661_v45 = vld [vmem:[#allocation2 + $0x8] sm:$0xf] }
 0x12d   :  { %8116 = vst [vmem:[#allocation32_spill] sm:$0xff] %v6329_v33  ;;  %v1547_v55 = vunpack.c.l.b16 %v6329_v33 }
 0x12e   :  { %v1077_v41 = vshll.u32 %v968_v40, 16  ;;  %v1075_v24 = vshrl.u32 %v968_v40, 16  ;;  %v1466_v62 = vrot.slane %v1450_v15, 1  ;;  %v1449_v40 = vpack.c.b16 %v8117_v52, %v1433_v47  ;;  %v827_v15 = vld [vmem:[#allocation2 + $0x20] sm:$0xe] }
 0x12f   :  { %v1594_v47 = vshrl.u32 %v1577_v23, 16  ;;  %v1436_v17 = vunpack.c.l.b16 %v827_v15  ;;  %v5604_v23 = vld [vmem:[%s7938_s5 + $0xa8] sm:$0xff] }
 0x130   :  { %v1079_v49 = vrot.slane %v1077_v41, 1  ;;  %v1578_v41 = vpack.c.b16 %v8004_v12, %v1547_v55  ;;  %v1465_v52 = vrot.slane %v1449_v40, 1  ;;  %2626 = vmatpush.bf16.msrb.mxu0 %v5604_v23  ;;  %v5612_v15 = vld [vmem:[%s7938_s5 + $0xe8] sm:$0xff] }
 0x131   :  { %v1599_v33 = vor.u32 %v1598_v63, %v1594_v47  ;;  %2675 = vmatpush.bf16.msrb.mxu1 %v5612_v15  ;;  %v829_v15 = vld [vmem:[#allocation2 + $0x30] sm:$0xe] }
 0x132   :  { %v1080_v48 = vor.u32 %v1079_v49, %v1075_v24  ;;  %1227 = vrot.lane.b32.xlu2 %v1210_v58, %s5687_s0  ;;  %v5660_v49 = vld [vmem:[#allocation2] sm:$0xf] }
 0x133   :  { %1483 = vrot.lane.b32.xlu1 %v1466_v62, %s5687_s0  ;;  %v1804_v11 = vsel %vm1801_vm6, %v5660_v49, %v1082_v42  ;;  %v6348_v58 = vld [vmem:[#allocation2 + $0x20] sm:$0xf]  ;;  %v1603_v42 = vshll.u32 %v1578_v41, 16  ;;  %v1211_v49 = vpack.c.b16 %v5993_v30, %v5993_v30  ;;  %v8118_v30 = vunpack.c.l.b16 %v6016_v8 }
 0x134   :  { %1111 = vrot.lane.b32.xlu0 %v1080_v48, %s5687_s0  ;;  %v6350_v48 = vld [vmem:[#allocation2 + $0x24] sm:$0x1]  ;;  %v2058_v24 = vunpack.c.l.b16 %v1804_v11  ;;  %v1549_v5 = vunpack.c.l.b16 %v6348_v58  ;;  %v826_v11 = vld [vmem:[#allocation2 + $0x18] sm:$0xe] }
 0x135   :  { %v1084_v29 = vpop.permute.xlu0 %1083  ;;  %v8006_v55 = vunpack.c.l.b16 %v6350_v48  ;;  %v1605_v40 = vrot.slane %v1603_v42, 1  ;;  %v1435_v47 = vunpack.c.l.b16 %v826_v11  ;;  %v5662_v42 = vld [vmem:[#allocation2 + $0x10] sm:$0xf] }
 0x136   :  { %v1807_v27 = vsel %vm1801_vm6, %v5661_v45, %v1084_v29  ;;  %v1452_v29 = vpack.c.b16 %v8118_v30, %v1436_v17  ;;  %v6367_v45 = vld [vmem:[#allocation2 + $0x28] sm:$0xf]  ;;  %v6386_v30 = vld [vmem:[#allocation2 + $0x30] sm:$0xf] }
 0x137   :  { %v2063_v62 = vunpack.c.l.b16 %v1807_v27  ;;  %v1579_v61 = vpack.c.b16 %v8006_v55, %v1549_v5  ;;  %8119 = vst [vmem:[#allocation33_spill] sm:$0xff] %v6367_v45  ;;  %v1601_v27 = vshrl.u32 %v1578_v41, 16  ;;  %v1438_v55 = vunpack.c.l.b16 %v829_v15  ;;  %v6418_v15 = vld [vmem:[#allocation2 + $0x3c] sm:$0x1] }
 0x138   :  { %v1468_v17 = vrot.slane %v1452_v29, 1  ;;  %v6388_v29 = vld [vmem:[#allocation2 + $0x34] sm:$0x1] }
 0x139   :  { %v2214_v12 = vpack.c.b16 %v2063_v62, %v2058_v24  ;;  %v1606_v24 = vor.u32 %v1605_v40, %v1601_v27  ;;  %v1610_v62 = vshll.u32 %v1579_v61, 16  ;;  %v1090_v40 = vpop.permute.xlu2 %1089 }
 0x13a   :  { %1705 = vrot.lane.b32.xlu2 %v1599_v33, %s5687_s0  ;;  %v6369_v33 = vld [vmem:[#allocation2 + $0x2c] sm:$0x1] }
 0x13b   :  { %1229 = vrot.lane.b32.xlu1 %v1211_v49, %s5687_s0  ;;  %2534 = vmatmul.bf16.vlgmr.msra.gmra.mxu2 %v2214_v12  ;;  %v1212_v12 = vpack.c.b16 %v6014_v7, %v6014_v7  ;;  %v8007_v8 = vunpack.c.l.b16 %v6369_v33  ;;  %v8120_v7 = vunpack.c.l.b16 %v5995_v31  ;;  %v1612_v49 = vrot.slane %v1610_v62, 1 }
 0x13c   :  { %1481 = vrot.lane.b32.xlu0 %v1465_v52, %s5687_s0  ;;  %v1086_v63 = vpop.permute.xlu1 %1085  ;;  %v1551_v52 = vunpack.c.l.b16 %v6367_v45  ;;  %v1553_v62 = vunpack.c.l.b16 %v6386_v30  ;;  %v6396_v45 = vld [vmem:[#allocation2 + $0x94] sm:$0x1] }
 0x13d   :  { %v1451_v41 = vpack.c.b16 %v8120_v7, %v1435_v47  ;;  %v1810_v5 = vsel %vm1801_vm6, %v5662_v42, %v1086_v63  ;;  %v1213_v7 = vpack.c.b16 %v6038_v53, %v6038_v53  ;;  %v5603_v53 = vld [vmem:[%s7938_s5 + $0xa0] sm:$0xff] }
 0x13e   :  { %v1580_v23 = vpack.c.b16 %v8007_v8, %v1551_v52  ;;  %v2068_v31 = vunpack.c.l.b16 %v1810_v5  ;;  %v8009_v52 = vunpack.c.l.b16 %v6388_v29  ;;  %v807_v8 = vld [vmem:[#allocation2 + $0x90] sm:$0xf]  ;;  %2627 = vmatpush.bf16.msrb.mxu0 %v5603_v53 }
 0x140   :  { %v1617_v63 = vshll.u32 %v1580_v23, 16  ;;  %v1581_v5 = vpack.c.b16 %v8009_v52, %v1553_v62 }
 0x142   :  { %1231 = vrot.lane.b32.xlu2 %v1212_v12, %s5687_s0  ;;  %v1608_v12 = vshrl.u32 %v1579_v61, 16  ;;  %v8016_v61 = vunpack.c.l.b16 %v6396_v45 }
 0x143   :  { %1487 = vrot.lane.b32.xlu1 %v1468_v17, %s5687_s0 }
 0x144   :  { %1707 = vrot.lane.b32.xlu0 %v1606_v24, %s5687_s0  ;;  %v1467_v24 = vrot.slane %v1451_v41, 1  ;;  %v1613_v17 = vor.u32 %v1612_v49, %v1608_v12  ;;  %v1619_v41 = vrot.slane %v1617_v63, 1  ;;  %v828_v49 = vld [vmem:[#allocation2 + $0x28] sm:$0xe]  ;;  %v6416_v12 = vld [vmem:[#allocation2 + $0x38] sm:$0xf] }
 0x145   :  { %v1088_v11 = vpop.permute.xlu1 %1087  ;;  %v5611_v63 = vld [vmem:[%s7938_s5 + $0xe0] sm:$0xff] }
 0x146   :  { %v1813_v27 = vsel %vm1801_vm6, %v5987_v13, %v1088_v11  ;;  %v6400_v13 = vunpack.c.l.b16 %v807_v8  ;;  %v8121_v8 = vunpack.c.l.b16 %v6066_v60  ;;  %v1555_v60 = vunpack.c.l.b16 %v6416_v12  ;;  %2676 = vmatpush.bf16.msrb.mxu1 %v5611_v63  ;;  %v6437_v63 = vld [vmem:[#allocation2 + $0x40] sm:$0xf] }
 0x147   :  { %v2073_v47 = vunpack.c.l.b16 %v1813_v27 }
 0x148   :  { %v6412_v11 = vpack.c.b16 %v8016_v61, %v6400_v13  ;;  %v1454_v27 = vpack.c.b16 %v8121_v8, %v1438_v55  ;;  %v8015_v55 = vunpack.c.l.b16 %v6418_v15 }
 0x149   :  { %v2219_v42 = vpack.c.b16 %v2073_v47, %v2068_v31  ;;  %v1615_v31 = vshrl.u32 %v1580_v23, 16  ;;  %v1092_v47 = vpop.permute.xlu2 %1091 }
 0x14a   :  { %1709 = vrot.lane.b32.xlu2 %v1613_v17, %s5687_s0  ;;  %v1437_v17 = vunpack.c.l.b16 %v828_v49  ;;  %v1819_v23 = vsel %vm1801_vm6, %v6032_v35, %v1092_v47  ;;  %v6439_v35 = vld [vmem:[#allocation2 + $0x44] sm:$0x1]  ;;  %v1622_v47 = vshrl.u32 %v1581_v5, 16 }
 0x14b   :  { %1233 = vrot.lane.b32.xlu1 %v1213_v7, %s5687_s0  ;;  %2539 = vmatmul.bf16.gmra.mxu2 %v2219_v42  ;;  %v1620_v62 = vor.u32 %v1619_v41, %v1615_v31  ;;  %v1624_v7 = vshll.u32 %v1581_v5, 16  ;;  %v1470_v42 = vrot.slane %v1454_v27, 1  ;;  %v5663_v41 = vld [vmem:[#allocation2 + $0x20] sm:$0xf]  ;;  %v1582_v27 = vpack.c.b16 %v8015_v55, %v1555_v60  ;;  %v6451_v5 = vld [vmem:[#allocation2 + $0x48] sm:$0xf] }
 0x14c   :  { %1485 = vrot.lane.b32.xlu0 %v1467_v24, %s5687_s0  ;;  %v1214_v24 = vpack.c.b16 %v6064_v59, %v6064_v59  ;;  %v8122_v59 = vunpack.c.l.b16 %v6040_v54  ;;  %v1816_v49 = vsel %vm1801_vm6, %v5663_v41, %v1090_v40  ;;  %v2083_v31 = vunpack.c.l.b16 %v1819_v23  ;;  %v5616_v54 = vld [vmem:[%s7938_s5 + $0x108] sm:$0xff] }
 0x14d   :  { %v1626_v8 = vrot.slane %v1624_v7, 1  ;;  %v1557_v40 = vunpack.c.l.b16 %v6437_v63  ;;  %v8014_v7 = vunpack.c.l.b16 %v6439_v35  ;;  %v1215_v60 = vpack.c.b16 %v6102_v22, %v6102_v22  ;;  %2728 = vmatpush.bf16.msrb.mxu2 %v5616_v54  ;;  %v5610_v54 = vld [vmem:[%s7938_s5 + $0xd8] sm:$0xff] }
 0x14e   :  { %v1453_v53 = vpack.c.b16 %v8122_v59, %v1437_v17  ;;  %2677 = vmatpush.bf16.msrb.mxu1 %v5610_v54  ;;  %v833_v54 = vld [vmem:[#allocation2 + $0x60] sm:$0xe] }
 0x14f   :  { %v1627_v17 = vor.u32 %v1626_v8, %v1622_v47  ;;  %v1583_v22 = vpack.c.b16 %v8014_v7, %v1557_v40  ;;  %v6460_v47 = vld [vmem:[#allocation2 + $0x4c] sm:$0x1] }
 0x150   :  { %v1469_v52 = vrot.slane %v1453_v53, 1  ;;  %v5602_v53 = vld [vmem:[%s7938_s5 + $0x98] sm:$0xff]  ;;  %v5608_v7 = vld [vmem:[%s7938_s5 + $0xc8] sm:$0xff] }
 0x151   :  { %2628 = vmatpush.bf16.msrb.mxu0 %v5602_v53 }
 0x152   :  { %1235 = vrot.lane.b32.xlu2 %v1214_v24, %s5687_s0  ;;  %v831_v24 = vld [vmem:[#allocation2 + $0x40] sm:$0xe] }
 0x153   :  { %1491 = vrot.lane.b32.xlu1 %v1470_v42, %s5687_s0  ;;  %v1631_v42 = vshll.u32 %v1582_v27, 16  ;;  %v1440_v59 = vunpack.c.l.b16 %v831_v24  ;;  %v1559_v24 = vunpack.c.l.b16 %v6451_v5 }
 0x154   :  { %1711 = vrot.lane.b32.xlu0 %v1620_v62, %s5687_s0  ;;  %v2078_v62 = vunpack.c.l.b16 %v1816_v49  ;;  %v8123_v49 = vunpack.c.l.b16 %v6106_v25  ;;  %v8010_v25 = vunpack.c.l.b16 %v6460_v47 }
 0x155   :  { %v1633_v41 = vrot.slane %v1631_v42, 1  ;;  %v1638_v42 = vshll.u32 %v1583_v22, 16 }
 0x156   :  { %v2224_v23 = vpack.c.b16 %v2083_v31, %v2078_v62  ;;  %v1456_v8 = vpack.c.b16 %v8123_v49, %v1440_v59  ;;  %v830_v31 = vld [vmem:[#allocation2 + $0x38] sm:$0xe]  ;;  %v1216_v62 = vpack.c.b16 %v6104_v38, %v6104_v38 }
 0x157   :  { %v1439_v40 = vunpack.c.l.b16 %v830_v31  ;;  %v5598_v38 = vld [vmem:[%s7938_s5 + $0x78] sm:$0xff]  ;;  %v1640_v53 = vrot.slane %v1638_v42, 1  ;;  %v6481_v31 = vld [vmem:[#allocation2 + $0x60] sm:$0xf] }
 0x158   :  { %2575 = vmatpush.bf16.msra.mxu3 %v5598_v38  ;;  %v1217_v38 = vpack.c.b16 %v6134_v10, %v6134_v10  ;;  %v5601_v10 = vld [vmem:[%s7938_s5 + $0x90] sm:$0xff] }
 0x159   :  { %2629 = vmatpush.bf16.msrb.mxu0 %v5601_v10 }
 0x15a   :  { %1713 = vrot.lane.b32.xlu2 %v1627_v17, %s5687_s0 }
 0x15b   :  { %1237 = vrot.lane.b32.xlu1 %v1215_v60, %s5687_s0  ;;  %2544 = vmatmul.bf16.gmra.mxu2 %v2224_v23  ;;  %v1472_v23 = vrot.slane %v1456_v8, 1 }
 0x15c   :  { %1489 = vrot.lane.b32.xlu0 %v1469_v52, %s5687_s0  ;;  %v1629_v52 = vshrl.u32 %v1582_v27, 16  ;;  %v1584_v27 = vpack.c.b16 %v8010_v25, %v1559_v24 }
 0x15d   :  { %v1094_v60 = vpop.permute.xlu0 %1093 }
 0x15e   :  { %v1634_v17 = vor.u32 %v1633_v41, %v1629_v52  ;;  %v1822_v59 = vsel %vm1801_vm6, %v6056_v20, %v1094_v60  ;;  %v8124_v41 = vunpack.c.l.b16 %v6100_v57  ;;  %v6483_v52 = vld [vmem:[#allocation2 + $0x64] sm:$0x1]  ;;  %v5597_v20 = vld [vmem:[%s7938_s5 + $0x70] sm:$0xff] }
 0x15f   :  { %v2088_v42 = vunpack.c.l.b16 %v1822_v59  ;;  %2576 = vmatpush.bf16.msra.mxu3 %v5597_v20  ;;  %v5596_v59 = vld [vmem:[%s7938_s5 + $0x68] sm:$0xff]  ;;  %v5609_v20 = vld [vmem:[%s7938_s5 + $0xd0] sm:$0xff] }
 0x160   :  { %v1455_v49 = vpack.c.b16 %v8124_v41, %v1439_v40  ;;  %v8012_v41 = vunpack.c.l.b16 %v6483_v52  ;;  %2678 = vmatpush.bf16.msrb.mxu1 %v5609_v20 }
 0x162   :  { %1239 = vrot.lane.b32.xlu2 %v1216_v62, %s5687_s0  ;;  %v1636_v62 = vshrl.u32 %v1583_v22, 16  ;;  %v1471_v40 = vrot.slane %v1455_v49, 1  ;;  %v1643_v22 = vshrl.u32 %v1584_v27, 16  ;;  %v832_v49 = vld [vmem:[#allocation2 + $0x58] sm:$0xe] }
 0x163   :  { %1495 = vrot.lane.b32.xlu1 %v1472_v23, %s5687_s0  ;;  %v1561_v23 = vunpack.c.l.b16 %v6481_v31  ;;  %2577 = vmatpush.bf16.msra.mxu3 %v5596_v59  ;;  %v8126_v59 = vunpack.c.l.b16 %v6132_v32 }
 0x164   :  { %1715 = vrot.lane.b32.xlu0 %v1634_v17, %s5687_s0  ;;  %v1096_v8 = vpop.permute.xlu1 %1095  ;;  %v1645_v17 = vshll.u32 %v1584_v27, 16  ;;  %v1641_v57 = vor.u32 %v1640_v53, %v1636_v62  ;;  %v6507_v27 = vld [vmem:[#allocation2 + $0x68] sm:$0xf]  ;;  %2679 = vmatpush.bf16.msrb.mxu1 %v5608_v7 }
 0x165   :  { %v1825_v24 = vsel %vm1801_vm6, %v6085_v46, %v1096_v8  ;;  %v1442_v46 = vunpack.c.l.b16 %v833_v54  ;;  %v1585_v53 = vpack.c.b16 %v8012_v41, %v1561_v23  ;;  %v6509_v54 = vld [vmem:[#allocation2 + $0x6c] sm:$0x1]  ;;  %v1098_v23 = vpop.permute.xlu2 %1097 }
 0x166   :  { %v2093_v60 = vunpack.c.l.b16 %v1825_v24  ;;  %v1647_v8 = vrot.slane %v1645_v17, 1  ;;  %v8125_v24 = vunpack.c.l.b16 %v6163_v56  ;;  %v1441_v17 = vunpack.c.l.b16 %v832_v49 }
 0x167   :  { %v1218_v56 = vpack.c.b16 %v6161_v0, %v6161_v0  ;;  %v5594_v0 = vld [vmem:[%s7938_s5 + $0x58] sm:$0xff] }
 0x168   :  { %v2229_v25 = vpack.c.b16 %v2093_v60, %v2088_v42  ;;  %v1458_v62 = vpack.c.b16 %v8125_v24, %v1442_v46  ;;  %v5595_v42 = vld [vmem:[%s7938_s5 + $0x60] sm:$0xff]  ;;  %v1652_v60 = vshll.u32 %v1585_v53, 16  ;;  %v5664_v46 = vld [vmem:[#allocation2 + $0x50] sm:$0xf]  ;;  %v1457_v10 = vpack.c.b16 %v8126_v59, %v1441_v17 }
 0x169   :  { %2578 = vmatpush.bf16.msra.mxu3 %v5595_v42  ;;  %v6532_v24 = vld [vmem:[#allocation2 + $0x70] sm:$0xf] }
 0x16a   :  { %1717 = vrot.lane.b32.xlu2 %v1641_v57, %s5687_s0  ;;  %v1563_v57 = vunpack.c.l.b16 %v6507_v27  ;;  %v5593_v17 = vld [vmem:[%s7938_s5 + $0x50] sm:$0xff] }
 0x16b   :  { %1241 = vrot.lane.b32.xlu1 %v1217_v38, %s5687_s0  ;;  %2549 = vmatmul.bf16.gmra.mxu2 %v2229_v25  ;;  %v1648_v25 = vor.u32 %v1647_v8, %v1643_v22  ;;  %v1474_v38 = vrot.slane %v1458_v62, 1  ;;  %v1828_v22 = vsel %vm1801_vm6, %v5664_v46, %v1098_v23  ;;  %v1654_v8 = vrot.slane %v1652_v60, 1  ;;  %v6534_v62 = vld [vmem:[#allocation2 + $0x74] sm:$0x1]  ;;  %v835_v23 = vld [vmem:[#allocation2 + $0x70] sm:$0xe] }
 0x16c   :  { %1493 = vrot.lane.b32.xlu0 %v1471_v40, %s5687_s0  ;;  %v8013_v40 = vunpack.c.l.b16 %v6509_v54  ;;  %v2098_v20 = vunpack.c.l.b16 %v1828_v22  ;;  %v1565_v60 = vunpack.c.l.b16 %v6532_v24  ;;  %v8011_v32 = vunpack.c.l.b16 %v6534_v62 }
 0x16d   :  { %2579 = vmatpush.bf16.msra.mxu3 %v5594_v0  ;;  %v1473_v22 = vrot.slane %v1457_v10, 1  ;;  %v1444_v59 = vunpack.c.l.b16 %v835_v23  ;;  %v834_v10 = vld [vmem:[#allocation2 + $0x68] sm:$0xe]  ;;  %v6561_v23 = vld [vmem:[#allocation2 + $0x78] sm:$0xf] }
 0x16e   :  { %v1586_v49 = vpack.c.b16 %v8013_v40, %v1563_v57  ;;  %v5615_v57 = vld [vmem:[%s7938_s5 + $0x100] sm:$0xff]  ;;  %v1443_v40 = vunpack.c.l.b16 %v834_v10 }
 0x16f   :  { %2729 = vmatpush.bf16.msrb.mxu2 %v5615_v57 }
 0x170   :  { %v1659_v0 = vshll.u32 %v1586_v49, 16 }
 0x171   :  { %2580 = vmatpush.bf16.msra.mxu3 %v5593_v17  ;;  %v8127_v17 = vunpack.c.l.b16 %v6215_v16  ;;  %v5591_v16 = vld [vmem:[%s7938_s5 + $0x40] sm:$0xff] }
 0x172   :  { %1243 = vrot.lane.b32.xlu2 %v1218_v56, %s5687_s0  ;;  %v1650_v56 = vshrl.u32 %v1585_v53, 16 }
 0x173   :  { %1499 = vrot.lane.b32.xlu1 %v1474_v38, %s5687_s0  ;;  %v1460_v57 = vpack.c.b16 %v8127_v17, %v1444_v59 }
 0x174   :  { %1719 = vrot.lane.b32.xlu0 %v1648_v25, %s5687_s0  ;;  %v1100_v42 = vpop.permute.xlu0 %1099  ;;  %v1655_v46 = vor.u32 %v1654_v8, %v1650_v56  ;;  %v1587_v8 = vpack.c.b16 %v8011_v32, %v1565_v60  ;;  %v1661_v56 = vrot.slane %v1659_v0, 1 }
 0x175   :  { %v1831_v25 = vsel %vm1801_vm6, %v6121_v6, %v1100_v42  ;;  %v1219_v6 = vpack.c.b16 %v6217_v4, %v6217_v4  ;;  %v6550_v42 = vld [vmem:[#allocation2 + $0x94] sm:$0x1]  ;;  %v5592_v4 = vld [vmem:[%s7938_s5 + $0x48] sm:$0xff]  ;;  %v1476_v61 = vrot.slane %v1460_v57, 1  ;;  %v8129_v57 = vunpack.c.l.b16 %v6207_v50  ;;  %v837_v50 = vld [vmem:[#allocation2 + $0x80] sm:$0xe] }
 0x176   :  { %v2103_v38 = vunpack.c.l.b16 %v1831_v25  ;;  %v1104_v25 = vpop.permute.xlu2 %1103  ;;  %2581 = vmatpush.bf16.msra.mxu3 %v5592_v4  ;;  %v8019_v60 = vunpack.c.l.b16 %v6550_v42  ;;  %v1666_v0 = vshll.u32 %v1587_v8, 16 }
 0x177   :  { %v1459_v7 = vpack.c.b16 %v8129_v57, %v1443_v40  ;;  %v1446_v57 = vunpack.c.l.b16 %v837_v50  ;;  %v836_v50 = vld [vmem:[#allocation2 + $0x78] sm:$0xe] }
 0x178   :  { %v2234_v53 = vpack.c.b16 %v2103_v38, %v2098_v20  ;;  %v5600_v20 = vld [vmem:[%s7938_s5 + $0x88] sm:$0xff]  ;;  %v6563_v38 = vld [vmem:[#allocation2 + $0x7c] sm:$0x1] }
 0x179   :  { %2630 = vmatpush.bf16.msrb.mxu0 %v5600_v20  ;;  %v1220_v20 = vpack.c.b16 %v6212_v1, %v6212_v1  ;;  %v8018_v55 = vunpack.c.l.b16 %v6563_v38 }
 0x17a   :  { %1721 = vrot.lane.b32.xlu2 %v1655_v46, %s5687_s0  ;;  %v6568_v46 = vld [vmem:[#allocation2 + $0x9c] sm:$0x1]  ;;  %2582 = vmatpush.bf16.msra.mxu3 %v5591_v16 }
 0x17b   :  { %1245 = vrot.lane.b32.xlu1 %v1219_v6, %s5687_s0  ;;  %2554 = vmatmul.bf16.gmra.mxu2 %v2234_v53  ;;  %v888_v6 = vld [vmem:[#allocation2 + $0x98] sm:$0xe]  ;;  %v1657_v53 = vshrl.u32 %v1586_v49, 16  ;;  %v1567_v49 = vunpack.c.l.b16 %v6561_v23  ;;  %v8128_v1 = vunpack.c.l.b16 %v6568_v46 }
 0x17c   :  { %1497 = vrot.lane.b32.xlu0 %v1473_v22, %s5687_s0  ;;  %v887_v22 = vld [vmem:[#allocation2 + $0x90] sm:$0xe]  ;;  %v1768_v4 = vunpack.c.l.b16 %v888_v6 }
 0x17d   :  { %v1102_v41 = vpop.permute.xlu1 %1101  ;;  %v1767_v59 = vunpack.c.l.b16 %v887_v22  ;;  %v1662_v17 = vor.u32 %v1661_v56, %v1657_v53  ;;  %v1668_v22 = vrot.slane %v1666_v0, 1  ;;  %v1837_v53 = vsel %vm1801_vm6, %v6182_v28, %v1104_v25 }
 0x17e   :  { %v1834_v32 = vsel %vm1801_vm6, %v6152_v36, %v1102_v41  ;;  %v1784_v56 = vpack.c.b16 %v8128_v1, %v1768_v4  ;;  %v1588_v36 = vpack.c.b16 %v8018_v55, %v1567_v49  ;;  %v6600_v4 = vld [vmem:[#allocation2 + $0x84] sm:$0x1]  ;;  %v2113_v0 = vunpack.c.l.b16 %v1837_v53 }
 0x17f   :  { %v1783_v10 = vpack.c.b16 %v8019_v60, %v1767_v59  ;;  %v2108_v59 = vunpack.c.l.b16 %v1834_v32  ;;  %v1475_v28 = vrot.slane %v1459_v7, 1  ;;  %v8017_v49 = vunpack.c.l.b16 %v6600_v4 }
 0x180   :  { %v1800_v41 = vrot.slane %v1784_v56, 1  ;;  %v1673_v25 = vshll.u32 %v1588_v36, 16 }
 0x181   :  { %v1799_v6 = vrot.slane %v1783_v10, 1  ;;  %v2239_v56 = vpack.c.b16 %v2113_v0, %v2108_v59  ;;  %v8132_v59 = vunpack.c.l.b16 %v6286_v44  ;;  %v1671_v0 = vshrl.u32 %v1588_v36, 16 }
 0x182   :  { %1247 = vrot.lane.b32.xlu2 %v1220_v20, %s5687_s0  ;;  %v1664_v20 = vshrl.u32 %v1587_v8, 16  ;;  %v6604_v40 = vunpack.c.l.b16 %v1800_v41  ;;  %v1221_v8 = vpack.c.b16 %v6254_v43, %v6254_v43  ;;  %v6620_v41 = vld [vmem:[#allocation2 + $0x88] sm:$0xf]  ;;  %v6622_v43 = vld [vmem:[#allocation2 + $0x8c] sm:$0x1]  ;;  %v1445_v44 = vunpack.c.l.b16 %v836_v50 }
 0x183   :  { %1503 = vrot.lane.b32.xlu1 %v1476_v61, %s5687_s0  ;;  %v6602_v61 = vunpack.c.l.b16 %v1799_v6  ;;  %v1675_v6 = vrot.slane %v1673_v25, 1  ;;  %v5607_v25 = vld [vmem:[%s7938_s5 + $0xc0] sm:$0xff] }
 0x184   :  { %1723 = vrot.lane.b32.xlu0 %v1662_v17, %s5687_s0  ;;  %v6594_v16 = vpop.permute.xlu2 %1109  ;;  %v6598_v17 = vld [vmem:[#allocation2 + $0x80] sm:$0xf]  ;;  %8131 = vst [vmem:[#allocation35_spill] sm:$0xff] %v6604_v40  ;;  %v1669_v10 = vor.u32 %v1668_v22, %v1664_v20  ;;  %v1462_v20 = vpack.c.b16 %v8132_v59, %v1446_v57  ;;  %2680 = vmatpush.bf16.msrb.mxu1 %v5607_v25 }
 0x185   :  { %8130 = vst [vmem:[#allocation34_spill] sm:$0xff] %v6602_v61  ;;  %v1569_v1 = vunpack.c.l.b16 %v6598_v17  ;;  %v5599_v22 = vld [vmem:[%s7938_s5 + $0x80] sm:$0xff]  ;;  %v1676_v32 = vor.u32 %v1675_v6, %v1671_v0 }
 0x186   :  { %2631 = vmatpush.bf16.msrb.mxu0 %v5599_v22  ;;  %v1478_v59 = vrot.slane %v1462_v20, 1  ;;  %v806_v22 = vld [vmem:[#allocation2 + $0x88] sm:$0xf]  ;;  %v8133_v20 = vunpack.c.l.b16 %v6256_v39 }
 0x187   :  { %v1589_v53 = vpack.c.b16 %v8017_v49, %v1569_v1  ;;  %v1222_v1 = vpack.c.b16 %v6284_v18, %v6284_v18  ;;  %v6644_v25 = vunpack.c.l.b16 %v806_v22 }
 0x188   :  { %v1461_v0 = vpack.c.b16 %v8133_v20, %v1445_v44 }
 0x189   :  { %v1680_v49 = vshll.u32 %v1589_v53, 16  ;;  %v1223_v40 = vpack.c.b16 %v6644_v25, %v6644_v25 }
 0x18a   :  { %1725 = vrot.lane.b32.xlu2 %v1669_v10, %s5687_s0  ;;  %v777_v10 = vld [vmem:[#allocation2 + $0x8] sm:$0xe]  ;;  %v1477_v20 = vrot.slane %v1461_v0, 1  ;;  %v8137_v0 = vunpack.c.l.b16 %v6396_v45 }
 0x18b   :  { %1249 = vrot.lane.b32.xlu1 %v1221_v8, %s5687_s0  ;;  %2559 = vmatmul.bf16.gmra.mxu2 %v2239_v56  ;;  %v1571_v8 = vunpack.c.l.b16 %v6620_v41  ;;  %v8020_v56 = vunpack.c.l.b16 %v6622_v43  ;;  %v1130_v36 = vunpack.c.l.b16 %v777_v10  ;;  %v1682_v50 = vrot.slane %v1680_v49, 1 }
 0x18c   :  { %1501 = vrot.lane.b32.xlu0 %v1475_v28, %s5687_s0  ;;  %v1228_v7 = vpop.permute.xlu2 %1227  ;;  %v776_v28 = vld [vmem:[#allocation2] sm:$0xe] }
 0x18d   :  { %v1106_v57 = vpop.permute.xlu0 %1105  ;;  %v1129_v55 = vunpack.c.l.b16 %v776_v28  ;;  %v1590_v60 = vpack.c.b16 %v8020_v56, %v1571_v8  ;;  %v8134_v28 = vunpack.c.l.b16 %v5946_v21  ;;  %v839_v56 = vld [vmem:[#allocation2 + $0x90] sm:$0xe] }
 0x18e   :  { %v1840_v18 = vsel %vm1801_vm6, %v6205_v14, %v1106_v57  ;;  %v8135_v14 = vunpack.c.l.b16 %v5854_v34 }
 0x18f   :  { %v2118_v49 = vunpack.c.l.b16 %v1840_v18  ;;  %v1687_v39 = vshll.u32 %v1590_v60, 16 }
 0x190   :  { %v1145_v57 = vpack.c.b16 %v8135_v14, %v1129_v55  ;;  %v6660_v55 = vld [vmem:[#allocation2 + $0x98] sm:$0xf] }
 0x192   :  { %1251 = vrot.lane.b32.xlu2 %v1222_v1, %s5687_s0  ;;  %v1146_v1 = vpack.c.b16 %v8134_v28, %v1130_v36  ;;  %v1448_v36 = vunpack.c.l.b16 %v839_v56  ;;  %v1161_v34 = vrot.slane %v1145_v57, 1  ;;  %v1575_v57 = vunpack.c.l.b16 %v6660_v55 }
 0x193   :  { %1507 = vrot.lane.b32.xlu1 %v1478_v59, %s5687_s0  ;;  %v1678_v59 = vshrl.u32 %v1589_v53, 16 }
 0x194   :  { %1727 = vrot.lane.b32.xlu0 %v1676_v32, %s5687_s0  ;;  %v6640_v6 = vpop.permute.xlu2 %1705  ;;  %v6646_v32 = vld [vmem:[#allocation2 + $0x90] sm:$0xf]  ;;  %v1162_v28 = vrot.slane %v1146_v1, 1  ;;  %v1685_v1 = vshrl.u32 %v1590_v60, 16 }
 0x195   :  { %v1108_v10 = vpop.permute.xlu1 %1107  ;;  %v1683_v44 = vor.u32 %v1682_v50, %v1678_v59  ;;  %v1573_v22 = vunpack.c.l.b16 %v6646_v32  ;;  %v8136_v50 = vunpack.c.l.b16 %v6550_v42  ;;  %v838_v59 = vld [vmem:[#allocation2 + $0x88] sm:$0xe]  ;;  %v1224_v42 = vpack.c.b16 %v6400_v13, %v6400_v13 }
 0x196   :  { %v1843_v8 = vsel %vm1801_vm6, %v6237_v2, %v1108_v10  ;;  %v1689_v2 = vrot.slane %v1687_v39, 1  ;;  %v1855_v53 = vsel %vm1801_vm6, %v1162_v28, %v1228_v7  ;;  %v1464_v10 = vpack.c.b16 %v8137_v0, %v1448_v36  ;;  %v778_v28 = vld [vmem:[#allocation2 + $0x10] sm:$0xe] }
 0x197   :  { %v2123_v61 = vunpack.c.l.b16 %v1843_v8  ;;  %v6669_v8 = vld [vmem:[#allocation2 + $0x8c] sm:$0x1]  ;;  %v1447_v45 = vunpack.c.l.b16 %v838_v59  ;;  %v1315_v36 = vshll.u32 %v5981_v9, 16  ;;  %v1846_v13 = vsel %vm1801_vm6, %v6270_v51, %v6594_v16 }
 0x198   :  { %v1690_v39 = vor.u32 %v1689_v2, %v1685_v1  ;;  %v1480_v60 = vrot.slane %v1464_v10, 1  ;;  %v1131_v1 = vunpack.c.l.b16 %v778_v28  ;;  %v2128_v16 = vunpack.c.l.b16 %v1846_v13  ;;  %v8140_v28 = vld [vmem:[#allocation5_spill] sm:$0xff] }
 0x199   :  { %v2244_v21 = vpack.c.b16 %v2123_v61, %v2118_v49  ;;  %v1591_v61 = vpack.c.b16 %v8136_v50, %v1573_v22  ;;  %v2064_v49 = vunpack.c.l.b16 %v1855_v53  ;;  %v1308_v53 = vshll.u32 %v5960_v37, 16 }
 0x19a   :  { %1729 = vrot.lane.b32.xlu2 %v1683_v44, %s5687_s0 }
 0x19b   :  { %1253 = vrot.lane.b32.xlu1 %v1223_v40, %s5687_s0  ;;  %2564 = vmatmul.bf16.gmra.mxu2 %v2244_v21  ;;  %v779_v40 = vld [vmem:[#allocation2 + $0x18] sm:$0xe]  ;;  %v1694_v44 = vshll.u32 %v1591_v61, 16 }
 0x19c   :  { %1505 = vrot.lane.b32.xlu0 %v1477_v20, %s5687_s0  ;;  %v6663_v18 = vpop.permute.xlu2 %1231  ;;  %v8023_v20 = vunpack.c.l.b16 %v6669_v8  ;;  %v1132_v22 = vunpack.c.l.b16 %v779_v40  ;;  %v1317_v40 = vrot.slane %v1315_v36, 1 }
 0x19d   :  { %v1226_v56 = vpop.permute.xlu1 %1225  ;;  %v1696_v0 = vrot.slane %v1694_v44, 1  ;;  %v1310_v44 = vrot.slane %v1308_v53, 1 }
 0x19e   :  { %v1852_v14 = vsel %vm1801_vm6, %v1161_v34, %v1226_v56  ;;  %v8138_v34 = vunpack.c.l.b16 %v6568_v46  ;;  %v1463_v10 = vpack.c.b16 %v8023_v20, %v1447_v45  ;;  %v8139_v46 = vunpack.c.l.b16 %v5989_v19 }
 0x19f   :  { %v2059_v7 = vunpack.c.l.b16 %v1852_v14 }
 0x1a0   :  { %v1592_v2 = vpack.c.b16 %v8138_v34, %v1575_v57  ;;  %v1148_v59 = vpack.c.b16 %v8139_v46, %v1132_v22  ;;  %v8141_v34 = vunpack.c.l.b16 %v8140_v28  ;;  %v873_v22 = vld [vmem:[#allocation2 + $0x10] sm:$0xe]  ;;  %v1306_v46 = vshrl.u32 %v5960_v37, 16  ;;  %v8145_v28 = vld [vmem:[#allocation8_spill] sm:$0xff] }
 0x1a1   :  { %v2215_v21 = vpack.c.b16 %v2064_v49, %v2059_v7  ;;  %v1692_v49 = vshrl.u32 %v1591_v61, 16 }
 0x1a2   :  { %1255 = vrot.lane.b32.xlu2 %v1224_v42, %s5687_s0  ;;  %v1701_v7 = vshll.u32 %v1592_v2, 16  ;;  %v1313_v42 = vshrl.u32 %v5981_v9, 16  ;;  %v1147_v19 = vpack.c.b16 %v8141_v34, %v1131_v1  ;;  %v1699_v61 = vshrl.u32 %v1592_v2, 16 }
 0x1a3   :  { %1511 = vrot.lane.b32.xlu1 %v1480_v60, %s5687_s0  ;;  %2583 = vmatmul.bf16.vlgmr.msra.gmra.mxu3 %v2215_v21  ;;  %v1697_v60 = vor.u32 %v1696_v0, %v1692_v49  ;;  %v1479_v21 = vrot.slane %v1463_v10, 1  ;;  %v1311_v53 = vor.u32 %v1310_v44, %v1306_v46  ;;  %v8143_v44 = vld [vmem:[#allocation29_spill] sm:$0xff]  ;;  %v1329_v34 = vshll.u32 %v8145_v28, 16 }
 0x1a4   :  { %1731 = vrot.lane.b32.xlu0 %v1690_v39, %s5687_s0  ;;  %v6686_v50 = vpop.permute.xlu2 %1709  ;;  %v874_v39 = vld [vmem:[#allocation2 + $0x18] sm:$0xe]  ;;  %v1318_v36 = vor.u32 %v1317_v40, %v1313_v42  ;;  %v1703_v13 = vrot.slane %v1701_v7, 1  ;;  %v1163_v1 = vrot.slane %v1147_v19, 1 }
 0x1a5   :  { %v1484_v14 = vpop.permute.xlu1 %1483  ;;  %v1754_v20 = vunpack.c.l.b16 %v874_v39  ;;  %v781_v39 = vld [vmem:[#allocation2 + $0x28] sm:$0xe] }
 0x1a6   :  { %v1112_v56 = vpop.permute.xlu0 %1111  ;;  %v1903_v9 = vsel %vm1801_vm6, %v1318_v36, %v1484_v14  ;;  %v1704_v14 = vor.u32 %v1703_v13, %v1699_v61  ;;  %v1134_v36 = vunpack.c.l.b16 %v781_v39 }
 0x1a7   :  { %v1849_v51 = vsel %vm1801_vm6, %v6305_v26, %v1112_v56  ;;  %v1164_v26 = vrot.slane %v1148_v59, 1  ;;  %v1753_v56 = vunpack.c.l.b16 %v873_v22  ;;  %v780_v22 = vld [vmem:[#allocation2 + $0x20] sm:$0xe] }
 0x1a8   :  { %v2133_v57 = vunpack.c.l.b16 %v1849_v51  ;;  %v8142_v51 = vunpack.c.l.b16 %v6331_v3  ;;  %v8146_v3 = vld [vmem:[#allocation28_spill] sm:$0xff] }
 0x1a9   :  { %v1861_v0 = vsel %vm1801_vm6, %v1164_v26, %v6663_v18  ;;  %v8147_v26 = vld [vmem:[#allocation6_spill] sm:$0xff] }
 0x1aa   :  { %v2249_v45 = vpack.c.b16 %v2133_v57, %v2128_v16  ;;  %1733 = vrot.lane.b32.xlu2 %v1697_v60, %s5687_s0  ;;  %v1770_v16 = vpack.c.b16 %v8142_v51, %v1754_v20  ;;  %v2065_v57 = vunpack.c.l.b16 %v1903_v9  ;;  %v2074_v7 = vunpack.c.l.b16 %v1861_v0  ;;  %v8149_v51 = vld [vmem:[#allocation9_spill] sm:$0xff] }
 0x1ab   :  { %v8144_v60 = vunpack.c.l.b16 %v8143_v44  ;;  %v1948_v20 = vsel %vm1801_vm6, %v8146_v3, %v6640_v6  ;;  %v1322_v61 = vshll.u32 %v8147_v26, 16  ;;  %v876_v6 = vld [vmem:[#allocation2 + $0x28] sm:$0xe] }
 0x1ac   :  { %1509 = vrot.lane.b32.xlu0 %v1479_v21, %s5687_s0  ;;  %2569 = vmatmul.bf16.gmra.mxu2 %v2249_v45  ;;  %v1236_v10 = vpop.permute.xlu2 %1235  ;;  %v1786_v19 = vrot.slane %v1770_v16, 1  ;;  %v8150_v16 = vunpack.c.l.b16 %v8149_v51 }
 0x1ad   :  { %v1230_v37 = vpop.permute.xlu1 %1229  ;;  %v1769_v18 = vpack.c.b16 %v8144_v60, %v1753_v56  ;;  %v1331_v56 = vrot.slane %v1329_v34, 1  ;;  %v1320_v34 = vshrl.u32 %v8147_v26, 16 }
 0x1ae   :  { %v1482_v40 = vpop.permute.xlu0 %1481  ;;  %v1858_v2 = vsel %vm1801_vm6, %v1163_v1, %v1230_v37  ;;  %v8148_v1 = vld [vmem:[#allocation32_spill] sm:$0xff]  ;;  %v2067_v37 = vunpack.c.l.b16 %v1786_v19  ;;  %v1756_v19 = vunpack.c.l.b16 %v876_v6 }
 0x1af   :  { %v1900_v59 = vsel %vm1801_vm6, %v1311_v53, %v1482_v40  ;;  %v2069_v42 = vunpack.c.l.b16 %v1858_v2  ;;  %v1785_v46 = vrot.slane %v1769_v18, 1  ;;  %v1133_v53 = vunpack.c.l.b16 %v780_v22  ;;  %v875_v18 = vld [vmem:[#allocation2 + $0x20] sm:$0xe] }
 0x1b0   :  { %v2060_v49 = vunpack.c.l.b16 %v1900_v59  ;;  %v2061_v59 = vunpack.c.l.b16 %v1948_v20 }
 0x1b1   :  { %v2220_v45 = vpack.c.b16 %v2074_v7, %v2069_v42  ;;  %v1324_v7 = vrot.slane %v1322_v61, 1  ;;  %v8151_v42 = vld [vmem:[#allocation7_spill] sm:$0xff] }
 0x1b2   :  { %v2216_v21 = vpack.c.b16 %v2065_v57, %v2060_v49  ;;  %v1150_v57 = vpack.c.b16 %v8150_v16, %v1134_v36  ;;  %v1327_v49 = vshrl.u32 %v8145_v28, 16  ;;  %v8152_v44 = vunpack.c.l.b16 %v8151_v42  ;;  %v783_v16 = vld [vmem:[#allocation2 + $0x38] sm:$0xe]  ;;  %v782_v42 = vld [vmem:[#allocation2 + $0x30] sm:$0xe] }
 0x1b3   :  { %2588 = vmatmul.bf16.gmra.mxu3 %v2220_v45  ;;  %v1325_v3 = vor.u32 %v1324_v7, %v1320_v34  ;;  %v1755_v28 = vunpack.c.l.b16 %v875_v18  ;;  %v8156_v18 = vld [vmem:[#allocation10_spill] sm:$0xff]  ;;  %v1135_v34 = vunpack.c.l.b16 %v782_v42 }
 0x1b4   :  { %1735 = vrot.lane.b32.xlu0 %v1704_v14, %s5687_s0  ;;  %2632 = vmatmul.bf16.vlgmr.msrb.gmra.mxu0 %v2216_v21  ;;  %v6715_v13 = vpop.permute.xlu2 %1713  ;;  %v2062_v14 = vunpack.c.l.b16 %v1785_v46  ;;  %v1149_v60 = vpack.c.b16 %v8152_v44, %v1133_v53  ;;  %v1332_v21 = vor.u32 %v1331_v56, %v1327_v49  ;;  %v1166_v22 = vrot.slane %v1150_v57, 1 }
 0x1b5   :  { %v1488_v0 = vpop.permute.xlu1 %1487  ;;  %v1954_v44 = vsel %vm1801_vm6, %v6348_v58, %v6686_v50  ;;  %v878_v50 = vld [vmem:[#allocation2 + $0x38] sm:$0xe] }
 0x1b6   :  { %v1708_v9 = vpop.permute.xlu0 %1707  ;;  %v2218_v45 = vpack.c.b16 %v2067_v37, %v2062_v14  ;;  %v1909_v36 = vsel %vm1801_vm6, %v1332_v21, %v1488_v0  ;;  %v1867_v20 = vsel %vm1801_vm6, %v1166_v22, %v1236_v10  ;;  %v1165_v61 = vrot.slane %v1149_v60, 1  ;;  %v8155_v14 = vld [vmem:[#allocation13_spill] sm:$0xff] }
 0x1b7   :  { %v1951_v40 = vsel %vm1801_vm6, %v8148_v1, %v1708_v9  ;;  %v8153_v1 = vunpack.c.l.b16 %v6369_v33  ;;  %v2084_v51 = vunpack.c.l.b16 %v1867_v20  ;;  %v8154_v10 = vunpack.c.l.b16 %v6350_v48 }
 0x1b8   :  { %v2066_v2 = vunpack.c.l.b16 %v1951_v40  ;;  %v2075_v40 = vunpack.c.l.b16 %v1909_v36  ;;  %v1343_v7 = vshll.u32 %v8155_v14, 16  ;;  %v1136_v33 = vunpack.c.l.b16 %v783_v16  ;;  %v8157_v36 = vld [vmem:[#allocation33_spill] sm:$0xff] }
 0x1b9   :  { %v1772_v26 = vpack.c.b16 %v8153_v1, %v1756_v19  ;;  %v1336_v21 = vshll.u32 %v8156_v18, 16  ;;  %v2071_v20 = vunpack.c.l.b16 %v1954_v44  ;;  %v1341_v1 = vshrl.u32 %v8155_v14, 16 }
 0x1ba   :  { %v2217_v39 = vpack.c.b16 %v2066_v2, %v2061_v59  ;;  %v1771_v2 = vpack.c.b16 %v8154_v10, %v1755_v28  ;;  %v1345_v19 = vrot.slane %v1343_v7, 1 }
 0x1bc   :  { %2681 = vmatmul.bf16.vlgmr.msrb.gmra.mxu1 %v2217_v39  ;;  %5391 = vmatmul.msk.bf16.vlgmr.msrb.gmra.mxu2 %vm1801_vm6, %v2218_v45  ;;  %v1240_v46 = vpop.permute.xlu2 %1239  ;;  %v1788_v39 = vrot.slane %v1772_v26, 1  ;;  %v1787_v60 = vrot.slane %v1771_v2, 1  ;;  %v1346_v10 = vor.u32 %v1345_v19, %v1341_v1  ;;  %v8162_v19 = vunpack.c.l.b16 %v6418_v15 }
 0x1bd   :  { %v1234_v53 = vpop.permute.xlu1 %1233 }
 0x1be   :  { %v1486_v9 = vpop.permute.xlu0 %1485  ;;  %v1864_v37 = vsel %vm1801_vm6, %v1165_v61, %v1234_v53  ;;  %v6732_v0 = vpop.f32.mrf.mxu2  ;;  %v2077_v28 = vunpack.c.l.b16 %v1788_v39  ;;  %v8158_v61 = vld [vmem:[#allocation14_spill] sm:$0xff]  ;;  %v2072_v26 = vunpack.c.l.b16 %v1787_v60 }
 0x1bf   :  { %v1906_v56 = vsel %vm1801_vm6, %v1325_v3, %v1486_v9  ;;  %v2079_v57 = vunpack.c.l.b16 %v1864_v37  ;;  %v8159_v9 = vunpack.c.l.b16 %v8158_v61  ;;  %v785_v61 = vld [vmem:[#allocation2 + $0x58] sm:$0xe] }
 0x1c0   :  { %v2070_v59 = vunpack.c.l.b16 %v1906_v56  ;;  %v2223_v2 = vpack.c.b16 %v2077_v28, %v2072_v26  ;;  %v8164_v26 = vld [vmem:[#allocation15_spill] sm:$0xff]  ;;  %v1138_v15 = vunpack.c.l.b16 %v785_v61 }
 0x1c1   :  { %v2225_v49 = vpack.c.b16 %v2084_v51, %v2079_v57  ;;  %v1152_v53 = vpack.c.b16 %v8159_v9, %v1136_v33  ;;  %v877_v57 = vld [vmem:[#allocation2 + $0x30] sm:$0xe] }
 0x1c2   :  { %v2221_v6 = vpack.c.b16 %v2075_v40, %v2070_v59  ;;  %v1338_v40 = vrot.slane %v1336_v21, 1  ;;  %v8160_v59 = vld [vmem:[#allocation11_spill] sm:$0xff]  ;;  %v1757_v14 = vunpack.c.l.b16 %v877_v57  ;;  %v8165_v57 = vld [vmem:[#allocation16_spill] sm:$0xff] }
 0x1c3   :  { %2593 = vmatmul.bf16.gmra.mxu3 %v2225_v49  ;;  %v8161_v51 = vunpack.c.l.b16 %v8160_v59  ;;  %v1758_v49 = vunpack.c.l.b16 %v878_v50  ;;  %v1168_v7 = vrot.slane %v1152_v53, 1 }
 0x1c4   :  { %2637 = vmatmul.bf16.gmra.mxu0 %v2221_v6  ;;  %v6741_v45 = vpop.permute.xlu2 %1717  ;;  %v1334_v6 = vshrl.u32 %v8156_v18, 16 }
 0x1c5   :  { %v1492_v22 = vpop.permute.xlu1 %1491  ;;  %v1151_v16 = vpack.c.b16 %v8161_v51, %v1135_v34  ;;  %v1873_v33 = vsel %vm1801_vm6, %v1168_v7, %v1240_v46  ;;  %v1774_v18 = vpack.c.b16 %v8162_v19, %v1758_v49  ;;  %v8163_v46 = vunpack.c.l.b16 %v6388_v29  ;;  %v880_v19 = vld [vmem:[#allocation2 + $0x48] sm:$0xe] }
 0x1c6   :  { %v1712_v48 = vpop.permute.xlu0 %1711  ;;  %v6747_v58 = vpop.f32.mrf.mxu2  ;;  %v1915_v39 = vsel %vm1801_vm6, %v1346_v10, %v1492_v22  ;;  %v1339_v42 = vor.u32 %v1338_v40, %v1334_v6  ;;  %v1357_v40 = vshll.u32 %v8164_v26, 16  ;;  %v1960_v51 = vsel %vm1801_vm6, %v6386_v30, %v6715_v13 }
 0x1c7   :  { %v1957_v3 = vsel %vm1801_vm6, %v8157_v36, %v1712_v48  ;;  %v1167_v44 = vrot.slane %v1151_v16, 1  ;;  %v2085_v36 = vunpack.c.l.b16 %v1915_v39  ;;  %v1773_v53 = vpack.c.b16 %v8163_v46, %v1757_v14 }
 0x1c8   :  { %v2076_v56 = vunpack.c.l.b16 %v1957_v3  ;;  %v1350_v10 = vshll.u32 %v8165_v57, 16  ;;  %v1359_v29 = vrot.slane %v1357_v40, 1  ;;  %v2081_v39 = vunpack.c.l.b16 %v1960_v51 }
 0x1c9   :  { %v1789_v16 = vrot.slane %v1773_v53, 1  ;;  %v1760_v53 = vunpack.c.l.b16 %v880_v19  ;;  %v8170_v51 = vunpack.c.l.b16 %v6439_v35  ;;  %v8173_v19 = vld [vmem:[#allocation18_spill] sm:$0xff] }
 0x1ca   :  { %v2222_v37 = vpack.c.b16 %v2076_v56, %v2071_v20  ;;  %v2094_v20 = vunpack.c.l.b16 %v1873_v33  ;;  %v784_v56 = vld [vmem:[#allocation2 + $0x50] sm:$0xe] }
 0x1cb   :  { %v1137_v59 = vunpack.c.l.b16 %v784_v56 }
 0x1cc   :  { %2686 = vmatmul.bf16.gmra.mxu1 %v2222_v37  ;;  %5392 = vmatmul.msk.bf16.gmra.mxu2 %vm1801_vm6, %v2223_v2  ;;  %v1244_v21 = vpop.permute.xlu2 %1243  ;;  %v1790_v37 = vrot.slane %v1774_v18, 1 }
 0x1cd   :  { %v1238_v48 = vpop.permute.xlu1 %1237 }
 0x1ce   :  { %v1490_v60 = vpop.permute.xlu0 %1489  ;;  %v1870_v3 = vsel %vm1801_vm6, %v1167_v44, %v1238_v48  ;;  %v6760_v22 = vpop.f32.mrf.mxu2  ;;  %v2087_v7 = vunpack.c.l.b16 %v1790_v37  ;;  %v8168_v48 = vld [vmem:[#allocation12_spill] sm:$0xff] }
 0x1cf   :  { %v1912_v34 = vsel %vm1801_vm6, %v1339_v42, %v1490_v60  ;;  %v2089_v9 = vunpack.c.l.b16 %v1870_v3  ;;  %v8166_v42 = vld [vmem:[#allocation17_spill] sm:$0xff]  ;;  %v8169_v30 = vunpack.c.l.b16 %v8168_v48  ;;  %v2082_v3 = vunpack.c.l.b16 %v1789_v16 }
 0x1d0   :  { %v2080_v28 = vunpack.c.l.b16 %v1912_v34  ;;  %v8167_v14 = vunpack.c.l.b16 %v8166_v42  ;;  %v879_v34 = vld [vmem:[#allocation2 + $0x40] sm:$0xe] }
 0x1d1   :  { %v2230_v1 = vpack.c.b16 %v2094_v20, %v2089_v9  ;;  %v1153_v13 = vpack.c.b16 %v8169_v30, %v1137_v59  ;;  %v1348_v20 = vshrl.u32 %v8165_v57, 16  ;;  %v2228_v9 = vpack.c.b16 %v2087_v7, %v2082_v3 }
 0x1d2   :  { %v2226_v50 = vpack.c.b16 %v2085_v36, %v2080_v28  ;;  %v1154_v33 = vpack.c.b16 %v8167_v14, %v1138_v15  ;;  %v1355_v36 = vshrl.u32 %v8164_v26, 16  ;;  %v1352_v28 = vrot.slane %v1350_v10, 1 }
 0x1d3   :  { %2598 = vmatmul.bf16.gmra.mxu3 %v2230_v1  ;;  %v1759_v46 = vunpack.c.l.b16 %v879_v34  ;;  %v8171_v57 = vunpack.c.l.b16 %v6460_v47  ;;  %v1966_v47 = vsel %vm1801_vm6, %v6437_v63, %v6741_v45  ;;  %v882_v63 = vld [vmem:[#allocation2 + $0x68] sm:$0xe] }
 0x1d4   :  { %2642 = vmatmul.bf16.gmra.mxu0 %v2226_v50  ;;  %v6777_v18 = vpop.permute.xlu2 %1721  ;;  %v1360_v61 = vor.u32 %v1359_v29, %v1355_v36  ;;  %v1170_v56 = vrot.slane %v1154_v33, 1  ;;  %v1169_v50 = vrot.slane %v1153_v13, 1  ;;  %v1353_v40 = vor.u32 %v1352_v28, %v1348_v20  ;;  %v786_v13 = vld [vmem:[#allocation2 + $0x60] sm:$0xe] }
 0x1d5   :  { %v1496_v6 = vpop.permute.xlu1 %1495  ;;  %v1775_v16 = vpack.c.b16 %v8170_v51, %v1759_v46  ;;  %v1776_v10 = vpack.c.b16 %v8171_v57, %v1760_v53  ;;  %v1364_v36 = vshll.u32 %v8173_v19, 16  ;;  %v1139_v28 = vunpack.c.l.b16 %v786_v13  ;;  %v881_v57 = vld [vmem:[#allocation2 + $0x60] sm:$0xe] }
 0x1d6   :  { %v1716_v2 = vpop.permute.xlu0 %1715  ;;  %v6773_v60 = vpop.f32.mrf.mxu2  ;;  %v1921_v1 = vsel %vm1801_vm6, %v1360_v61, %v1496_v6  ;;  %v1879_v37 = vsel %vm1801_vm6, %v1170_v56, %v1244_v21  ;;  %v2091_v53 = vunpack.c.l.b16 %v1966_v47  ;;  %v8174_v56 = vld [vmem:[#allocation21_spill] sm:$0xff]  ;;  %v8178_v13 = vunpack.c.l.b16 %v6509_v54 }
 0x1d7   :  { %v1963_v49 = vsel %vm1801_vm6, %v6416_v12, %v1716_v2  ;;  %v2095_v2 = vunpack.c.l.b16 %v1921_v1  ;;  %v2104_v7 = vunpack.c.l.b16 %v1879_v37  ;;  %v1791_v30 = vrot.slane %v1775_v16, 1 }
 0x1d8   :  { %v2086_v44 = vunpack.c.l.b16 %v1963_v49  ;;  %v1792_v35 = vrot.slane %v1776_v10, 1 }
 0x1da   :  { %v2227_v12 = vpack.c.b16 %v2086_v44, %v2081_v39  ;;  %v787_v39 = vld [vmem:[#allocation2 + $0x68] sm:$0xe]  ;;  %v2097_v46 = vunpack.c.l.b16 %v1792_v35 }
 0x1db   :  { %v8172_v44 = vld [vmem:[#allocation20_spill] sm:$0xff]  ;;  %v1140_v34 = vunpack.c.l.b16 %v787_v39 }
 0x1dc   :  { %2691 = vmatmul.bf16.gmra.mxu1 %v2227_v12  ;;  %5393 = vmatmul.msk.bf16.gmra.mxu2 %vm1801_vm6, %v2228_v9  ;;  %v1248_v14 = vpop.permute.xlu2 %1247  ;;  %v1371_v48 = vshll.u32 %v8172_v44, 16  ;;  %v2092_v9 = vunpack.c.l.b16 %v1791_v30  ;;  %v1369_v45 = vshrl.u32 %v8172_v44, 16 }
 0x1dd   :  { %v1242_v15 = vpop.permute.xlu1 %1241 }
 0x1de   :  { %v1494_v26 = vpop.permute.xlu0 %1493  ;;  %v1876_v29 = vsel %vm1801_vm6, %v1169_v50, %v1242_v15  ;;  %v6790_v6 = vpop.f32.mrf.mxu2  ;;  %v1373_v12 = vrot.slane %v1371_v48, 1  ;;  %v8175_v50 = vunpack.c.l.b16 %v8174_v56 }
 0x1df   :  { %v1918_v59 = vsel %vm1801_vm6, %v1353_v40, %v1494_v26  ;;  %v2099_v42 = vunpack.c.l.b16 %v1876_v29  ;;  %v1366_v26 = vrot.slane %v1364_v36, 1  ;;  %v1762_v29 = vunpack.c.l.b16 %v882_v63 }
 0x1e0   :  { %v2090_v49 = vunpack.c.l.b16 %v1918_v59  ;;  %v1156_v1 = vpack.c.b16 %v8175_v50, %v1140_v34  ;;  %v8176_v59 = vld [vmem:[#allocation19_spill] sm:$0xff]  ;;  %v1374_v10 = vor.u32 %v1373_v12, %v1369_v45  ;;  %v789_v12 = vld [vmem:[#allocation2 + $0x78] sm:$0xe]  ;;  %v8181_v45 = vld [vmem:[#allocation24_spill] sm:$0xff] }
 0x1e1   :  { %v2235_v33 = vpack.c.b16 %v2104_v7, %v2099_v42  ;;  %v8177_v51 = vunpack.c.l.b16 %v8176_v59  ;;  %v1778_v34 = vpack.c.b16 %v8178_v13, %v1762_v29  ;;  %v1142_v54 = vunpack.c.l.b16 %v789_v12  ;;  %v883_v13 = vld [vmem:[#allocation2 + $0x70] sm:$0xe] }
 0x1e2   :  { %v2231_v21 = vpack.c.b16 %v2095_v2, %v2090_v49  ;;  %v1362_v2 = vshrl.u32 %v8173_v19, 16  ;;  %v1172_v49 = vrot.slane %v1156_v1, 1  ;;  %v788_v1 = vld [vmem:[#allocation2 + $0x70] sm:$0xe] }
 0x1e3   :  { %2603 = vmatmul.bf16.gmra.mxu3 %v2235_v33  ;;  %v1155_v16 = vpack.c.b16 %v8177_v51, %v1139_v28  ;;  %v1794_v50 = vrot.slane %v1778_v34, 1  ;;  %v1141_v59 = vunpack.c.l.b16 %v788_v1 }
 0x1e4   :  { %2647 = vmatmul.bf16.gmra.mxu0 %v2231_v21  ;;  %v6807_v7 = vpop.permute.xlu2 %1725  ;;  %v1367_v42 = vor.u32 %v1366_v26, %v1362_v2  ;;  %v1761_v21 = vunpack.c.l.b16 %v881_v57  ;;  %v1885_v33 = vsel %vm1801_vm6, %v1172_v49, %v1248_v14  ;;  %v1378_v26 = vshll.u32 %v8181_v45, 16  ;;  %v8182_v2 = vld [vmem:[#allocation25_spill] sm:$0xff] }
 0x1e5   :  { %v1500_v20 = vpop.permute.xlu1 %1499  ;;  %v1171_v44 = vrot.slane %v1155_v16, 1  ;;  %v2114_v28 = vunpack.c.l.b16 %v1885_v33  ;;  %v8183_v29 = vunpack.c.l.b16 %v8182_v2  ;;  %v790_v2 = vld [vmem:[#allocation2 + $0x80] sm:$0xe] }
 0x1e6   :  { %v1720_v3 = vpop.permute.xlu0 %1719  ;;  %v6801_v37 = vpop.f32.mrf.mxu2  ;;  %v1927_v39 = vsel %vm1801_vm6, %v1374_v10, %v1500_v20  ;;  %v2107_v10 = vunpack.c.l.b16 %v1794_v50  ;;  %v1380_v33 = vrot.slane %v1378_v26, 1 }
 0x1e7   :  { %v1969_v61 = vsel %vm1801_vm6, %v6451_v5, %v1720_v3  ;;  %v2233_v5 = vpack.c.b16 %v2097_v46, %v2092_v9  ;;  %v2105_v47 = vunpack.c.l.b16 %v1927_v39  ;;  %v1158_v49 = vpack.c.b16 %v8183_v29, %v1142_v54 }
 0x1e8   :  { %v2096_v40 = vunpack.c.l.b16 %v1969_v61  ;;  %v8179_v61 = vunpack.c.l.b16 %v6483_v52 }
 0x1ea   :  { %v2232_v15 = vpack.c.b16 %v2096_v40, %v2091_v53  ;;  %v1777_v14 = vpack.c.b16 %v8179_v61, %v1761_v21  ;;  %v8180_v53 = vld [vmem:[#allocation23_spill] sm:$0xff]  ;;  %v1972_v40 = vsel %vm1801_vm6, %v6481_v31, %v6777_v18  ;;  %v884_v31 = vld [vmem:[#allocation2 + $0x78] sm:$0xe] }
 0x1eb   :  { %v1385_v56 = vshll.u32 %v8180_v53, 16  ;;  %v1383_v18 = vshrl.u32 %v8180_v53, 16 }
 0x1ec   :  { %2696 = vmatmul.bf16.gmra.mxu1 %v2232_v15  ;;  %5394 = vmatmul.msk.bf16.gmra.mxu2 %vm1801_vm6, %v2233_v5  ;;  %v1793_v63 = vrot.slane %v1777_v14, 1  ;;  %v1252_v52 = vpop.permute.xlu2 %1251  ;;  %v2101_v5 = vunpack.c.l.b16 %v1972_v40 }
 0x1ed   :  { %v1246_v30 = vpop.permute.xlu1 %1245  ;;  %v1387_v51 = vrot.slane %v1385_v56, 1  ;;  %v8186_v56 = vunpack.c.l.b16 %v6563_v38 }
 0x1ee   :  { %v1498_v48 = vpop.permute.xlu0 %1497  ;;  %v1882_v19 = vsel %vm1801_vm6, %v1171_v44, %v1246_v30  ;;  %v6816_v3 = vpop.f32.mrf.mxu2  ;;  %v2102_v21 = vunpack.c.l.b16 %v1793_v63 }
 0x1ef   :  { %v1924_v35 = vsel %vm1801_vm6, %v1367_v42, %v1498_v48  ;;  %v2109_v20 = vunpack.c.l.b16 %v1882_v19  ;;  %v8184_v48 = vld [vmem:[#allocation22_spill] sm:$0xff]  ;;  %v1388_v34 = vor.u32 %v1387_v51, %v1383_v18  ;;  %v1764_v19 = vunpack.c.l.b16 %v884_v31 }
 0x1f0   :  { %v2100_v36 = vunpack.c.l.b16 %v1924_v35  ;;  %v8185_v30 = vunpack.c.l.b16 %v8184_v48  ;;  %v8189_v31 = vld [vmem:[#allocation26_spill] sm:$0xff] }
 0x1f1   :  { %v2240_v46 = vpack.c.b16 %v2114_v28, %v2109_v20  ;;  %v1763_v20 = vunpack.c.l.b16 %v883_v13  ;;  %v1780_v50 = vpack.c.b16 %v8186_v56, %v1764_v19  ;;  %v1392_v18 = vshll.u32 %v8189_v31, 16  ;;  %v8190_v13 = vld [vmem:[#allocation31_spill] sm:$0xff] }
 0x1f2   :  { %v2236_v9 = vpack.c.b16 %v2105_v47, %v2100_v36  ;;  %v1157_v35 = vpack.c.b16 %v8185_v30, %v1141_v59  ;;  %v1376_v47 = vshrl.u32 %v8181_v45, 16  ;;  %v1174_v36 = vrot.slane %v1158_v49, 1 }
 0x1f3   :  { %2608 = vmatmul.bf16.gmra.mxu3 %v2240_v46  ;;  %v1796_v38 = vrot.slane %v1780_v50, 1  ;;  %v1978_v49 = vsel %vm1801_vm6, %v6532_v24, %v6807_v7  ;;  %v886_v24 = vld [vmem:[#allocation2 + $0x88] sm:$0xe]  ;;  %v1390_v56 = vshrl.u32 %v8189_v31, 16 }
 0x1f4   :  { %2652 = vmatmul.bf16.gmra.mxu0 %v2236_v9  ;;  %v1381_v12 = vor.u32 %v1380_v33, %v1376_v47  ;;  %v1891_v61 = vsel %vm1801_vm6, %v1174_v36, %v1252_v52  ;;  %v1173_v14 = vrot.slane %v1157_v35, 1  ;;  %v6844_v26 = vpop.permute.xlu2 %1729  ;;  %v8187_v52 = vunpack.c.l.b16 %v6534_v62 }
 0x1f5   :  { %v1504_v16 = vpop.permute.xlu1 %1503  ;;  %v2124_v45 = vunpack.c.l.b16 %v1891_v61  ;;  %v1143_v33 = vunpack.c.l.b16 %v790_v2  ;;  %v2117_v30 = vunpack.c.l.b16 %v1796_v38  ;;  %v2111_v35 = vunpack.c.l.b16 %v1978_v49 }
 0x1f6   :  { %v1724_v15 = vpop.permute.xlu0 %1723  ;;  %v6829_v42 = vpop.f32.mrf.mxu2  ;;  %v1933_v28 = vsel %vm1801_vm6, %v1388_v34, %v1504_v16  ;;  %v1779_v51 = vpack.c.b16 %v8187_v52, %v1763_v20  ;;  %v8191_v34 = vunpack.c.l.b16 %v8190_v13  ;;  %v8192_v20 = vld [vmem:[#allocation27_spill] sm:$0xff]  ;;  %v1766_v50 = vunpack.c.l.b16 %v886_v24 }
 0x1f7   :  { %v1975_v57 = vsel %vm1801_vm6, %v6507_v27, %v1724_v15  ;;  %v2238_v27 = vpack.c.b16 %v2107_v10, %v2102_v21  ;;  %v2115_v1 = vunpack.c.l.b16 %v1933_v28  ;;  %v791_v15 = vld [vmem:[#allocation2 + $0x88] sm:$0xe]  ;;  %v8188_v10 = vld [vmem:[#allocation30_spill] sm:$0xff]  ;;  %v1394_v28 = vrot.slane %v1392_v18, 1 }
 0x1f8   :  { %v2106_v39 = vunpack.c.l.b16 %v1975_v57  ;;  %v1144_v29 = vunpack.c.l.b16 %v791_v15  ;;  %v1397_v7 = vshrl.u32 %v8188_v10, 16  ;;  %v8193_v61 = vunpack.c.l.b16 %v8192_v20 }
 0x1f9   :  { %v8195_v49 = vunpack.c.l.b16 %v6669_v8 }
 0x1fa   :  { %v2237_v44 = vpack.c.b16 %v2106_v39, %v2101_v5  ;;  %v1399_v5 = vshll.u32 %v8188_v10, 16  ;;  %v1795_v39 = vrot.slane %v1779_v51, 1 }
 0x1fc   :  { %2701 = vmatmul.bf16.gmra.mxu1 %v2237_v44  ;;  %5395 = vmatmul.msk.bf16.gmra.mxu2 %vm1801_vm6, %v2238_v27  ;;  %v1401_v62 = vrot.slane %v1399_v5, 1  ;;  %v1160_v27 = vpack.c.b16 %v8191_v34, %v1144_v29  ;;  %v2112_v36 = vunpack.c.l.b16 %v1795_v39  ;;  %v1303_v39 = vpack.c.b16 %v8195_v49, %v6644_v25 }
 0x1fd   :  { %v1250_v46 = vpop.permute.xlu1 %1249 }
 0x1fe   :  { %v1502_v9 = vpop.permute.xlu0 %1501  ;;  %v1888_v54 = vsel %vm1801_vm6, %v1173_v14, %v1250_v46  ;;  %v6842_v63 = vpop.f32.mrf.mxu2  ;;  %v1159_v14 = vpack.c.b16 %v8193_v61, %v1143_v33  ;;  %v1406_v13 = vshll.u32 %v1303_v39, 16  ;;  %v1404_v61 = vshrl.u32 %v1303_v39, 16 }
 0x1ff   :  { %v1930_v53 = vsel %vm1801_vm6, %v1381_v12, %v1502_v9  ;;  %v2119_v59 = vunpack.c.l.b16 %v1888_v54  ;;  %v885_v9 = vld [vmem:[#allocation2 + $0x80] sm:$0xe]  ;;  %v1256_v46 = vpop.permute.xlu2 %1255 }
 0x200   :  { %v2110_v40 = vunpack.c.l.b16 %v1930_v53  ;;  %v2243_v53 = vpack.c.b16 %v2117_v30, %v2112_v36  ;;  %v1984_v30 = vsel %vm1801_vm6, %v6598_v17, %v6844_v26 }
 0x201   :  { %v2245_v57 = vpack.c.b16 %v2124_v45, %v2119_v59  ;;  %v1765_v45 = vunpack.c.l.b16 %v885_v9  ;;  %v1175_v59 = vrot.slane %v1159_v14, 1 }
 0x202   :  { %v2241_v16 = vpack.c.b16 %v2115_v1, %v2110_v40  ;;  %v1176_v1 = vrot.slane %v1160_v27, 1  ;;  %v1395_v40 = vor.u32 %v1394_v28, %v1390_v56  ;;  %v2121_v27 = vunpack.c.l.b16 %v1984_v30 }
 0x203   :  { %2613 = vmatmul.bf16.gmra.mxu3 %v2245_v57  ;;  %v8194_v57 = vunpack.c.l.b16 %v6622_v43  ;;  %v1413_v43 = vshll.u32 %v6412_v11, 16  ;;  %v1408_v28 = vrot.slane %v1406_v13, 1 }
 0x204   :  { %2657 = vmatmul.bf16.gmra.mxu0 %v2241_v16  ;;  %v1897_v15 = vsel %vm1801_vm6, %v1176_v1, %v1256_v46 }
 0x205   :  { %v1508_v44 = vpop.permute.xlu1 %1507  ;;  %v1782_v10 = vpack.c.b16 %v8194_v57, %v1766_v50  ;;  %v2134_v31 = vunpack.c.l.b16 %v1897_v15  ;;  %v1415_v25 = vrot.slane %v1413_v43, 1  ;;  %v8198_v57 = vld [vmem:[#allocation34_spill] sm:$0xff] }
 0x206   :  { %v1728_v21 = vpop.permute.xlu0 %1727  ;;  %v6857_v19 = vpop.f32.mrf.mxu2 }
 0x207   :  { %v1981_v48 = vsel %vm1801_vm6, %v6561_v23, %v1728_v21  ;;  %v1402_v23 = vor.u32 %v1401_v62, %v1397_v7  ;;  %v8196_v21 = vunpack.c.l.b16 %v6600_v4  ;;  %v1411_v7 = vshrl.u32 %v6412_v11, 16  ;;  %v1734_v11 = vpop.permute.xlu2 %1733 }
 0x208   :  { %v2116_v47 = vunpack.c.l.b16 %v1981_v48  ;;  %v1798_v48 = vrot.slane %v1782_v10, 1  ;;  %v1990_v1 = vsel %vm1801_vm6, %v6646_v32, %v1734_v11 }
 0x209   :  { %v1939_v54 = vsel %vm1801_vm6, %v1402_v23, %v1508_v44  ;;  %v1781_v33 = vpack.c.b16 %v8196_v21, %v1765_v45  ;;  %v1416_v17 = vor.u32 %v1415_v25, %v1411_v7  ;;  %v2131_v45 = vunpack.c.l.b16 %v1990_v1 }
 0x20a   :  { %v2242_v12 = vpack.c.b16 %v2116_v47, %v2111_v35  ;;  %v2125_v5 = vunpack.c.l.b16 %v1939_v54  ;;  %v2127_v4 = vunpack.c.l.b16 %v1798_v48 }
 0x20b   :  { %v1797_v35 = vrot.slane %v1781_v33, 1  ;;  %v6914_v33 = vld [vmem:[%s7939_s6] ss:$0 sm:$0xff] }
 0x20c   :  { %2706 = vmatmul.bf16.gmra.mxu1 %v2242_v12  ;;  %5396 = vmatmul.msk.bf16.gmra.mxu2 %vm1801_vm6, %v2243_v53  ;;  %v2536_v30 = vadd.f32 %v6914_v33, %v6732_v0 }
 0x20d   :  { %v1254_v51 = vpop.permute.xlu1 %1253  ;;  %v2122_v36 = vunpack.c.l.b16 %v1797_v35 }
 0x20e   :  { %v1506_v52 = vpop.permute.xlu0 %1505  ;;  %v1894_v38 = vsel %vm1801_vm6, %v1175_v59, %v1254_v51  ;;  %v6870_v29 = vpop.f32.mrf.mxu2 }
 0x20f   :  { %v1936_v16 = vsel %vm1801_vm6, %v1395_v40, %v1506_v52  ;;  %v2129_v18 = vunpack.c.l.b16 %v1894_v38  ;;  %v2248_v26 = vpack.c.b16 %v2127_v4, %v2122_v36  ;;  %v6903_v38 = vld [vmem:[#allocation2 + $0x4] sm:$0x1] }
 0x210   :  { %v2120_v2 = vunpack.c.l.b16 %v1936_v16  ;;  %v8197_v16 = vld [vmem:[#allocation35_spill] sm:$0xff]  ;;  %v8038_v49 = vunpack.c.l.b16 %v6903_v38 }
 0x211   :  { %v2250_v44 = vpack.c.b16 %v2134_v31, %v2129_v18  ;;  %v8199_v10 = vpack.c.b16 %v8197_v16, %v8198_v57  ;;  %v5649_v57 = vld [vmem:[%s7940_s7 + $0xf0] sm:$0xff] }
 0x212   :  { %v2246_v62 = vpack.c.b16 %v2125_v5, %v2120_v2  ;;  %v6901_v5 = vld [vmem:[#allocation2] sm:$0xf] }
 0x213   :  { %2618 = vmatmul.bf16.gmra.mxu3 %v2250_v44 }
 0x214   :  { %2662 = vmatmul.bf16.gmra.mxu0 %v2246_v62 }
 0x215   :  { %v1512_v12 = vpop.permute.xlu1 %1511 }
 0x216   :  { %v1732_v8 = vpop.permute.xlu0 %1731  ;;  %v6883_v24 = vpop.f32.mrf.mxu2  ;;  %v1945_v14 = vsel %vm1801_vm6, %v1416_v17, %v1512_v12 }
 0x217   :  { %v1987_v34 = vsel %vm1801_vm6, %v6620_v41, %v1732_v8  ;;  %v1409_v41 = vor.u32 %v1408_v28, %v1404_v61  ;;  %v2135_v23 = vunpack.c.l.b16 %v1945_v14  ;;  %v5626_v14 = vld [vmem:[%s7940_s7 + $0x38] sm:$0xff] }
 0x218   :  { %v2126_v47 = vunpack.c.l.b16 %v1987_v34  ;;  %4838 = vmatpush.bf16.msrb.mxu3 %v5626_v14  ;;  %v2546_v14 = vadd.f32 %v6914_v33, %v6790_v6 }
 0x21a   :  { %v2247_v20 = vpack.c.b16 %v2126_v47, %v2121_v27  ;;  %v2538_v47 = vadd.f32 %v6914_v33, %v6747_v58 }
 0x21c   :  { %2711 = vmatmul.bf16.gmra.mxu1 %v2247_v20  ;;  %5397 = vmatmul.msk.bf16.gmra.mxu2 %vm1801_vm6, %v2248_v26 }
 0x21e   :  { %v1510_v9 = vpop.permute.xlu0 %1509  ;;  %v6889_v56 = vpop.f32.mrf.mxu2 }
 0x21f   :  { %v1942_v46 = vsel %vm1801_vm6, %v1409_v41, %v1510_v9 }
 0x220   :  { %v2130_v53 = vunpack.c.l.b16 %v1942_v46  ;;  %v2541_v46 = vadd.f32 %v6914_v33, %v6760_v22 }
 0x222   :  { %v2251_v50 = vpack.c.b16 %v2135_v23, %v2130_v53 }
 0x224   :  { %2667 = vmatmul.bf16.gmra.mxu0 %v2251_v50 }
 0x226   :  { %v1736_v54 = vpop.permute.xlu0 %1735  ;;  %v6895_v59 = vpop.f32.mrf.mxu2 }
 0x227   :  { %v1993_v40 = vsel %vm1801_vm6, %v6660_v55, %v1736_v54  ;;  %v2584_v52 = vpop.f32.mrf.mxu3  ;;  %v3234_v55 = vunpack.c.l.b16 %v6901_v5 }
 0x228   :  { %v2136_v15 = vunpack.c.l.b16 %v1993_v40  ;;  %v2585_v8 = vadd.f32 %v2584_v52, %v2536_v30  ;;  %v5665_v52 = vld [vmem:[#allocation2 + $0x8] sm:$0xf] }
 0x229   :  { %v3266_v31 = vpack.c.b16 %v8038_v49, %v3234_v55 }
 0x22a   :  { %v2252_v51 = vpack.c.b16 %v2136_v15, %v2131_v45  ;;  %v2965_v15 = vld [vmem:[#allocation2 + $0xc] sm:$0x1] }
 0x22b   :  { %v3283_v18 = vshrl.u32 %v3266_v31, 16  ;;  %v3285_v21 = vshll.u32 %v3266_v31, 16 }
 0x22c   :  { %2716 = vmatmul.bf16.gmra.mxu1 %v2252_v51  ;;  %5398 = vmatmul.msk.bf16.gmra.mxu2 %vm1801_vm6, %v8199_v10 }
 0x22d   :  { %v3287_v62 = vrot.slane %v3285_v21, 1  ;;  %v2543_v21 = vadd.f32 %v6914_v33, %v6773_v60 }
 0x22f   :  { %v6905_v32 = vpop.f32.mrf.mxu2  ;;  %v2586_v2 = vpop.f32.mrf.mxu3  ;;  %v3288_v48 = vor.u32 %v3287_v62, %v3283_v18 }
 0x230   :  { %v2587_v12 = vadd.f32 %v2586_v2, %v2538_v47  ;;  %v2971_v47 = vld [vmem:[#allocation2 + $0x14] sm:$0x1] }
 0x231   :  { %v2633_v39 = vpop.f32.mrf.mxu0  ;;  %3394 = vrot.lane.b32.xlu1 %v3288_v48, %s5687_s0 }
 0x232   :  { %v2634_v25 = vadd.f32 %v2633_v39, %v2585_v8 }
 0x237   :  { %v6916_v44 = vpop.f32.mrf.mxu2  ;;  %v2589_v43 = vpop.f32.mrf.mxu3 }
 0x238   :  { %v2590_v1 = vadd.f32 %v2589_v43, %v2541_v46 }
 0x239   :  { %v2635_v35 = vpop.f32.mrf.mxu0  ;;  %v2682_v13 = vpop.f32.mrf.mxu1 }
 0x23a   :  { %v2683_v34 = vadd.f32 %v2682_v13, %v2634_v25  ;;  %v2636_v17 = vadd.f32 %v2635_v35, %v2587_v12 }
 0x23f   :  { %v2591_v4 = vpop.f32.mrf.mxu3  ;;  %v2731_v27 = vpop.f32.mrf.mxu2 }
 0x240   :  { %v2732_v7 = vadd.f32 %v2731_v27, %v2683_v34  ;;  %v2592_v13 = vadd.f32 %v2591_v4, %v2543_v21  ;;  %v2968_v27 = vld [vmem:[#allocation2 + $0x10] sm:$0xf] }
 0x241   :  { %v2638_v36 = vpop.f32.mrf.mxu0  ;;  %v2684_v28 = vpop.f32.mrf.mxu1 }
 0x242   :  { %v2771_v20 = vmax.f32 %v2732_v7, 0.0  ;;  %v2685_v61 = vadd.f32 %v2684_v28, %v2636_v17  ;;  %v2639_v2 = vadd.f32 %v2638_v36, %v2590_v1 }
 0x244   :  { %v2787_v26 = vpack.c.bf16 %v2771_v20, %v2771_v20 }
 0x246   :  { %v2804_v0 = vshrl.u32 %v2787_v26, 16  ;;  %v2807_v58 = vshll.u32 %v2787_v26, 16 }
 0x247   :  { %v2594_v41 = vpop.f32.mrf.mxu3  ;;  %v2733_v9 = vpop.f32.mrf.mxu2 }
 0x248   :  { %v2806_v23 = vrot.slane %v2804_v0, 7  ;;  %v2734_v53 = vadd.f32 %v2733_v9, %v2685_v61  ;;  %v5625_v61 = vld [vmem:[%s7940_s7 + $0x30] sm:$0xff] }
 0x249   :  { %v2640_v11 = vpop.f32.mrf.mxu0  ;;  %v2687_v50 = vpop.f32.mrf.mxu1  ;;  %4839 = vmatpush.bf16.msrb.mxu3 %v5625_v61  ;;  %v2983_v61 = vld [vmem:[#allocation2 + $0x24] sm:$0x1] }
 0x24a   :  { %v2809_v54 = vor.u32 %v2807_v58, %v2806_v23  ;;  %v2810_v40 = vrot.slane %v2806_v23, 4  ;;  %v2772_v45 = vmax.f32 %v2734_v53, 0.0  ;;  %v2688_v39 = vadd.f32 %v2687_v50, %v2639_v2 }
 0x24b   :  { %v2641_v28 = vadd.f32 %v2640_v11, %v2592_v13  ;;  %v2548_v13 = vadd.f32 %v6914_v33, %v6801_v37  ;;  %v2980_v37 = vld [vmem:[#allocation2 + $0x20] sm:$0xf] }
 0x24c   :  { %v2963_v16 = vsel %vm5919_vm4, %v2809_v54, %v5665_v52  ;;  %v2966_v10 = vsel %vm5927_vm5, %v2810_v40, %v2965_v15  ;;  %v2788_v22 = vpack.c.bf16 %v2772_v45, %v2772_v45  ;;  %v2595_v54 = vadd.f32 %v2594_v41, %v2546_v14  ;;  %v2974_v52 = vld [vmem:[#allocation2 + $0x18] sm:$0xf] }
 0x24d   :  { %2964 = vst [vmem:[#allocation2 + $0x8] sm:$0xf] %v2963_v16  ;;  %v2977_v16 = vld [vmem:[#allocation2 + $0x1c] sm:$0x1] }
 0x24e   :  { %2967 = vst [vmem:[#allocation2 + $0xc] sm:$0x1] %v2966_v10  ;;  %v2812_v55 = vshrl.u32 %v2788_v22, 16  ;;  %v2815_v43 = vshll.u32 %v2788_v22, 16 }
 0x24f   :  { %v6932_v31 = vpop.f32.mrf.mxu3  ;;  %v2736_v18 = vpop.f32.mrf.mxu2 }
 0x250   :  { %v2814_v62 = vrot.slane %v2812_v55, 7  ;;  %v2737_v48 = vadd.f32 %v2736_v18, %v2688_v39 }
 0x251   :  { %v2643_v30 = vpop.f32.mrf.mxu0  ;;  %v2689_v35 = vpop.f32.mrf.mxu1 }
 0x252   :  { %v2817_v8 = vor.u32 %v2815_v43, %v2814_v62  ;;  %v2818_v25 = vrot.slane %v2814_v62, 4  ;;  %v2773_v34 = vmax.f32 %v2737_v48, 0.0  ;;  %v2690_v26 = vadd.f32 %v2689_v35, %v2641_v28 }
 0x253   :  { %v2644_v22 = vadd.f32 %v2643_v30, %v2595_v54 }
 0x254   :  { %v2969_v7 = vsel %vm5919_vm4, %v2817_v8, %v2968_v27  ;;  %v2972_v36 = vsel %vm5927_vm5, %v2818_v25, %v2971_v47  ;;  %v2789_v12 = vpack.c.bf16 %v2773_v34, %v2773_v34  ;;  %v6940_v60 = vld [vmem:[#allocation2 + $0x8] sm:$0xf] }
 0x255   :  { %2970 = vst [vmem:[#allocation2 + $0x10] sm:$0xf] %v2969_v7  ;;  %v6942_v20 = vld [vmem:[#allocation2 + $0xc] sm:$0x1]  ;;  %v3236_v4 = vunpack.c.l.b16 %v6940_v60 }
 0x256   :  { %2973 = vst [vmem:[#allocation2 + $0x14] sm:$0x1] %v2972_v36  ;;  %v2820_v17 = vshrl.u32 %v2789_v12, 16  ;;  %v8039_v0 = vunpack.c.l.b16 %v6942_v20  ;;  %v2823_v58 = vshll.u32 %v2789_v12, 16  ;;  %v2597_v12 = vadd.f32 %v6932_v31, %v2548_v13 }
 0x257   :  { %v6951_v9 = vpop.f32.mrf.mxu3  ;;  %v2738_v46 = vpop.f32.mrf.mxu2 }
 0x258   :  { %v2822_v23 = vrot.slane %v2820_v17, 7  ;;  %v2739_v53 = vadd.f32 %v2738_v46, %v2690_v26  ;;  %v3267_v1 = vpack.c.b16 %v8039_v0, %v3236_v4 }
 0x259   :  { %v2645_v11 = vpop.f32.mrf.mxu0  ;;  %v2692_v50 = vpop.f32.mrf.mxu1 }
 0x25a   :  { %v2825_v40 = vor.u32 %v2823_v58, %v2822_v23  ;;  %v2826_v45 = vrot.slane %v2822_v23, 4  ;;  %v2774_v15 = vmax.f32 %v2739_v53, 0.0  ;;  %v3292_v10 = vshll.u32 %v3267_v1, 16 }
 0x25b   :  { %v3290_v18 = vshrl.u32 %v3267_v1, 16  ;;  %v2693_v48 = vadd.f32 %v2692_v50, %v2644_v22  ;;  %v2646_v58 = vadd.f32 %v2645_v11, %v2597_v12  ;;  %v2551_v11 = vadd.f32 %v6914_v33, %v6816_v3 }
 0x25c   :  { %v2975_v6 = vsel %vm5919_vm4, %v2825_v40, %v2974_v52  ;;  %v2978_v2 = vsel %vm5927_vm5, %v2826_v45, %v2977_v16  ;;  %v2790_v55 = vpack.c.bf16 %v2774_v15, %v2774_v15  ;;  %v3060_v39 = vld [vmem:[#allocation2 + $0x10] sm:$0xf]  ;;  %v3294_v21 = vrot.slane %v3292_v10, 1  ;;  %v5624_v16 = vld [vmem:[%s7940_s7 + $0x28] sm:$0xff] }
 0x25d   :  { %2976 = vst [vmem:[#allocation2 + $0x18] sm:$0xf] %v2975_v6  ;;  %v6959_v62 = vld [vmem:[#allocation2 + $0x14] sm:$0x1]  ;;  %v3238_v41 = vunpack.c.l.b16 %v3060_v39  ;;  %4840 = vmatpush.bf16.msrb.mxu3 %v5624_v16 }
 0x25e   :  { %2979 = vst [vmem:[#allocation2 + $0x1c] sm:$0x1] %v2978_v2  ;;  %v2828_v43 = vshrl.u32 %v2790_v55, 16  ;;  %v8036_v35 = vunpack.c.l.b16 %v6959_v62  ;;  %v3295_v30 = vor.u32 %v3294_v21, %v3290_v18  ;;  %v2831_v27 = vshll.u32 %v2790_v55, 16 }
 0x25f   :  { %v6964_v8 = vpop.f32.mrf.mxu3  ;;  %v2741_v25 = vpop.f32.mrf.mxu2 }
 0x260   :  { %v2830_v34 = vrot.slane %v2828_v43, 7  ;;  %v2742_v47 = vadd.f32 %v2741_v25, %v2693_v48  ;;  %v3268_v28 = vpack.c.b16 %v8036_v35, %v3238_v41  ;;  %3396 = vrot.lane.b32.xlu2 %v3295_v30, %s5687_s0  ;;  %v2600_v43 = vadd.f32 %v6951_v9, %v2551_v11  ;;  %v2986_v25 = vld [vmem:[#allocation2 + $0x28] sm:$0xf]  ;;  %v2989_v30 = vld [vmem:[#allocation2 + $0x2c] sm:$0x1] }
 0x261   :  { %v2648_v7 = vpop.f32.mrf.mxu0  ;;  %v2694_v36 = vpop.f32.mrf.mxu1 }
 0x262   :  { %v2833_v4 = vor.u32 %v2831_v27, %v2830_v34  ;;  %v2834_v17 = vrot.slane %v2830_v34, 4  ;;  %v2775_v26 = vmax.f32 %v2742_v47, 0.0  ;;  %v3299_v14 = vshll.u32 %v3268_v28, 16 }
 0x263   :  { %v3297_v1 = vshrl.u32 %v3268_v28, 16  ;;  %v2695_v15 = vadd.f32 %v2694_v36, %v2646_v58  ;;  %v2649_v36 = vadd.f32 %v2648_v7, %v2600_v43 }
 0x264   :  { %v2981_v46 = vsel %vm5919_vm4, %v2833_v4, %v2980_v37  ;;  %v2984_v23 = vsel %vm5927_vm5, %v2834_v17, %v2983_v61  ;;  %v2791_v53 = vpack.c.bf16 %v2775_v26, %v2775_v26  ;;  %v3061_v50 = vld [vmem:[#allocation2 + $0x18] sm:$0xf]  ;;  %v3301_v54 = vrot.slane %v3299_v14, 1 }
 0x265   :  { %2982 = vst [vmem:[#allocation2 + $0x20] sm:$0xf] %v2981_v46  ;;  %v6974_v40 = vld [vmem:[#allocation2 + $0x1c] sm:$0x1]  ;;  %v3240_v31 = vunpack.c.l.b16 %v3061_v50  ;;  %v2553_v46 = vadd.f32 %v6914_v33, %v6829_v42  ;;  %v2992_v42 = vld [vmem:[#allocation2 + $0x30] sm:$0xf] }
 0x266   :  { %2985 = vst [vmem:[#allocation2 + $0x24] sm:$0x1] %v2984_v23  ;;  %v2836_v45 = vshrl.u32 %v2791_v53, 16  ;;  %v8037_v52 = vunpack.c.l.b16 %v6974_v40  ;;  %v3302_v2 = vor.u32 %v3301_v54, %v3297_v1  ;;  %v2839_v55 = vshll.u32 %v2791_v53, 16 }
 0x267   :  { %v6982_v10 = vpop.f32.mrf.mxu3  ;;  %v2743_v6 = vpop.f32.mrf.mxu2 }
 0x268   :  { %v2838_v22 = vrot.slane %v2836_v45, 7  ;;  %v2744_v39 = vadd.f32 %v2743_v6, %v2695_v15  ;;  %v3269_v41 = vpack.c.b16 %v8037_v52, %v3240_v31  ;;  %3398 = vrot.lane.b32.xlu0 %v3302_v2, %s5687_s0  ;;  %v2602_v45 = vadd.f32 %v6964_v8, %v2553_v46  ;;  %v2995_v2 = vld [vmem:[#allocation2 + $0x34] sm:$0x1] }
 0x269   :  { %v2650_v18 = vpop.f32.mrf.mxu0  ;;  %v2697_v21 = vpop.f32.mrf.mxu1 }
 0x26a   :  { %v2841_v48 = vor.u32 %v2839_v55, %v2838_v22  ;;  %v2842_v13 = vrot.slane %v2838_v22, 4  ;;  %v2776_v3 = vmax.f32 %v2744_v39, 0.0  ;;  %v3306_v34 = vshll.u32 %v3269_v41, 16 }
 0x26b   :  { %v3304_v4 = vshrl.u32 %v3269_v41, 16  ;;  %v2698_v61 = vadd.f32 %v2697_v21, %v2649_v36  ;;  %v2651_v21 = vadd.f32 %v2650_v18, %v2602_v45  ;;  %v2556_v18 = vadd.f32 %v6914_v33, %v6842_v63  ;;  %v3001_v63 = vld [vmem:[#allocation2 + $0x3c] sm:$0x1] }
 0x26c   :  { %v2987_v27 = vsel %vm5919_vm4, %v2841_v48, %v2986_v25  ;;  %v2990_v47 = vsel %vm5927_vm5, %v2842_v13, %v2989_v30  ;;  %v2792_v28 = vpack.c.bf16 %v2776_v3, %v2776_v3  ;;  %v3062_v12 = vld [vmem:[#allocation2 + $0x20] sm:$0xf]  ;;  %v3308_v17 = vrot.slane %v3306_v34, 1 }
 0x26d   :  { %2988 = vst [vmem:[#allocation2 + $0x28] sm:$0xf] %v2987_v27  ;;  %v6992_v26 = vld [vmem:[#allocation2 + $0x24] sm:$0x1]  ;;  %v3242_v9 = vunpack.c.l.b16 %v3062_v12 }
 0x26e   :  { %2991 = vst [vmem:[#allocation2 + $0x2c] sm:$0x1] %v2990_v47  ;;  %v2844_v37 = vshrl.u32 %v2792_v28, 16  ;;  %v8034_v14 = vunpack.c.l.b16 %v6992_v26  ;;  %v3309_v58 = vor.u32 %v3308_v17, %v3304_v4  ;;  %v2847_v7 = vshll.u32 %v2792_v28, 16  ;;  %v5623_v27 = vld [vmem:[%s7940_s7 + $0x20] sm:$0xff] }
 0x26f   :  { %v2746_v23 = vpop.f32.mrf.mxu2  ;;  %v7001_v11 = vpop.f32.mrf.mxu3  ;;  %4841 = vmatpush.bf16.msrb.mxu3 %v5623_v27 }
 0x270   :  { %v2846_v53 = vrot.slane %v2844_v37, 7  ;;  %v2747_v50 = vadd.f32 %v2746_v23, %v2698_v61  ;;  %v3270_v31 = vpack.c.b16 %v8034_v14, %v3242_v9  ;;  %3400 = vrot.lane.b32.xlu1 %v3309_v58, %s5687_s0  ;;  %v2605_v61 = vadd.f32 %v6982_v10, %v2556_v18 }
 0x271   :  { %v2653_v1 = vpop.f32.mrf.mxu0  ;;  %v2699_v54 = vpop.f32.mrf.mxu1 }
 0x272   :  { %v2849_v15 = vor.u32 %v2847_v7, %v2846_v53  ;;  %v2850_v16 = vrot.slane %v2846_v53, 4  ;;  %v2777_v6 = vmax.f32 %v2747_v50, 0.0  ;;  %v3313_v22 = vshll.u32 %v3270_v31, 16  ;;  %v2998_v53 = vld [vmem:[#allocation2 + $0x38] sm:$0xf] }
 0x273   :  { %v3311_v48 = vshrl.u32 %v3270_v31, 16  ;;  %v2700_v30 = vadd.f32 %v2699_v54, %v2651_v21  ;;  %v2654_v31 = vadd.f32 %v2653_v1, %v2605_v61  ;;  %v2558_v21 = vadd.f32 %v6914_v33, %v6857_v19 }
 0x274   :  { %v2993_v55 = vsel %vm5919_vm4, %v2849_v15, %v2992_v42  ;;  %v2996_v39 = vsel %vm5927_vm5, %v2850_v16, %v2995_v2  ;;  %v2793_v41 = vpack.c.bf16 %v2777_v6, %v2777_v6  ;;  %v3063_v43 = vld [vmem:[#allocation2 + $0x28] sm:$0xf]  ;;  %v3315_v8 = vrot.slane %v3313_v22, 1 }
 0x275   :  { %2994 = vst [vmem:[#allocation2 + $0x30] sm:$0xf] %v2993_v55  ;;  %v7007_v13 = vld [vmem:[#allocation2 + $0x2c] sm:$0x1]  ;;  %v3244_v3 = vunpack.c.l.b16 %v3063_v43  ;;  %v2607_v27 = vadd.f32 %v7001_v11, %v2558_v21 }
 0x276   :  { %2997 = vst [vmem:[#allocation2 + $0x34] sm:$0x1] %v2996_v39  ;;  %v2852_v25 = vshrl.u32 %v2793_v41, 16  ;;  %v8035_v34 = vunpack.c.l.b16 %v7007_v13  ;;  %v3316_v36 = vor.u32 %v3315_v8, %v3311_v48  ;;  %v2855_v12 = vshll.u32 %v2793_v41, 16 }
 0x277   :  { %v2748_v47 = vpop.f32.mrf.mxu2  ;;  %v2609_v45 = vpop.f32.mrf.mxu3 }
 0x278   :  { %v2854_v28 = vrot.slane %v2852_v25, 7  ;;  %v2749_v4 = vadd.f32 %v2748_v47, %v2700_v30  ;;  %v3271_v37 = vpack.c.b16 %v8035_v34, %v3244_v3  ;;  %3402 = vrot.lane.b32.xlu2 %v3316_v36, %s5687_s0 }
 0x279   :  { %v2655_v17 = vpop.f32.mrf.mxu0  ;;  %v2702_v9 = vpop.f32.mrf.mxu1 }
 0x27a   :  { %v2857_v46 = vor.u32 %v2855_v12, %v2854_v28  ;;  %v2858_v23 = vrot.slane %v2854_v28, 4  ;;  %v2778_v58 = vmax.f32 %v2749_v4, 0.0  ;;  %v3320_v7 = vshll.u32 %v3271_v37, 16  ;;  %v3004_v28 = vld [vmem:[#allocation2 + $0x40] sm:$0xf] }
 0x27b   :  { %v3318_v6 = vshrl.u32 %v3271_v37, 16  ;;  %v2703_v55 = vadd.f32 %v2702_v9, %v2654_v31  ;;  %v3007_v12 = vld [vmem:[#allocation2 + $0x44] sm:$0x1]  ;;  %v2656_v37 = vadd.f32 %v2655_v17, %v2607_v27  ;;  %v5622_v31 = vld [vmem:[%s7940_s7 + $0x18] sm:$0xff]  ;;  %v2561_v17 = vadd.f32 %v6914_v33, %v6870_v29 }
 0x27c   :  { %v2999_v50 = vsel %vm5919_vm4, %v2857_v46, %v2998_v53  ;;  %v3002_v54 = vsel %vm5927_vm5, %v2858_v23, %v3001_v63  ;;  %v2794_v15 = vpack.c.bf16 %v2778_v58, %v2778_v58  ;;  %v3064_v16 = vld [vmem:[#allocation2 + $0x30] sm:$0xf]  ;;  %v3322_v42 = vrot.slane %v3320_v7, 1  ;;  %4842 = vmatpush.bf16.msrb.mxu3 %v5622_v31 }
 0x27d   :  { %3000 = vst [vmem:[#allocation2 + $0x38] sm:$0xf] %v2999_v50  ;;  %v7023_v10 = vld [vmem:[#allocation2 + $0x34] sm:$0x1]  ;;  %v3246_v2 = vunpack.c.l.b16 %v3064_v16 }
 0x27e   :  { %3003 = vst [vmem:[#allocation2 + $0x3c] sm:$0x1] %v3002_v54  ;;  %v2860_v22 = vshrl.u32 %v2794_v15, 16  ;;  %v8031_v39 = vunpack.c.l.b16 %v7023_v10  ;;  %v3323_v43 = vor.u32 %v3322_v42, %v3318_v6  ;;  %v2863_v48 = vshll.u32 %v2794_v15, 16 }
 0x27f   :  { %v2751_v41 = vpop.f32.mrf.mxu2  ;;  %v2611_v63 = vpop.f32.mrf.mxu3 }
 0x280   :  { %v2862_v1 = vrot.slane %v2860_v22, 7  ;;  %v2752_v8 = vadd.f32 %v2751_v41, %v2703_v55  ;;  %v3272_v30 = vpack.c.b16 %v8031_v39, %v3246_v2  ;;  %3404 = vrot.lane.b32.xlu0 %v3323_v43, %s5687_s0  ;;  %v2610_v41 = vadd.f32 %v2609_v45, %v2561_v17  ;;  %v3138_v39 = vld [vmem:[#allocation2 + $0x8] sm:$0xe] }
 0x281   :  { %v2658_v3 = vpop.f32.mrf.mxu0  ;;  %v2704_v25 = vpop.f32.mrf.mxu1  ;;  %v3746_v14 = vunpack.c.l.b16 %v3138_v39 }
 0x282   :  { %v2865_v18 = vor.u32 %v2863_v48, %v2862_v1  ;;  %v2866_v47 = vrot.slane %v2862_v1, 4  ;;  %v2779_v36 = vmax.f32 %v2752_v8, 0.0  ;;  %v3327_v19 = vshll.u32 %v3272_v30, 16  ;;  %v3010_v8 = vld [vmem:[#allocation2 + $0x58] sm:$0xf] }
 0x283   :  { %v3325_v23 = vshrl.u32 %v3272_v30, 16  ;;  %v2705_v50 = vadd.f32 %v2704_v25, %v2656_v37  ;;  %v3013_v25 = vld [vmem:[#allocation2 + $0x5c] sm:$0x1] }
 0x284   :  { %v3005_v4 = vsel %vm5919_vm4, %v2865_v18, %v3004_v28  ;;  %v3008_v9 = vsel %vm5927_vm5, %v2866_v47, %v3007_v12  ;;  %v2795_v61 = vpack.c.bf16 %v2779_v36, %v2779_v36  ;;  %v3065_v46 = vld [vmem:[#allocation2 + $0x38] sm:$0xf]  ;;  %v3329_v58 = vrot.slane %v3327_v19, 1  ;;  %v3066_v19 = vld [vmem:[#allocation2 + $0x50] sm:$0xf] }
 0x285   :  { %3006 = vst [vmem:[#allocation2 + $0x40] sm:$0xf] %v3005_v4  ;;  %v7036_v53 = vld [vmem:[#allocation2 + $0x3c] sm:$0x1]  ;;  %v3248_v11 = vunpack.c.l.b16 %v3065_v46  ;;  %v2659_v18 = vadd.f32 %v2658_v3, %v2610_v41  ;;  %v2563_v4 = vadd.f32 %v6914_v33, %v6883_v24  ;;  %v3250_v46 = vunpack.c.l.b16 %v3066_v19  ;;  %v3159_v0 = vld [vmem:[#allocation2 + $0x38] sm:$0xf] }
 0x286   :  { %3009 = vst [vmem:[#allocation2 + $0x44] sm:$0x1] %v3008_v9  ;;  %v2868_v7 = vshrl.u32 %v2795_v61, 16  ;;  %v8033_v54 = vunpack.c.l.b16 %v7036_v53  ;;  %v3330_v16 = vor.u32 %v3329_v58, %v3325_v23  ;;  %v2871_v42 = vshll.u32 %v2795_v61, 16  ;;  %v7053_v61 = vld [vmem:[#allocation2 + $0x54] sm:$0x1] }
 0x287   :  { %v2753_v15 = vpop.f32.mrf.mxu2  ;;  %8202 = vst [vmem:[#allocation5_spill] sm:$0xff] %v7053_v61  ;;  %v2614_v23 = vpop.f32.mrf.mxu3  ;;  %v2612_v31 = vadd.f32 %v2611_v63, %v2563_v4  ;;  %v7266_v39 = vld [vmem:[#allocation2 + $0x3c] sm:$0x1] }
 0x288   :  { %v2870_v6 = vrot.slane %v2868_v7, 7  ;;  %v2754_v2 = vadd.f32 %v2753_v15, %v2705_v50  ;;  %v3273_v21 = vpack.c.b16 %v8033_v54, %v3248_v11  ;;  %3406 = vrot.lane.b32.xlu1 %v3330_v16, %s5687_s0  ;;  %v8029_v50 = vunpack.c.l.b16 %v7053_v61 }
 0x289   :  { %v2660_v22 = vpop.f32.mrf.mxu0  ;;  %v2707_v55 = vpop.f32.mrf.mxu1 }
 0x28a   :  { %v2873_v43 = vor.u32 %v2871_v42, %v2870_v6  ;;  %v2874_v1 = vrot.slane %v2870_v6, 4  ;;  %v2780_v48 = vmax.f32 %v2754_v2, 0.0  ;;  %v3334_v29 = vshll.u32 %v3273_v21, 16  ;;  %v3016_v42 = vld [vmem:[#allocation2 + $0x60] sm:$0xf] }
 0x28b   :  { %v3332_v36 = vshrl.u32 %v3273_v21, 16  ;;  %v2708_v45 = vadd.f32 %v2707_v55, %v2659_v18  ;;  %v3274_v24 = vpack.c.b16 %v8029_v50, %v3250_v46  ;;  %v3019_v2 = vld [vmem:[#allocation2 + $0x64] sm:$0x1]  ;;  %v2661_v41 = vadd.f32 %v2660_v22, %v2612_v31  ;;  %v5621_v18 = vld [vmem:[%s7940_s7 + $0x10] sm:$0xff]  ;;  %v3025_v31 = vld [vmem:[#allocation2 + $0x6c] sm:$0x1] }
 0x28c   :  { %v3011_v30 = vsel %vm5919_vm4, %v2873_v43, %v3010_v8  ;;  %v3014_v27 = vsel %vm5927_vm5, %v2874_v1, %v3013_v25  ;;  %v2796_v47 = vpack.c.bf16 %v2780_v48, %v2780_v48  ;;  %v3336_v28 = vrot.slane %v3334_v29, 1  ;;  %4843 = vmatpush.bf16.msrb.mxu3 %v5621_v18 }
 0x28d   :  { %3012 = vst [vmem:[#allocation2 + $0x58] sm:$0xf] %v3011_v30  ;;  %v3339_v1 = vshrl.u32 %v3274_v24, 16  ;;  %v3341_v48 = vshll.u32 %v3274_v24, 16  ;;  %v2566_v22 = vadd.f32 %v6914_v33, %v6889_v56 }
 0x28e   :  { %3015 = vst [vmem:[#allocation2 + $0x5c] sm:$0x1] %v3014_v27  ;;  %v2876_v12 = vshrl.u32 %v2796_v47, 16  ;;  %v3337_v37 = vor.u32 %v3336_v28, %v3332_v36  ;;  %v2879_v11 = vshll.u32 %v2796_v47, 16 }
 0x28f   :  { %v2756_v9 = vpop.f32.mrf.mxu2  ;;  %v3343_v36 = vrot.slane %v3341_v48, 1  ;;  %v2616_v46 = vpop.f32.mrf.mxu3  ;;  %v2568_v48 = vadd.f32 %v6914_v33, %v6895_v59  ;;  %v3031_v59 = vld [vmem:[#allocation2 + $0x74] sm:$0x1] }
 0x290   :  { %v2878_v58 = vrot.slane %v2876_v12, 7  ;;  %v2757_v3 = vadd.f32 %v2756_v9, %v2708_v45  ;;  %3408 = vrot.lane.b32.xlu2 %v3337_v37, %s5687_s0  ;;  %v2615_v37 = vadd.f32 %v2614_v23, %v2566_v22 }
 0x291   :  { %v2709_v7 = vpop.f32.mrf.mxu1  ;;  %v2663_v6 = vpop.f32.mrf.mxu0  ;;  %v3344_v9 = vor.u32 %v3343_v36, %v3339_v1  ;;  %v7086_v36 = vld [vmem:[#allocation2 + $0xc] sm:$0x1] }
 0x292   :  { %v2881_v17 = vor.u32 %v2879_v11, %v2878_v58  ;;  %v2882_v15 = vrot.slane %v2878_v58, 4  ;;  %v2781_v16 = vmax.f32 %v2757_v3, 0.0  ;;  %v2710_v30 = vadd.f32 %v2709_v7, %v2661_v41  ;;  %v3022_v7 = vld [vmem:[#allocation2 + $0x68] sm:$0xf] }
 0x293   :  { %3410 = vrot.lane.b32.xlu0 %v3344_v9, %s5687_s0  ;;  %v3028_v9 = vld [vmem:[#allocation2 + $0x70] sm:$0xf] }
 0x294   :  { %v3017_v55 = vsel %vm5919_vm4, %v2881_v17, %v3016_v42  ;;  %v3020_v21 = vsel %vm5927_vm5, %v2882_v15, %v3019_v2  ;;  %v2797_v43 = vpack.c.bf16 %v2781_v16, %v2781_v16  ;;  %v3067_v63 = vld [vmem:[#allocation2 + $0x58] sm:$0xf]  ;;  %v2664_v16 = vadd.f32 %v2663_v6, %v2615_v37 }
 0x295   :  { %3018 = vst [vmem:[#allocation2 + $0x60] sm:$0xf] %v3017_v55  ;;  %v7063_v8 = vld [vmem:[#allocation2 + $0x5c] sm:$0x1]  ;;  %v3252_v25 = vunpack.c.l.b16 %v3067_v63 }
 0x296   :  { %3021 = vst [vmem:[#allocation2 + $0x64] sm:$0x1] %v3020_v21  ;;  %v2884_v29 = vshrl.u32 %v2797_v43, 16  ;;  %v8030_v27 = vunpack.c.l.b16 %v7063_v8  ;;  %v2887_v12 = vshll.u32 %v2797_v43, 16 }
 0x297   :  { %v2758_v47 = vpop.f32.mrf.mxu2 }
 0x298   :  { %v2886_v28 = vrot.slane %v2884_v29, 7  ;;  %v2759_v45 = vadd.f32 %v2758_v47, %v2710_v30  ;;  %v3275_v4 = vpack.c.b16 %v8030_v27, %v3252_v25 }
 0x299   :  { %v2712_v19 = vpop.f32.mrf.mxu1  ;;  %v2665_v42 = vpop.f32.mrf.mxu0 }
 0x29a   :  { %v2889_v58 = vor.u32 %v2887_v12, %v2886_v28  ;;  %v2890_v11 = vrot.slane %v2886_v28, 4  ;;  %v2782_v3 = vmax.f32 %v2759_v45, 0.0  ;;  %v3348_v56 = vshll.u32 %v3275_v4, 16  ;;  %v3106_v28 = vld [vmem:[#allocation2 + $0x8] sm:$0xf] }
 0x29b   :  { %v3346_v23 = vshrl.u32 %v3275_v4, 16  ;;  %v2713_v63 = vadd.f32 %v2712_v19, %v2664_v16  ;;  %v2617_v12 = vadd.f32 %v2616_v46, %v2568_v48  ;;  %v2571_v48 = vadd.f32 %v6914_v33, %v6905_v32 }
 0x29c   :  { %v3023_v17 = vsel %vm5919_vm4, %v2889_v58, %v3022_v7  ;;  %v3026_v15 = vsel %vm5927_vm5, %v2890_v11, %v3025_v31  ;;  %v2798_v24 = vpack.c.bf16 %v2782_v3, %v2782_v3  ;;  %v3068_v2 = vld [vmem:[#allocation2 + $0x60] sm:$0xf]  ;;  %v3350_v55 = vrot.slane %v3348_v56, 1  ;;  %v2619_v3 = vpop.f32.mrf.mxu3 }
 0x29d   :  { %3024 = vst [vmem:[#allocation2 + $0x68] sm:$0xf] %v3023_v17  ;;  %v7078_v21 = vld [vmem:[#allocation2 + $0x64] sm:$0x1]  ;;  %v3254_v41 = vunpack.c.l.b16 %v3068_v2  ;;  %v3586_v58 = vunpack.c.l.b16 %v7086_v36  ;;  %v7089_v11 = vunpack.c.l.b16 %v3106_v28  ;;  %v2666_v56 = vadd.f32 %v2665_v42, %v2617_v12  ;;  %v3170_v28 = vld [vmem:[#allocation2 + $0x14] sm:$0x1] }
 0x29e   :  { %8203 = vst [vmem:[#allocation29_spill] sm:$0xff] %v7078_v21  ;;  %v2892_v43 = vshrl.u32 %v2798_v24, 16  ;;  %v8026_v1 = vunpack.c.l.b16 %v7078_v21  ;;  %v3351_v29 = vor.u32 %v3350_v55, %v3346_v23  ;;  %v2895_v30 = vshll.u32 %v2798_v24, 16  ;;  %v5653_v36 = vld [vmem:[%s7940_s7 + $0x110] sm:$0xff] }
 0x29f   :  { %3027 = vst [vmem:[#allocation2 + $0x6c] sm:$0x1] %v3026_v15  ;;  %v2761_v25 = vpop.f32.mrf.mxu2  ;;  %v7104_v42 = vpack.c.b16 %v3586_v58, %v7089_v11 }
 0x2a0   :  { %v2894_v6 = vrot.slane %v2892_v43, 7  ;;  %v2762_v18 = vadd.f32 %v2761_v25, %v2713_v63  ;;  %v3276_v47 = vpack.c.b16 %v8026_v1, %v3254_v41  ;;  %3412 = vrot.lane.b32.xlu1 %v3351_v29, %s5687_s0  ;;  %v5620_v63 = vld [vmem:[%s7940_s7 + $0x8] sm:$0xff] }
 0x2a1   :  { %v2714_v22 = vpop.f32.mrf.mxu1  ;;  %v2668_v55 = vpop.f32.mrf.mxu0  ;;  %4844 = vmatpush.bf16.msrb.mxu3 %v5620_v63  ;;  %v2573_v63 = vadd.f32 %v6914_v33, %v6916_v44 }
 0x2a2   :  { %v2897_v45 = vor.u32 %v2895_v30, %v2894_v6  ;;  %v2898_v19 = vrot.slane %v2894_v6, 4  ;;  %v2783_v4 = vmax.f32 %v2762_v18, 0.0  ;;  %v3355_v37 = vshll.u32 %v3276_v47, 16 }
 0x2a3   :  { %v3353_v15 = vshrl.u32 %v3276_v47, 16  ;;  %v2715_v41 = vadd.f32 %v2714_v22, %v2666_v56  ;;  %v5619_v47 = vld [vmem:[%s7940_s7] sm:$0xff]  ;;  %v3859_v56 = vunpack.c.l.b16 %v3170_v28 }
 0x2a4   :  { %v3029_v7 = vsel %vm5919_vm4, %v2897_v45, %v3028_v9  ;;  %v3032_v31 = vsel %vm5927_vm5, %v2898_v19, %v3031_v59  ;;  %v2799_v17 = vpack.c.bf16 %v2783_v4, %v2783_v4  ;;  %v3069_v46 = vld [vmem:[#allocation2 + $0x68] sm:$0xf]  ;;  %v3357_v16 = vrot.slane %v3355_v37, 1  ;;  %v3186_v45 = vld [vmem:[#allocation2 + $0x10] sm:$0xe] }
 0x2a5   :  { %3030 = vst [vmem:[#allocation2 + $0x70] sm:$0xf] %v3029_v7  ;;  %v3256_v2 = vunpack.c.l.b16 %v3069_v46  ;;  %v2620_v19 = vadd.f32 %v2619_v3, %v2571_v48  ;;  %v3034_v9 = vld [vmem:[#allocation2 + $0x78] sm:$0xf]  ;;  %v3037_v37 = vld [vmem:[#allocation2 + $0x7c] sm:$0x1]  ;;  %4845 = vmatpush.bf16.msrb.mxu3 %v5619_v47 }
 0x2a6   :  { %v7095_v24 = vld [vmem:[#allocation2 + $0x6c] sm:$0x1]  ;;  %3033 = vst [vmem:[#allocation2 + $0x74] sm:$0x1] %v3032_v31  ;;  %v2900_v23 = vshrl.u32 %v2799_v17, 16  ;;  %v3358_v29 = vor.u32 %v3357_v16, %v3353_v15  ;;  %v2903_v30 = vshll.u32 %v2799_v17, 16  ;;  %v4066_v17 = vunpack.c.l.b16 %v3186_v45 }
 0x2a7   :  { %8204 = vst [vmem:[#allocation8_spill] sm:$0xff] %v7095_v24  ;;  %v8027_v43 = vunpack.c.l.b16 %v7095_v24  ;;  %v2763_v25 = vpop.f32.mrf.mxu2  ;;  %v3154_v31 = vld [vmem:[#allocation2 + $0x10] sm:$0xf]  ;;  %v2669_v16 = vadd.f32 %v2668_v55, %v2620_v19  ;;  %v7118_v3 = vld [vmem:[#allocation2 + $0x1c] sm:$0x1] }
 0x2a8   :  { %v2902_v6 = vrot.slane %v2900_v23, 7  ;;  %v2764_v18 = vadd.f32 %v2763_v25, %v2715_v41  ;;  %3414 = vrot.lane.b32.xlu2 %v3358_v29, %s5687_s0  ;;  %v3187_v41 = vld [vmem:[#allocation2 + $0x18] sm:$0xe]  ;;  %v3858_v45 = vunpack.c.l.b16 %v3154_v31 }
 0x2a9   :  { %v3277_v22 = vpack.c.b16 %v8027_v43, %v3256_v2  ;;  %v2717_v12 = vpop.f32.mrf.mxu1 }
 0x2aa   :  { %v2905_v32 = vor.u32 %v2903_v30, %v2902_v6  ;;  %v2906_v4 = vrot.slane %v2902_v6, 4  ;;  %v2784_v59 = vmax.f32 %v2764_v18, 0.0  ;;  %v2621_v30 = vpop.f32.mrf.mxu3  ;;  %v2718_v28 = vadd.f32 %v2717_v12, %v2669_v16  ;;  %v3040_v16 = vld [vmem:[#allocation2 + $0x80] sm:$0xf] }
 0x2ab   :  { %v3362_v7 = vshll.u32 %v3277_v22, 16  ;;  %v3360_v48 = vshrl.u32 %v3277_v22, 16  ;;  %v2670_v22 = vpop.f32.mrf.mxu0 }
 0x2ac   :  { %v3035_v46 = vsel %vm5919_vm4, %v2905_v32, %v3034_v9  ;;  %v3038_v15 = vsel %vm5927_vm5, %v2906_v4, %v3037_v37  ;;  %v2800_v2 = vpack.c.bf16 %v2784_v59, %v2784_v59  ;;  %v3070_v23 = vld [vmem:[#allocation2 + $0x70] sm:$0xf]  ;;  %v4082_v32 = vpack.c.b16 %v3859_v56, %v4066_v17 }
 0x2ad   :  { %3036 = vst [vmem:[#allocation2 + $0x78] sm:$0xf] %v3035_v46  ;;  %v3364_v25 = vrot.slane %v3362_v7, 1  ;;  %v7122_v29 = vld [vmem:[#allocation2 + $0x74] sm:$0x1]  ;;  %v3258_v6 = vunpack.c.l.b16 %v3070_v23  ;;  %v3861_v4 = vunpack.c.l.b16 %v7118_v3  ;;  %v4067_v9 = vunpack.c.l.b16 %v3187_v41 }
 0x2ae   :  { %8205 = vst [vmem:[#allocation28_spill] sm:$0xff] %v7122_v29  ;;  %v2908_v18 = vshrl.u32 %v2800_v2, 16  ;;  %v8024_v55 = vunpack.c.l.b16 %v7122_v29  ;;  %v2911_v44 = vshll.u32 %v2800_v2, 16  ;;  %v2622_v7 = vadd.f32 %v2621_v30, %v2573_v63  ;;  %v3107_v17 = vld [vmem:[#allocation2 + $0x10] sm:$0xf] }
 0x2af   :  { %3039 = vst [vmem:[#allocation2 + $0x7c] sm:$0x1] %v3038_v15  ;;  %v2766_v47 = vpop.f32.mrf.mxu2  ;;  %v3365_v19 = vor.u32 %v3364_v25, %v3360_v48  ;;  %v4083_v12 = vpack.c.b16 %v3861_v4, %v4067_v9  ;;  %v3043_v23 = vld [vmem:[#allocation2 + $0x84] sm:$0x1]  ;;  %v3395_v25 = vpop.permute.xlu1 %3394  ;;  %v7137_v9 = vld [vmem:[#allocation2 + $0x14] sm:$0x1] }
 0x2b0   :  { %v2910_v33 = vrot.slane %v2908_v18, 7  ;;  %v2767_v59 = vadd.f32 %v2766_v47, %v2718_v28  ;;  %v3278_v37 = vpack.c.b16 %v8024_v55, %v3258_v6  ;;  %v2671_v41 = vadd.f32 %v2670_v22, %v2622_v7 }
 0x2b1   :  { %3416 = vrot.lane.b32.xlu0 %v3365_v19, %s5687_s0  ;;  %v2719_v48 = vpop.f32.mrf.mxu1  ;;  %v7131_v18 = vpack.c.b16 %v3859_v56, %v3858_v45  ;;  %v4098_v28 = vrot.slane %v4082_v32, 1  ;;  %v7141_v56 = vunpack.c.l.b16 %v3107_v17  ;;  %v4116_v7 = vsel %vm1801_vm6, %v6901_v5, %v3395_v25  ;;  %v5654_v5 = vld [vmem:[%s7940_s7 + $0x118] sm:$0xff] }
 0x2b2   :  { %v2913_v31 = vor.u32 %v2911_v44, %v2910_v33  ;;  %v2914_v46 = vrot.slane %v2910_v33, 4  ;;  %v2785_v15 = vmax.f32 %v2767_v59, 0.0  ;;  %v3369_v2 = vshll.u32 %v3278_v37, 16  ;;  %5038 = vmatpush.bf16.msra.mxu3 %v5654_v5 }
 0x2b3   :  { %v3367_v47 = vshrl.u32 %v3278_v37, 16  ;;  %v4099_v59 = vrot.slane %v4083_v12, 1  ;;  %v2720_v32 = vadd.f32 %v2719_v48, %v2671_v41  ;;  %v5650_v37 = vld [vmem:[%s7940_s7 + $0xf8] sm:$0xff]  ;;  %v3587_v17 = vunpack.c.l.b16 %v7137_v9 }
 0x2b4   :  { %v3041_v63 = vsel %vm5919_vm4, %v2913_v31, %v3040_v16  ;;  %v3044_v6 = vsel %vm5927_vm5, %v2914_v46, %v3043_v23  ;;  %v2801_v30 = vpack.c.bf16 %v2785_v15, %v2785_v15  ;;  %v3071_v19 = vld [vmem:[#allocation2 + $0x78] sm:$0xf]  ;;  %v3371_v33 = vrot.slane %v3369_v2, 1  ;;  %4985 = vmatpush.bf16.msra.mxu2 %v5650_v37 }
 0x2b5   :  { %3042 = vst [vmem:[#allocation2 + $0x80] sm:$0xf] %v3041_v63  ;;  %v3260_v22 = vunpack.c.l.b16 %v3071_v19  ;;  %v7149_v16 = vunpack.c.l.b16 %v4098_v28  ;;  %v7151_v23 = vunpack.c.l.b16 %v4099_v59  ;;  %v5634_v12 = vld [vmem:[%s7940_s7 + $0x78] sm:$0xff]  ;;  %v3049_v59 = vld [vmem:[#allocation2 + $0x8c] sm:$0x1] }
 0x2b6   :  { %v7139_v44 = vld [vmem:[#allocation2 + $0x7c] sm:$0x1]  ;;  %3045 = vst [vmem:[#allocation2 + $0x84] sm:$0x1] %v3044_v6  ;;  %v2916_v45 = vshrl.u32 %v2801_v30, 16  ;;  %v3372_v15 = vor.u32 %v3371_v33, %v3367_v47  ;;  %v2919_v48 = vshll.u32 %v2801_v30, 16  ;;  %4887 = vmatpush.bf16.msra.mxu0 %v5634_v12  ;;  %v7171_v30 = vpack.c.b16 %v3587_v17, %v7141_v56  ;;  %5039 = vmatpush.bf16.msra.mxu3 %v5653_v36 }
 0x2b7   :  { %8206 = vst [vmem:[#allocation6_spill] sm:$0xff] %v7139_v44  ;;  %v8025_v31 = vunpack.c.l.b16 %v7139_v44  ;;  %v2768_v46 = vpop.f32.mrf.mxu2  ;;  %v3155_v28 = vld [vmem:[#allocation2 + $0x18] sm:$0xf] }
 0x2b8   :  { %v2918_v41 = vrot.slane %v2916_v45, 7  ;;  %v2769_v2 = vadd.f32 %v2768_v46, %v2720_v32  ;;  %3418 = vrot.lane.b32.xlu1 %v3372_v15, %s5687_s0  ;;  %v5642_v6 = vld [vmem:[%s7940_s7 + $0xb8] sm:$0xff]  ;;  %v4370_v45 = vunpack.c.l.b16 %v4116_v7  ;;  %v3909_v46 = vshll.u32 %v7131_v18, 16  ;;  %4986 = vmatpush.bf16.msra.mxu2 %v5649_v57  ;;  %v3157_v57 = vld [vmem:[#allocation2 + $0x28] sm:$0xf] }
 0x2b9   :  { %v3279_v25 = vpack.c.b16 %v8025_v31, %v3260_v22  ;;  %v3046_v22 = vld [vmem:[#allocation2 + $0x88] sm:$0xf]  ;;  %v3860_v15 = vunpack.c.l.b16 %v3155_v28  ;;  %4936 = vmatpush.bf16.msra.mxu1 %v5642_v6 }
 0x2ba   :  { %v2921_v47 = vor.u32 %v2919_v48, %v2918_v41  ;;  %v2922_v19 = vrot.slane %v2918_v41, 4  ;;  %v2786_v33 = vmax.f32 %v2769_v2, 0.0  ;;  %v3397_v32 = vpop.permute.xlu2 %3396 }
 0x2bb   :  { %v3376_v37 = vshll.u32 %v3279_v25, 16  ;;  %v4119_v41 = vsel %vm1801_vm6, %v6940_v60, %v3397_v32  ;;  %v3374_v7 = vshrl.u32 %v3279_v25, 16  ;;  %v3109_v32 = vld [vmem:[#allocation2 + $0x20] sm:$0xf] }
 0x2bc   :  { %v3047_v12 = vsel %vm5919_vm4, %v2921_v47, %v3046_v22  ;;  %v3050_v55 = vsel %vm5927_vm5, %v2922_v19, %v3049_v59  ;;  %v2802_v31 = vpack.c.bf16 %v2786_v33, %v2786_v33  ;;  %v3072_v5 = vld [vmem:[#allocation2 + $0x80] sm:$0xf]  ;;  %v4375_v48 = vunpack.c.l.b16 %v4119_v41  ;;  %v7187_v33 = vld [vmem:[#allocation2 + $0x1c] sm:$0x1]  ;;  %v3055_v41 = vld [vmem:[#allocation2 + $0x94] sm:$0x1] }
 0x2bd   :  { %3048 = vst [vmem:[#allocation2 + $0x88] sm:$0xf] %v3047_v12  ;;  %v3378_v2 = vrot.slane %v3376_v37, 1  ;;  %v7180_v1 = vld [vmem:[#allocation2 + $0x84] sm:$0x1]  ;;  %v3262_v43 = vunpack.c.l.b16 %v3072_v5  ;;  %v7185_v19 = vpack.c.b16 %v3861_v4, %v3860_v15 }
 0x2be   :  { %8207 = vst [vmem:[#allocation32_spill] sm:$0xff] %v7180_v1  ;;  %v2924_v28 = vshrl.u32 %v2802_v31, 16  ;;  %v8028_v6 = vunpack.c.l.b16 %v7180_v1  ;;  %v4526_v47 = vpack.c.b16 %v4375_v48, %v4370_v45  ;;  %v2927_v59 = vshll.u32 %v2802_v31, 16  ;;  %v3108_v37 = vld [vmem:[#allocation2 + $0x18] sm:$0xf] }
 0x2bf   :  { %3051 = vst [vmem:[#allocation2 + $0x8c] sm:$0x1] %v3050_v55  ;;  %v3379_v22 = vor.u32 %v3378_v2, %v3374_v7  ;;  %v3907_v55 = vshrl.u32 %v7131_v18, 16  ;;  %v3911_v45 = vrot.slane %v3909_v46, 1  ;;  %v7193_v12 = vld [vmem:[#allocation2 + $0x24] sm:$0x1]  ;;  %v3588_v31 = vunpack.c.l.b16 %v7187_v33 }
 0x2c0   :  { %v2926_v60 = vrot.slane %v2924_v28, 7  ;;  %v3280_v25 = vpack.c.b16 %v8028_v6, %v3262_v43  ;;  %4846 = vmatmul.bf16.vlgmr.msrb.gmra.mxu3 %v4526_v47  ;;  %v3052_v15 = vld [vmem:[#allocation2 + $0x90] sm:$0xf]  ;;  %v3916_v43 = vshll.u32 %v7185_v19, 16  ;;  %v3156_v7 = vld [vmem:[#allocation2 + $0x20] sm:$0xf]  ;;  %v7199_v28 = vunpack.c.l.b16 %v3109_v32 }
 0x2c1   :  { %3420 = vrot.lane.b32.xlu2 %v3379_v22, %s5687_s0  ;;  %v7197_v2 = vld [vmem:[#allocation2 + $0x24] sm:$0x1]  ;;  %v7201_v47 = vunpack.c.l.b16 %v3108_v37  ;;  %v3110_v32 = vld [vmem:[#allocation2 + $0x28] sm:$0xf]  ;;  %v3912_v27 = vor.u32 %v3911_v45, %v3907_v55 }
 0x2c2   :  { %v2929_v3 = vor.u32 %v2927_v59, %v2926_v60  ;;  %v2930_v4 = vrot.slane %v2926_v60, 4  ;;  %v3383_v5 = vshll.u32 %v3280_v25, 16  ;;  %v3381_v48 = vshrl.u32 %v3280_v25, 16  ;;  %v7208_v25 = vld [vmem:[#allocation2 + $0x2c] sm:$0x1] }
 0x2c3   :  { %v8043_v59 = vunpack.c.l.b16 %v7193_v12  ;;  %v8041_v45 = vunpack.c.l.b16 %v7208_v25  ;;  %v3176_v33 = vld [vmem:[#allocation2 + $0x44] sm:$0x1] }
 0x2c4   :  { %v3053_v18 = vsel %vm5919_vm4, %v2929_v3, %v3052_v15  ;;  %v3056_v46 = vsel %vm5927_vm5, %v2930_v4, %v3055_v41  ;;  %v3385_v22 = vrot.slane %v3383_v5, 1  ;;  %v3073_v60 = vld [vmem:[#allocation2 + $0x88] sm:$0xf]  ;;  %v5633_v3 = vld [vmem:[%s7940_s7 + $0x70] sm:$0xff]  ;;  %v7222_v4 = vpack.c.b16 %v3588_v31, %v7201_v47 }
 0x2c5   :  { %3054 = vst [vmem:[#allocation2 + $0x90] sm:$0xf] %v3053_v18  ;;  %v3264_v50 = vunpack.c.l.b16 %v3073_v60  ;;  %v3862_v15 = vunpack.c.l.b16 %v3156_v7  ;;  %v3863_v41 = vunpack.c.l.b16 %v7197_v2  ;;  %v7228_v55 = vpack.c.b16 %v8043_v59, %v7199_v28  ;;  %4888 = vmatpush.bf16.msra.mxu0 %v5633_v3  ;;  %v5641_v18 = vld [vmem:[%s7940_s7 + $0xb0] sm:$0xff] }
 0x2c6   :  { %v7210_v6 = vld [vmem:[#allocation2 + $0x8c] sm:$0x1]  ;;  %3057 = vst [vmem:[#allocation2 + $0x94] sm:$0x1] %v3056_v46  ;;  %v3386_v37 = vor.u32 %v3385_v22, %v3381_v48  ;;  %v7234_v48 = vunpack.c.l.b16 %v3110_v32  ;;  %v3918_v7 = vrot.slane %v3916_v43, 1  ;;  %4937 = vmatpush.bf16.msra.mxu1 %v5641_v18  ;;  %v3523_v18 = vpack.c.b16 %v7141_v56, %v7141_v56 }
 0x2c7   :  { %8208 = vst [vmem:[#allocation9_spill] sm:$0xff] %v7210_v6  ;;  %v8032_v51 = vunpack.c.l.b16 %v7210_v6  ;;  %v3111_v46 = vld [vmem:[#allocation2 + $0x30] sm:$0xf]  ;;  %v7240_v22 = vld [vmem:[#allocation2 + $0x34] sm:$0x1]  ;;  %v3892_v32 = vpack.c.b16 %v3863_v41, %v3862_v15  ;;  %v3871_v29 = vunpack.c.l.b16 %v3176_v33 }
 0x2c8   :  { %3422 = vrot.lane.b32.xlu0 %v3386_v37, %s5687_s0  ;;  %v7242_v37 = vunpack.c.l.b16 %v3111_v46  ;;  %v7252_v43 = vpack.c.b16 %v8041_v45, %v7234_v48  ;;  %v8040_v54 = vunpack.c.l.b16 %v7240_v22  ;;  %v7271_v56 = vld [vmem:[#allocation2 + $0x34] sm:$0x1]  ;;  %v3192_v33 = vld [vmem:[#allocation2 + $0x40] sm:$0xe] }
 0x2c9   :  { %v3281_v5 = vpack.c.b16 %v8032_v51, %v3264_v50  ;;  %4018 = vrot.lane.b32.xlu2 %v3912_v27, %s5687_s0  ;;  %v3914_v50 = vshrl.u32 %v7185_v19, 16  ;;  %v7247_v27 = vld [vmem:[#allocation2 + $0x2c] sm:$0x1]  ;;  %v3864_v19 = vunpack.c.l.b16 %v3157_v57  ;;  %v3923_v35 = vshll.u32 %v3892_v32, 16 }
 0x2ca   :  { %v3865_v63 = vunpack.c.l.b16 %v7247_v27  ;;  %v7259_v15 = vpack.c.b16 %v8040_v54, %v7242_v37  ;;  %v3158_v27 = vld [vmem:[#allocation2 + $0x30] sm:$0xf]  ;;  %v3921_v52 = vshrl.u32 %v3892_v32, 16 }
 0x2cb   :  { %v3390_v60 = vshll.u32 %v3281_v5, 16  ;;  %v3388_v3 = vshrl.u32 %v3281_v5, 16  ;;  %v3919_v46 = vor.u32 %v3918_v7, %v3914_v50  ;;  %v3139_v7 = vld [vmem:[#allocation2 + $0x10] sm:$0xe]  ;;  %v3112_v50 = vld [vmem:[#allocation2 + $0x38] sm:$0xf] }
 0x2cc   :  { %v3893_v5 = vpack.c.b16 %v3865_v63, %v3864_v19  ;;  %v3925_v57 = vrot.slane %v3923_v35, 1  ;;  %v3747_v49 = vunpack.c.l.b16 %v3139_v7  ;;  %v5632_v35 = vld [vmem:[%s7940_s7 + $0x68] sm:$0xff]  ;;  %v3866_v19 = vunpack.c.l.b16 %v3158_v27 }
 0x2cd   :  { %v3392_v51 = vrot.slane %v3390_v60, 1  ;;  %v8042_v60 = vunpack.c.l.b16 %v7266_v39  ;;  %v8045_v7 = vunpack.c.l.b16 %v7271_v56  ;;  %4889 = vmatpush.bf16.msra.mxu0 %v5632_v35  ;;  %v3868_v35 = vunpack.c.l.b16 %v3159_v0 }
 0x2cf   :  { %v3393_v34 = vor.u32 %v3392_v51, %v3388_v3  ;;  %v3762_v51 = vpack.c.b16 %v3586_v58, %v3746_v14  ;;  %v7273_v3 = vunpack.c.l.b16 %v3112_v50  ;;  %v5648_v14 = vld [vmem:[%s7940_s7 + $0xe8] sm:$0xff]  ;;  %v3926_v50 = vor.u32 %v3925_v57, %v3921_v52  ;;  %v3113_v57 = vld [vmem:[#allocation2 + $0x40] sm:$0xf] }
 0x2d0   :  { %4020 = vrot.lane.b32.xlu0 %v3919_v46, %s5687_s0  ;;  %v3188_v46 = vld [vmem:[#allocation2 + $0x20] sm:$0xe]  ;;  %4987 = vmatpush.bf16.msra.mxu2 %v5648_v14  ;;  %v5640_v52 = vld [vmem:[%s7940_s7 + $0xa8] sm:$0xff]  ;;  %v7304_v14 = vunpack.c.l.b16 %v3113_v57 }
 0x2d1   :  { %3424 = vrot.lane.b32.xlu1 %v3393_v34, %s5687_s0  ;;  %3540 = vrot.lane.b32.xlu2 %v3523_v18, %s5687_s0  ;;  %v3189_v34 = vld [vmem:[#allocation2 + $0x28] sm:$0xe]  ;;  %v3522_v18 = vpack.c.b16 %v7089_v11, %v7089_v11  ;;  %v7289_v58 = vpack.c.b16 %v8042_v60, %v7273_v3  ;;  %v3778_v32 = vrot.slane %v3762_v51, 1  ;;  %v3930_v11 = vshll.u32 %v3893_v5, 16  ;;  %v7297_v51 = vld [vmem:[#allocation2 + $0x3c] sm:$0x1] }
 0x2d2   :  { %v4068_v54 = vunpack.c.l.b16 %v3188_v46  ;;  %v4069_v45 = vunpack.c.l.b16 %v3189_v34  ;;  %v3763_v60 = vpack.c.b16 %v3587_v17, %v3747_v49  ;;  %v7306_v46 = vld [vmem:[#allocation2 + $0x44] sm:$0x1]  ;;  %v3140_v49 = vld [vmem:[#allocation2 + $0x18] sm:$0xe]  ;;  %4938 = vmatpush.bf16.msra.mxu1 %v5640_v52  ;;  %v3928_v34 = vshrl.u32 %v3893_v5, 16 }
 0x2d3   :  { %v3932_v27 = vrot.slane %v3930_v11, 1  ;;  %v8044_v17 = vunpack.c.l.b16 %v7306_v46  ;;  %v3869_v36 = vunpack.c.l.b16 %v7297_v51  ;;  %v3748_v57 = vunpack.c.l.b16 %v3140_v49  ;;  %v5666_v49 = vld [vmem:[#allocation2 + $0x10] sm:$0xf] }
 0x2d4   :  { %v4084_v9 = vpack.c.b16 %v3863_v41, %v4068_v54  ;;  %v3779_v11 = vrot.slane %v3763_v60, 1  ;;  %v3190_v54 = vld [vmem:[#allocation2 + $0x30] sm:$0xe]  ;;  %v3525_v52 = vpack.c.b16 %v7199_v28, %v7199_v28  ;;  %v3114_v60 = vld [vmem:[#allocation2 + $0x58] sm:$0xf] }
 0x2d5   :  { %v7321_v0 = vpack.c.b16 %v3869_v36, %v3868_v35 }
 0x2d6   :  { %v4100_v2 = vrot.slane %v4084_v9, 1  ;;  %v4070_v9 = vunpack.c.l.b16 %v3190_v54 }
 0x2d8   :  { %3794 = vrot.lane.b32.xlu0 %v3778_v32, %s5687_s0  ;;  %v4085_v32 = vpack.c.b16 %v3865_v63, %v4069_v45  ;;  %v3191_v63 = vld [vmem:[#allocation2 + $0x38] sm:$0xe]  ;;  %v7324_v45 = vld [vmem:[#allocation2 + $0x5c] sm:$0x1]  ;;  %v7326_v51 = vunpack.c.l.b16 %v4100_v2 }
 0x2d9   :  { %3538 = vrot.lane.b32.xlu1 %v3522_v18, %s5687_s0  ;;  %4022 = vrot.lane.b32.xlu2 %v3926_v50, %s5687_s0  ;;  %v3894_v18 = vpack.c.b16 %v8045_v7, %v3866_v19  ;;  %v7315_v19 = vpack.c.b16 %v8044_v17, %v7304_v14  ;;  %v3933_v50 = vor.u32 %v3932_v27, %v3928_v34  ;;  %v8050_v35 = vunpack.c.l.b16 %v7324_v45 }
 0x2da   :  { %v3399_v41 = vpop.permute.xlu0 %3398  ;;  %v4101_v5 = vrot.slane %v4085_v32, 1  ;;  %v3764_v34 = vpack.c.b16 %v3588_v31, %v3748_v57  ;;  %v4071_v17 = vunpack.c.l.b16 %v3191_v63  ;;  %v5647_v57 = vld [vmem:[%s7940_s7 + $0xe0] sm:$0xff] }
 0x2db   :  { %v3937_v59 = vshll.u32 %v3894_v18, 16  ;;  %v4122_v28 = vsel %vm1801_vm6, %v5666_v49, %v3399_v41  ;;  %v3935_v7 = vshrl.u32 %v3894_v18, 16  ;;  %v3944_v41 = vshll.u32 %v7321_v0, 16  ;;  %v7340_v49 = vld [vmem:[#allocation2 + $0x40] sm:$0xf]  ;;  %4988 = vmatpush.bf16.msra.mxu2 %v5647_v57 }
 0x2dc   :  { %v7328_v27 = vunpack.c.l.b16 %v4101_v5  ;;  %v5667_v5 = vld [vmem:[#allocation2 + $0x18] sm:$0xf]  ;;  %v4380_v31 = vunpack.c.l.b16 %v4122_v28  ;;  %v8210_v18 = vunpack.c.l.b16 %v7271_v56  ;;  %v3524_v28 = vpack.c.b16 %v7201_v47, %v7201_v47  ;;  %v5639_v47 = vld [vmem:[%s7940_s7 + $0xa0] sm:$0xff] }
 0x2dd   :  { %v3939_v32 = vrot.slane %v3937_v59, 1  ;;  %v3870_v6 = vunpack.c.l.b16 %v7340_v49  ;;  %v4087_v44 = vpack.c.b16 %v3869_v36, %v4071_v17  ;;  %v3946_v56 = vrot.slane %v3944_v41, 1  ;;  %v3115_v36 = vld [vmem:[#allocation2 + $0x60] sm:$0xf]  ;;  %4939 = vmatpush.bf16.msra.mxu1 %v5639_v47  ;;  %v3403_v47 = vpop.permute.xlu2 %3402 }
 0x2de   :  { %v3942_v41 = vshrl.u32 %v7321_v0, 16  ;;  %v3527_v0 = vpack.c.b16 %v7242_v37, %v7242_v37  ;;  %v5668_v37 = vld [vmem:[#allocation2 + $0x20] sm:$0xf] }
 0x2df   :  { %v3940_v2 = vor.u32 %v3939_v32, %v3935_v7  ;;  %v7361_v7 = vld [vmem:[#allocation2 + $0x48] sm:$0xf]  ;;  %v8211_v32 = vunpack.c.l.b16 %v7193_v12 }
 0x2e0   :  { %4024 = vrot.lane.b32.xlu0 %v3933_v50, %s5687_s0  ;;  %v3141_v50 = vld [vmem:[#allocation2 + $0x20] sm:$0xe] }
 0x2e1   :  { %3796 = vrot.lane.b32.xlu1 %v3779_v11, %s5687_s0  ;;  %3544 = vrot.lane.b32.xlu2 %v3525_v52, %s5687_s0  ;;  %v7334_v52 = vunpack.c.l.b16 %v3114_v60  ;;  %v5631_v60 = vld [vmem:[%s7940_s7 + $0x60] sm:$0xff] }
 0x2e2   :  { %v3401_v11 = vpop.permute.xlu1 %3400  ;;  %4890 = vmatpush.bf16.msra.mxu0 %v5631_v60  ;;  %v3872_v60 = vunpack.c.l.b16 %v7361_v7 }
 0x2e3   :  { %v4125_v54 = vsel %vm1801_vm6, %v5667_v5, %v3401_v11  ;;  %v7351_v63 = vpack.c.b16 %v8050_v35, %v7334_v52  ;;  %v4086_v11 = vpack.c.b16 %v8210_v18, %v4070_v9  ;;  %v3780_v5 = vrot.slane %v3764_v34, 1  ;;  %v3142_v35 = vld [vmem:[#allocation2 + $0x28] sm:$0xe] }
 0x2e4   :  { %v4385_v59 = vunpack.c.l.b16 %v4125_v54  ;;  %v3749_v54 = vunpack.c.l.b16 %v3141_v50  ;;  %v4103_v34 = vrot.slane %v4087_v44, 1  ;;  %v7368_v50 = vld [vmem:[#allocation2 + $0x64] sm:$0x1]  ;;  %v3750_v57 = vunpack.c.l.b16 %v3142_v35 }
 0x2e5   :  { %8209 = vst [vmem:[#allocation7_spill] sm:$0xff] %v7351_v63  ;;  %v4102_v9 = vrot.slane %v4086_v11, 1  ;;  %v4072_v18 = vunpack.c.l.b16 %v3192_v33  ;;  %v3947_v11 = vor.u32 %v3946_v56, %v3942_v41  ;;  %v8213_v56 = vunpack.c.l.b16 %v7208_v25 }
 0x2e6   :  { %v4531_v1 = vpack.c.b16 %v4385_v59, %v4380_v31  ;;  %v3765_v17 = vpack.c.b16 %v8211_v32, %v3749_v54  ;;  %v3896_v31 = vpack.c.b16 %v3871_v29, %v3870_v6  ;;  %v3177_v59 = vld [vmem:[#allocation2 + $0x4c] sm:$0x1]  ;;  %v7375_v44 = vunpack.c.l.b16 %v4103_v34  ;;  %v3193_v54 = vld [vmem:[#allocation2 + $0x48] sm:$0xe] }
 0x2e7   :  { %v7377_v12 = vunpack.c.l.b16 %v4102_v9  ;;  %v3766_v9 = vpack.c.b16 %v8213_v56, %v3750_v57  ;;  %v4073_v33 = vunpack.c.l.b16 %v3193_v54  ;;  %v4128_v41 = vsel %vm1801_vm6, %v5668_v37, %v3403_v47  ;;  %v7401_v57 = vld [vmem:[#allocation2 + $0x60] sm:$0xf]  ;;  %v5669_v56 = vld [vmem:[#allocation2 + $0x28] sm:$0xf] }
 0x2e8   :  { %3798 = vrot.lane.b32.xlu0 %v3780_v5, %s5687_s0  ;;  %4851 = vmatmul.bf16.gmra.mxu3 %v4531_v1  ;;  %v7370_v1 = vunpack.c.l.b16 %v3115_v36  ;;  %v3781_v5 = vrot.slane %v3765_v17, 1  ;;  %v3951_v35 = vshll.u32 %v3896_v31, 16  ;;  %v7393_v17 = vld [vmem:[#allocation2 + $0x6c] sm:$0x1]  ;;  %v3116_v36 = vld [vmem:[#allocation2 + $0x68] sm:$0xf]  ;;  %v3526_v25 = vpack.c.b16 %v7234_v48, %v7234_v48 }
 0x2e9   :  { %3542 = vrot.lane.b32.xlu1 %v3524_v28, %s5687_s0  ;;  %4026 = vrot.lane.b32.xlu2 %v3940_v2, %s5687_s0  ;;  %v8051_v2 = vunpack.c.l.b16 %v7368_v50  ;;  %v3873_v28 = vunpack.c.l.b16 %v3177_v59  ;;  %v4088_v59 = vpack.c.b16 %v3871_v29, %v4072_v18  ;;  %v8053_v34 = vunpack.c.l.b16 %v7393_v17  ;;  %v5646_v48 = vld [vmem:[%s7940_s7 + $0xd8] sm:$0xff] }
 0x2ea   :  { %v3953_v21 = vrot.slane %v3951_v35, 1  ;;  %v3782_v18 = vrot.slane %v3766_v9, 1  ;;  %v3949_v35 = vshrl.u32 %v3896_v31, 16  ;;  %v3874_v9 = vunpack.c.l.b16 %v7401_v57  ;;  %4989 = vmatpush.bf16.msra.mxu2 %v5646_v48  ;;  %v3144_v48 = vld [vmem:[#allocation2 + $0x38] sm:$0xe] }
 0x2eb   :  { %v7382_v6 = vpack.c.b16 %v8051_v2, %v7370_v1  ;;  %v3897_v32 = vpack.c.b16 %v3873_v28, %v3872_v60  ;;  %v3143_v2 = vld [vmem:[#allocation2 + $0x30] sm:$0xe]  ;;  %v3178_v60 = vld [vmem:[#allocation2 + $0x64] sm:$0x1] }
 0x2ed   :  { %8212 = vst [vmem:[#allocation13_spill] sm:$0xff] %v7382_v6  ;;  %v3958_v54 = vshll.u32 %v3897_v32, 16 }
 0x2f0   :  { %4028 = vrot.lane.b32.xlu0 %v3947_v11, %s5687_s0  ;;  %v7397_v11 = vunpack.c.l.b16 %v3116_v36  ;;  %v4390_v36 = vunpack.c.l.b16 %v4128_v41 }
 0x2f1   :  { %3800 = vrot.lane.b32.xlu1 %v3781_v5, %s5687_s0  ;;  %3548 = vrot.lane.b32.xlu2 %v3527_v0, %s5687_s0  ;;  %v4089_v0 = vpack.c.b16 %v3873_v28, %v4073_v33  ;;  %v5630_v28 = vld [vmem:[%s7940_s7 + $0x58] sm:$0xff]  ;;  %v4104_v33 = vrot.slane %v4088_v59, 1  ;;  %v3956_v59 = vshrl.u32 %v3897_v32, 16 }
 0x2f2   :  { %v3405_v5 = vpop.permute.xlu0 %3404  ;;  %v7407_v47 = vpack.c.b16 %v8053_v34, %v7397_v11  ;;  %v5652_v34 = vld [vmem:[%s7940_s7 + $0x108] sm:$0xff]  ;;  %4891 = vmatpush.bf16.msra.mxu0 %v5630_v28  ;;  %v7437_v28 = vld [vmem:[#allocation2 + $0x74] sm:$0x1] }
 0x2f3   :  { %v4131_v29 = vsel %vm1801_vm6, %v5669_v56, %v3405_v5  ;;  %v3751_v5 = vunpack.c.l.b16 %v3143_v2  ;;  %v3875_v56 = vunpack.c.l.b16 %v3178_v60  ;;  %v4105_v41 = vrot.slane %v4089_v0, 1  ;;  %v3194_v60 = vld [vmem:[#allocation2 + $0x60] sm:$0xe]  ;;  %v3117_v0 = vld [vmem:[#allocation2 + $0x70] sm:$0xf]  ;;  %5040 = vmatpush.bf16.msra.mxu3 %v5652_v34 }
 0x2f4   :  { %8214 = vst [vmem:[#allocation10_spill] sm:$0xff] %v7407_v47  ;;  %v4395_v37 = vunpack.c.l.b16 %v4131_v29  ;;  %v3954_v29 = vor.u32 %v3953_v21, %v3949_v35  ;;  %v7419_v47 = vunpack.c.l.b16 %v4104_v33  ;;  %v3960_v2 = vrot.slane %v3958_v54, 1  ;;  %v5638_v21 = vld [vmem:[%s7940_s7 + $0x98] sm:$0xff] }
 0x2f5   :  { %v7423_v24 = vunpack.c.l.b16 %v4105_v41  ;;  %v3898_v35 = vpack.c.b16 %v3875_v56, %v3874_v9  ;;  %v7433_v32 = vunpack.c.l.b16 %v3117_v0  ;;  %4940 = vmatpush.bf16.msra.mxu1 %v5638_v21  ;;  %v4074_v33 = vunpack.c.l.b16 %v3194_v60  ;;  %v3409_v21 = vpop.permute.xlu2 %3408 }
 0x2f6   :  { %v4536_v31 = vpack.c.b16 %v4395_v37, %v4390_v36  ;;  %8215 = vst [vmem:[#allocation33_spill] sm:$0xff] %v7419_v47  ;;  %v8217_v36 = vunpack.c.l.b16 %v7240_v22  ;;  %v3961_v41 = vor.u32 %v3960_v2, %v3956_v59  ;;  %v3752_v34 = vunpack.c.l.b16 %v3144_v48  ;;  %v5670_v2 = vld [vmem:[#allocation2 + $0x30] sm:$0xf]  ;;  %v3145_v48 = vld [vmem:[#allocation2 + $0x40] sm:$0xe] }
 0x2f7   :  { %8216 = vst [vmem:[#allocation14_spill] sm:$0xff] %v7423_v24  ;;  %v3965_v0 = vshll.u32 %v3898_v35, 16  ;;  %v3529_v60 = vpack.c.b16 %v7304_v14, %v7304_v14  ;;  %v4090_v59 = vpack.c.b16 %v3875_v56, %v4074_v33  ;;  %v5671_v47 = vld [vmem:[#allocation2 + $0x38] sm:$0xf]  ;;  %v7455_v56 = vld [vmem:[#allocation2 + $0x70] sm:$0xf] }
 0x2f8   :  { %3802 = vrot.lane.b32.xlu0 %v3782_v18, %s5687_s0  ;;  %4856 = vmatmul.bf16.gmra.mxu3 %v4536_v31  ;;  %v3767_v37 = vpack.c.b16 %v8217_v36, %v3751_v5  ;;  %v7431_v18 = vld [vmem:[#allocation2 + $0x68] sm:$0xf]  ;;  %8220 = vst [vmem:[#allocation15_spill] sm:$0xff] %v7455_v56  ;;  %v3180_v33 = vld [vmem:[#allocation2 + $0x74] sm:$0x1]  ;;  %v3963_v63 = vshrl.u32 %v3898_v35, 16 }
 0x2f9   :  { %3546 = vrot.lane.b32.xlu1 %v3526_v25, %s5687_s0  ;;  %4030 = vrot.lane.b32.xlu2 %v3954_v29, %s5687_s0  ;;  %v3179_v25 = vld [vmem:[#allocation2 + $0x6c] sm:$0x1]  ;;  %v8058_v29 = vunpack.c.l.b16 %v7437_v28  ;;  %v3876_v5 = vunpack.c.l.b16 %v7431_v18  ;;  %v3195_v31 = vld [vmem:[#allocation2 + $0x68] sm:$0xe]  ;;  %v3967_v14 = vrot.slane %v3965_v0, 1 }
 0x2fa   :  { %v3407_v22 = vpop.permute.xlu1 %3406  ;;  %v3877_v9 = vunpack.c.l.b16 %v3179_v25  ;;  %v3783_v36 = vrot.slane %v3767_v37, 1  ;;  %v4075_v37 = vunpack.c.l.b16 %v3195_v31  ;;  %v4106_v31 = vrot.slane %v4090_v59, 1 }
 0x2fb   :  { %v7444_v54 = vpack.c.b16 %v8058_v29, %v7433_v32  ;;  %v4134_v6 = vsel %vm1801_vm6, %v5670_v2, %v3407_v22  ;;  %v4137_v29 = vsel %vm1801_vm6, %v5671_v47, %v3409_v21  ;;  %v3968_v0 = vor.u32 %v3967_v14, %v3963_v63 }
 0x2fc   :  { %v3899_v25 = vpack.c.b16 %v3877_v9, %v3876_v5  ;;  %v4091_v22 = vpack.c.b16 %v3877_v9, %v4075_v37  ;;  %v4400_v2 = vunpack.c.l.b16 %v4134_v6  ;;  %v3528_v5 = vpack.c.b16 %v7273_v3, %v7273_v3  ;;  %v5629_v6 = vld [vmem:[%s7940_s7 + $0x50] sm:$0xff] }
 0x2fd   :  { %8218 = vst [vmem:[#allocation11_spill] sm:$0xff] %v7444_v54  ;;  %v8219_v54 = vunpack.c.l.b16 %v7266_v39  ;;  %v4405_v21 = vunpack.c.l.b16 %v4137_v29  ;;  %v3878_v3 = vunpack.c.l.b16 %v7455_v56  ;;  %v3879_v59 = vunpack.c.l.b16 %v3180_v33  ;;  %4892 = vmatpush.bf16.msra.mxu0 %v5629_v6  ;;  %v3146_v33 = vld [vmem:[#allocation2 + $0x58] sm:$0xe] }
 0x2fe   :  { %v3972_v39 = vshll.u32 %v3899_v25, 16  ;;  %v8224_v63 = vunpack.c.l.b16 %v7306_v46  ;;  %v3754_v46 = vunpack.c.l.b16 %v3146_v33  ;;  %v3531_v33 = vpack.c.b16 %v7370_v1, %v7370_v1 }
 0x2ff   :  { %v3768_v24 = vpack.c.b16 %v8219_v54, %v3752_v34  ;;  %v5645_v54 = vld [vmem:[%s7940_s7 + $0xd0] sm:$0xff]  ;;  %v4107_v34 = vrot.slane %v4091_v22, 1  ;;  %v4541_v37 = vpack.c.b16 %v4405_v21, %v4400_v2  ;;  %v3181_v22 = vld [vmem:[#allocation2 + $0x7c] sm:$0x1]  ;;  %v3970_v21 = vshrl.u32 %v3899_v25, 16 }
 0x300   :  { %4032 = vrot.lane.b32.xlu0 %v3961_v41, %s5687_s0  ;;  %v7457_v41 = vld [vmem:[#allocation2 + $0x7c] sm:$0x1]  ;;  %4990 = vmatpush.bf16.msra.mxu2 %v5645_v54  ;;  %v5637_v2 = vld [vmem:[%s7940_s7 + $0x90] sm:$0xff]  ;;  %v3900_v54 = vpack.c.b16 %v3879_v59, %v3878_v3 }
 0x301   :  { %3804 = vrot.lane.b32.xlu1 %v3783_v36, %s5687_s0  ;;  %3552 = vrot.lane.b32.xlu2 %v3529_v60, %s5687_s0  ;;  %v3118_v36 = vld [vmem:[#allocation2 + $0x78] sm:$0xf]  ;;  %v3753_v60 = vunpack.c.l.b16 %v3145_v48  ;;  %v8063_v47 = vunpack.c.l.b16 %v7457_v41  ;;  %v3784_v35 = vrot.slane %v3768_v24, 1  ;;  %v7476_v48 = vunpack.c.l.b16 %v4106_v31 }
 0x302   :  { %v7468_v9 = vunpack.c.l.b16 %v3118_v36  ;;  %v7478_v61 = vunpack.c.l.b16 %v4107_v34  ;;  %v3196_v36 = vld [vmem:[#allocation2 + $0x70] sm:$0xe]  ;;  %v3974_v24 = vrot.slane %v3972_v39, 1  ;;  %4941 = vmatpush.bf16.msra.mxu1 %v5637_v2  ;;  %v3119_v34 = vld [vmem:[#allocation2 + $0x80] sm:$0xf]  ;;  %v3979_v25 = vshll.u32 %v3900_v54, 16 }
 0x303   :  { %8222 = vst [vmem:[#allocation17_spill] sm:$0xff] %v7476_v48  ;;  %v3769_v14 = vpack.c.b16 %v8224_v63, %v3753_v60  ;;  %v4076_v6 = vunpack.c.l.b16 %v3196_v36  ;;  %v7492_v39 = vld [vmem:[#allocation2 + $0x84] sm:$0x1]  ;;  %v3881_v60 = vunpack.c.l.b16 %v3181_v22  ;;  %v8227_v22 = vunpack.c.l.b16 %v7324_v45  ;;  %v7513_v48 = vpop.permute.xlu2 %3414  ;;  %v7517_v45 = vld [vmem:[#allocation2 + $0x8c] sm:$0x1] }
 0x304   :  { %v7474_v29 = vpack.c.b16 %v8063_v47, %v7468_v9  ;;  %8223 = vst [vmem:[#allocation12_spill] sm:$0xff] %v7478_v61  ;;  %v3975_v63 = vor.u32 %v3974_v24, %v3970_v21  ;;  %v5672_v24 = vld [vmem:[#allocation2 + $0x50] sm:$0xf] }
 0x305   :  { %v3785_v47 = vrot.slane %v3769_v14, 1  ;;  %v4092_v2 = vpack.c.b16 %v3879_v59, %v4076_v6  ;;  %v3770_v21 = vpack.c.b16 %v8227_v22, %v3754_v46  ;;  %v7511_v59 = vld [vmem:[#allocation2 + $0x80] sm:$0xf]  ;;  %v5673_v46 = vld [vmem:[#allocation2 + $0x58] sm:$0xf]  ;;  %v3977_v22 = vshrl.u32 %v3900_v54, 16 }
 0x306   :  { %8221 = vst [vmem:[#allocation16_spill] sm:$0xff] %v7474_v29  ;;  %v3411_v29 = vpop.permute.xlu0 %3410  ;;  %v5651_v54 = vld [vmem:[%s7940_s7 + $0x100] sm:$0xff] }
 0x307   :  { %v4140_v14 = vsel %vm1801_vm6, %v5672_v24, %v3411_v29  ;;  %8228 = vst [vmem:[#allocation21_spill] sm:$0xff] %v7511_v59  ;;  %v4108_v6 = vrot.slane %v4092_v2, 1  ;;  %v3530_v29 = vpack.c.b16 %v7334_v52, %v7334_v52  ;;  %v3182_v24 = vld [vmem:[#allocation2 + $0x84] sm:$0x1]  ;;  %v5628_v52 = vld [vmem:[%s7940_s7 + $0x48] sm:$0xff]  ;;  %5041 = vmatpush.bf16.msra.mxu3 %v5651_v54 }
 0x308   :  { %3806 = vrot.lane.b32.xlu0 %v3784_v35, %s5687_s0  ;;  %4861 = vmatmul.bf16.gmra.mxu3 %v4541_v37  ;;  %v7494_v35 = vunpack.c.l.b16 %v3119_v34  ;;  %v3197_v37 = vld [vmem:[#allocation2 + $0x78] sm:$0xe] }
 0x309   :  { %3550 = vrot.lane.b32.xlu1 %v3528_v5, %s5687_s0  ;;  %4034 = vrot.lane.b32.xlu2 %v3968_v0, %s5687_s0  ;;  %v7490_v5 = vld [vmem:[#allocation2 + $0x78] sm:$0xf]  ;;  %v8065_v0 = vunpack.c.l.b16 %v7492_v39  ;;  %v4077_v31 = vunpack.c.l.b16 %v3197_v37  ;;  %v3147_v37 = vld [vmem:[#allocation2 + $0x60] sm:$0xe] }
 0x30a   :  { %8225 = vst [vmem:[#allocation20_spill] sm:$0xff] %v7490_v5  ;;  %v3880_v3 = vunpack.c.l.b16 %v7490_v5  ;;  %v3198_v5 = vld [vmem:[#allocation2 + $0x80] sm:$0xe]  ;;  %4893 = vmatpush.bf16.msra.mxu0 %v5628_v52 }
 0x30b   :  { %v7501_v36 = vpack.c.b16 %v8065_v0, %v7494_v35  ;;  %v4093_v34 = vpack.c.b16 %v3881_v60, %v4077_v31  ;;  %v3981_v0 = vrot.slane %v3979_v25, 1  ;;  %v3120_v31 = vld [vmem:[#allocation2 + $0x88] sm:$0xf]  ;;  %v3786_v25 = vrot.slane %v3770_v21, 1 }
 0x30c   :  { %v3882_v21 = vunpack.c.l.b16 %v7511_v59  ;;  %v8231_v59 = vunpack.c.l.b16 %v7517_v45 }
 0x30d   :  { %8226 = vst [vmem:[#allocation18_spill] sm:$0xff] %v7501_v36  ;;  %v3901_v36 = vpack.c.b16 %v3881_v60, %v3880_v3  ;;  %v4109_v1 = vrot.slane %v4093_v34, 1  ;;  %v3755_v60 = vunpack.c.l.b16 %v3147_v37  ;;  %v7527_v34 = vunpack.c.l.b16 %v3120_v31  ;;  %v3183_v31 = vld [vmem:[#allocation2 + $0x8c] sm:$0x1] }
 0x30e   :  { %v3883_v37 = vunpack.c.l.b16 %v3182_v24  ;;  %v3885_v52 = vunpack.c.l.b16 %v3183_v31 }
 0x30f   :  { %v7529_v61 = vunpack.c.l.b16 %v4109_v1  ;;  %v3148_v1 = vld [vmem:[#allocation2 + $0x68] sm:$0xe]  ;;  %v7542_v24 = vpack.c.b16 %v8231_v59, %v7527_v34 }
 0x310   :  { %4036 = vrot.lane.b32.xlu0 %v3975_v63, %s5687_s0  ;;  %v3756_v59 = vunpack.c.l.b16 %v3148_v1 }
 0x311   :  { %3808 = vrot.lane.b32.xlu1 %v3785_v47, %s5687_s0  ;;  %3556 = vrot.lane.b32.xlu2 %v3531_v33, %s5687_s0  ;;  %v4410_v47 = vunpack.c.l.b16 %v4140_v14  ;;  %v5644_v14 = vld [vmem:[%s7940_s7 + $0xc8] sm:$0xff]  ;;  %8229 = vst [vmem:[#allocation19_spill] sm:$0xff] %v7529_v61 }
 0x312   :  { %v3413_v63 = vpop.permute.xlu1 %3412  ;;  %4991 = vmatpush.bf16.msra.mxu2 %v5644_v14  ;;  %8232 = vst [vmem:[#allocation24_spill] sm:$0xff] %v7542_v24  ;;  %v7554_v14 = vld [vmem:[#allocation2 + $0x88] sm:$0xf] }
 0x313   :  { %v4143_v33 = vsel %vm1801_vm6, %v5673_v46, %v3413_v63  ;;  %v3986_v63 = vshll.u32 %v3901_v36, 16  ;;  %v7535_v46 = vunpack.c.l.b16 %v4108_v6  ;;  %v4078_v6 = vunpack.c.l.b16 %v3198_v5  ;;  %8234 = vst [vmem:[#allocation25_spill] sm:$0xff] %v7554_v14 }
 0x314   :  { %v4415_v2 = vunpack.c.l.b16 %v4143_v33  ;;  %v3982_v33 = vor.u32 %v3981_v0, %v3977_v22  ;;  %v5636_v0 = vld [vmem:[%s7940_s7 + $0x88] sm:$0xff]  ;;  %v3984_v5 = vshrl.u32 %v3901_v36, 16  ;;  %v3121_v36 = vld [vmem:[#allocation2 + $0x90] sm:$0xf] }
 0x315   :  { %8230 = vst [vmem:[#allocation23_spill] sm:$0xff] %v7535_v46  ;;  %4942 = vmatpush.bf16.msra.mxu1 %v5636_v0 }
 0x316   :  { %v4546_v3 = vpack.c.b16 %v4415_v2, %v4410_v47  ;;  %v3988_v47 = vrot.slane %v3986_v63, 1  ;;  %v3902_v2 = vpack.c.b16 %v3883_v37, %v3882_v21  ;;  %v3884_v63 = vunpack.c.l.b16 %v7554_v14 }
 0x318   :  { %3810 = vrot.lane.b32.xlu0 %v3786_v25, %s5687_s0  ;;  %4866 = vmatmul.bf16.gmra.mxu3 %v4546_v3  ;;  %v4094_v3 = vpack.c.b16 %v3883_v37, %v4078_v6  ;;  %v3989_v24 = vor.u32 %v3988_v47, %v3984_v5  ;;  %v3993_v61 = vshll.u32 %v3902_v2, 16  ;;  %v3149_v37 = vld [vmem:[#allocation2 + $0x70] sm:$0xe]  ;;  %v5674_v6 = vld [vmem:[#allocation2 + $0x60] sm:$0xf] }
 0x319   :  { %3554 = vrot.lane.b32.xlu1 %v3530_v29, %s5687_s0  ;;  %4038 = vrot.lane.b32.xlu2 %v3982_v33, %s5687_s0  ;;  %v8233_v29 = vunpack.c.l.b16 %v7368_v50  ;;  %v3199_v33 = vld [vmem:[#allocation2 + $0x88] sm:$0xe]  ;;  %v3533_v50 = vpack.c.b16 %v7433_v32, %v7433_v32  ;;  %v4146_v0 = vsel %vm1801_vm6, %v5674_v6, %v7513_v48  ;;  %v3903_v32 = vpack.c.b16 %v3885_v52, %v3884_v63 }
 0x31a   :  { %v4079_v56 = vunpack.c.l.b16 %v3199_v33  ;;  %v4110_v1 = vrot.slane %v4094_v3, 1  ;;  %v3995_v47 = vrot.slane %v3993_v61, 1  ;;  %v5675_v33 = vld [vmem:[#allocation2 + $0x68] sm:$0xf]  ;;  %v3757_v48 = vunpack.c.l.b16 %v3149_v37  ;;  %v7575_v61 = vld [vmem:[#allocation2 + $0x90] sm:$0xf] }
 0x31b   :  { %v3771_v25 = vpack.c.b16 %v8233_v29, %v3755_v60  ;;  %v7552_v22 = vpop.permute.xlu2 %3420  ;;  %v8235_v60 = vunpack.c.l.b16 %v7393_v17  ;;  %v3184_v29 = vld [vmem:[#allocation2 + $0x94] sm:$0x1]  ;;  %8237 = vst [vmem:[#allocation30_spill] sm:$0xff] %v7575_v61  ;;  %v4000_v14 = vshll.u32 %v3903_v32, 16  ;;  %v5627_v37 = vld [vmem:[%s7940_s7 + $0x40] sm:$0xff] }
 0x31c   :  { %v4095_v54 = vpack.c.b16 %v3885_v52, %v4079_v56  ;;  %v7577_v52 = vld [vmem:[#allocation2 + $0x94] sm:$0x1]  ;;  %v7579_v63 = vunpack.c.l.b16 %v4110_v1  ;;  %v8240_v1 = vunpack.c.l.b16 %v7437_v28  ;;  %4894 = vmatpush.bf16.msra.mxu0 %v5627_v37 }
 0x31d   :  { %v3787_v46 = vrot.slane %v3771_v25, 1  ;;  %v3772_v21 = vpack.c.b16 %v8235_v60, %v3756_v59  ;;  %v7568_v59 = vunpack.c.l.b16 %v3121_v36  ;;  %v3200_v60 = vld [vmem:[#allocation2 + $0x90] sm:$0xe]  ;;  %v8076_v36 = vunpack.c.l.b16 %v7577_v52 }
 0x31e   :  { %v4111_v31 = vrot.slane %v4095_v54, 1  ;;  %8238 = vst [vmem:[#allocation26_spill] sm:$0xff] %v7579_v63  ;;  %v3887_v54 = vunpack.c.l.b16 %v3184_v29  ;;  %v3886_v29 = vunpack.c.l.b16 %v7575_v61 }
 0x31f   :  { %v3788_v25 = vrot.slane %v3772_v21, 1 }
 0x320   :  { %4040 = vrot.lane.b32.xlu0 %v3989_v24, %s5687_s0  ;;  %v3991_v24 = vshrl.u32 %v3902_v2, 16  ;;  %v7570_v5 = vunpack.c.l.b16 %v4111_v31  ;;  %v4420_v2 = vunpack.c.l.b16 %v4146_v0  ;;  %v3201_v31 = vld [vmem:[#allocation2 + $0x98] sm:$0xe] }
 0x321   :  { %3812 = vrot.lane.b32.xlu1 %v3787_v46, %s5687_s0  ;;  %3560 = vrot.lane.b32.xlu2 %v3533_v50, %s5687_s0  ;;  %v3185_v46 = vld [vmem:[#allocation2 + $0x9c] sm:$0x1]  ;;  %v3532_v50 = vpack.c.b16 %v7397_v11, %v7397_v11  ;;  %v5643_v11 = vld [vmem:[%s7940_s7 + $0xc0] sm:$0xff] }
 0x322   :  { %8236 = vst [vmem:[#allocation22_spill] sm:$0xff] %v7570_v5  ;;  %v3996_v6 = vor.u32 %v3995_v47, %v3991_v24  ;;  %v7594_v47 = vpack.c.b16 %v8076_v36, %v7568_v59  ;;  %v4080_v24 = vunpack.c.l.b16 %v3200_v60  ;;  %v3773_v36 = vpack.c.b16 %v8240_v1, %v3757_v48  ;;  %4992 = vmatpush.bf16.msra.mxu2 %v5643_v11 }
 0x323   :  { %v7566_v17 = vpop.permute.xlu2 %4018  ;;  %v3417_v56 = vpop.permute.xlu0 %3416  ;;  %v3535_v11 = vpack.c.b16 %v7494_v35, %v7494_v35  ;;  %v8241_v35 = vunpack.c.l.b16 %v7457_v41 }
 0x324   :  { %v4149_v3 = vsel %vm1801_vm6, %v5675_v33, %v3417_v56  ;;  %v3889_v56 = vunpack.c.l.b16 %v3185_v46  ;;  %8239 = vst [vmem:[#allocation31_spill] sm:$0xff] %v7594_v47  ;;  %v4081_v46 = vunpack.c.l.b16 %v3201_v31  ;;  %v7599_v33 = vld [vmem:[#allocation2 + $0x98] sm:$0xf] }
 0x325   :  { %v4425_v21 = vunpack.c.l.b16 %v4149_v3  ;;  %v5635_v3 = vld [vmem:[%s7940_s7 + $0x80] sm:$0xff]  ;;  %v3150_v31 = vld [vmem:[#allocation2 + $0x78] sm:$0xe]  ;;  %v3888_v47 = vunpack.c.l.b16 %v7599_v33 }
 0x326   :  { %4943 = vmatpush.bf16.msra.mxu1 %v5635_v3  ;;  %v3758_v28 = vunpack.c.l.b16 %v3150_v31 }
 0x327   :  { %v4551_v0 = vpack.c.b16 %v4425_v21, %v4420_v2  ;;  %v4096_v2 = vpack.c.b16 %v3887_v54, %v4080_v24  ;;  %v4002_v21 = vrot.slane %v4000_v14, 1  ;;  %v3789_v24 = vrot.slane %v3773_v36, 1  ;;  %v5677_v36 = vld [vmem:[#allocation2 + $0x78] sm:$0xf] }
 0x328   :  { %3814 = vrot.lane.b32.xlu0 %v3788_v25, %s5687_s0  ;;  %v4097_v25 = vpack.c.b16 %v3889_v56, %v4081_v46  ;;  %v3774_v46 = vpack.c.b16 %v8241_v35, %v3758_v28 }
 0x329   :  { %3558 = vrot.lane.b32.xlu1 %v3532_v50, %s5687_s0  ;;  %4042 = vrot.lane.b32.xlu2 %v3996_v6, %s5687_s0  ;;  %v3904_v50 = vpack.c.b16 %v3887_v54, %v3886_v29  ;;  %v4112_v6 = vrot.slane %v4096_v2, 1  ;;  %v5676_v54 = vld [vmem:[#allocation2 + $0x70] sm:$0xf] }
 0x32a   :  { %4871 = vmatmul.bf16.gmra.mxu3 %v4551_v0  ;;  %v3998_v0 = vshrl.u32 %v3903_v32, 16  ;;  %v4113_v63 = vrot.slane %v4097_v25, 1  ;;  %v3419_v5 = vpop.permute.xlu1 %3418  ;;  %v3905_v32 = vpack.c.b16 %v3889_v56, %v3888_v47  ;;  %v3790_v47 = vrot.slane %v3774_v46, 1 }
 0x32b   :  { %v7606_v60 = vpop.permute.xlu2 %3540  ;;  %v7609_v61 = vunpack.c.l.b16 %v4112_v6  ;;  %v4007_v37 = vshll.u32 %v3904_v50, 16  ;;  %v4152_v1 = vsel %vm1801_vm6, %v5676_v54, %v3419_v5  ;;  %v4005_v56 = vshrl.u32 %v3904_v50, 16  ;;  %v3091_v54 = vld [vmem:[#allocation2 + $0x8] sm:$0xe] }
 0x32c   :  { %v4003_v14 = vor.u32 %v4002_v21, %v3998_v0  ;;  %v7611_v48 = vunpack.c.l.b16 %v4113_v63  ;;  %v4155_v63 = vsel %vm1801_vm6, %v5677_v36, %v7552_v22  ;;  %v4430_v3 = vunpack.c.l.b16 %v4152_v1  ;;  %v3151_v21 = vld [vmem:[#allocation2 + $0x80] sm:$0xe] }
 0x32d   :  { %v4009_v5 = vrot.slane %v4007_v37, 1  ;;  %v4014_v25 = vshll.u32 %v3905_v32, 16  ;;  %v4435_v31 = vunpack.c.l.b16 %v4155_v63  ;;  %v3534_v6 = vpack.c.b16 %v7468_v9, %v7468_v9  ;;  %v3152_v37 = vld [vmem:[#allocation2 + $0x88] sm:$0xe]  ;;  %v3090_v9 = vld [vmem:[#allocation2] sm:$0xe] }
 0x32e   :  { %v4565_v29 = vpack.c.b16 %v7611_v48, %v7609_v61  ;;  %v3759_v0 = vunpack.c.l.b16 %v3151_v21  ;;  %v4012_v41 = vshrl.u32 %v3905_v32, 16  ;;  %v3760_v35 = vunpack.c.l.b16 %v3152_v37  ;;  %v5679_v21 = vld [vmem:[#allocation2 + $0x80] sm:$0xf] }
 0x32f   :  { %v4016_v22 = vrot.slane %v4014_v25, 1  ;;  %v3443_v46 = vunpack.c.l.b16 %v3091_v54  ;;  %v3537_v32 = vpack.c.b16 %v7568_v59, %v7568_v59  ;;  %v8244_v59 = vunpack.c.l.b16 %v6942_v20 }
 0x330   :  { %4044 = vrot.lane.b32.xlu0 %v4003_v14, %s5687_s0  ;;  %v4010_v14 = vor.u32 %v4009_v5, %v4005_v56  ;;  %v5678_v5 = vld [vmem:[#allocation2 + $0x10] sm:$0xf] }
 0x331   :  { %3816 = vrot.lane.b32.xlu1 %v3789_v24, %s5687_s0  ;;  %3564 = vrot.lane.b32.xlu2 %v3535_v11, %s5687_s0  ;;  %v4556_v24 = vpack.c.b16 %v4435_v31, %v4430_v3  ;;  %v8242_v11 = vunpack.c.l.b16 %v7492_v39  ;;  %v4017_v1 = vor.u32 %v4016_v22, %v4012_v41  ;;  %v3442_v3 = vunpack.c.l.b16 %v3090_v9  ;;  %v5681_v41 = vld [vmem:[#allocation2 + $0x18] sm:$0xf] }
 0x332   :  { %v4260_v39 = vsel %vm1801_vm6, %v5678_v5, %v7566_v17  ;;  %v8245_v17 = vunpack.c.l.b16 %v6903_v38 }
 0x333   :  { %v7625_v2 = vpop.permute.xlu2 %4022  ;;  %v3775_v50 = vpack.c.b16 %v8242_v11, %v3759_v0  ;;  %v3459_v0 = vpack.c.b16 %v8244_v59, %v3443_v46  ;;  %v3093_v59 = vld [vmem:[#allocation2 + $0x18] sm:$0xe] }
 0x334   :  { %v3458_v11 = vpack.c.b16 %v8245_v17, %v3442_v3  ;;  %v3445_v17 = vunpack.c.l.b16 %v3093_v59 }
 0x335   :  { %v3791_v63 = vrot.slane %v3775_v50, 1  ;;  %v4373_v50 = vunpack.c.l.b16 %v4260_v39  ;;  %v3475_v46 = vrot.slane %v3459_v0, 1 }
 0x336   :  { %v3474_v5 = vrot.slane %v3458_v11, 1 }
 0x337   :  { %v4167_v38 = vsel %vm1801_vm6, %v3475_v46, %v7606_v60 }
 0x338   :  { %3818 = vrot.lane.b32.xlu0 %v3790_v47, %s5687_s0  ;;  %v8243_v47 = vunpack.c.l.b16 %v7517_v45  ;;  %v3536_v45 = vpack.c.b16 %v7527_v34, %v7527_v34  ;;  %v3628_v34 = vshll.u32 %v7171_v30, 16 }
 0x339   :  { %3562 = vrot.lane.b32.xlu1 %v3534_v6, %s5687_s0  ;;  %4046 = vrot.lane.b32.xlu2 %v4010_v14, %s5687_s0  ;;  %v5680_v14 = vld [vmem:[#allocation2 + $0x88] sm:$0xf] }
 0x33a   :  { %4876 = vmatmul.bf16.gmra.mxu3 %v4556_v24  ;;  %v3423_v28 = vpop.permute.xlu0 %3422  ;;  %v3776_v6 = vpack.c.b16 %v8243_v47, %v3760_v35 }
 0x33b   :  { %v7634_v36 = vpop.permute.xlu2 %3544  ;;  %v4158_v25 = vsel %vm1801_vm6, %v5679_v21, %v3423_v28  ;;  %v3153_v28 = vld [vmem:[#allocation2 + $0x90] sm:$0xe]  ;;  %v3621_v21 = vshll.u32 %v7104_v42, 16 }
 0x33c   :  { %v4440_v37 = vunpack.c.l.b16 %v4158_v25  ;;  %v3792_v20 = vrot.slane %v3776_v6, 1  ;;  %v3761_v35 = vunpack.c.l.b16 %v3153_v28  ;;  %v8246_v25 = vunpack.c.l.b16 %v7577_v52  ;;  %v5682_v52 = vld [vmem:[#allocation2 + $0x20] sm:$0xf] }
 0x33d   :  { %v3623_v47 = vrot.slane %v3621_v21, 1  ;;  %v4376_v6 = vunpack.c.l.b16 %v4167_v38  ;;  %v3626_v28 = vshrl.u32 %v7171_v30, 16 }
 0x340   :  { %4048 = vrot.lane.b32.xlu0 %v4017_v1, %s5687_s0 }
 0x341   :  { %3820 = vrot.lane.b32.xlu1 %v3791_v63, %s5687_s0  ;;  %3568 = vrot.lane.b32.xlu2 %v3537_v32, %s5687_s0 }
 0x342   :  { %v4021_v56 = vpop.permute.xlu0 %4020 }
 0x343   :  { %v3425_v31 = vpop.permute.xlu1 %3424  ;;  %v4263_v22 = vsel %vm1801_vm6, %v5681_v41, %v4021_v56  ;;  %v7654_v32 = vpop.permute.xlu2 %4026 }
 0x344   :  { %v4161_v24 = vsel %vm1801_vm6, %v5680_v14, %v3425_v31  ;;  %v4378_v1 = vunpack.c.l.b16 %v4263_v22  ;;  %v3777_v31 = vpack.c.b16 %v8246_v25, %v3761_v35  ;;  %v3619_v14 = vshrl.u32 %v7104_v42, 16  ;;  %v3092_v22 = vld [vmem:[#allocation2 + $0x10] sm:$0xe]  ;;  %v5683_v35 = vld [vmem:[#allocation2 + $0x28] sm:$0xf] }
 0x345   :  { %v4445_v54 = vunpack.c.l.b16 %v4161_v24  ;;  %v3630_v24 = vrot.slane %v3628_v34, 1  ;;  %v8248_v34 = vunpack.c.l.b16 %v6959_v62  ;;  %v3642_v62 = vshll.u32 %v7228_v55, 16 }
 0x346   :  { %v4529_v9 = vpack.c.b16 %v4378_v1, %v4373_v50  ;;  %v3793_v60 = vrot.slane %v3777_v31, 1  ;;  %v3624_v11 = vor.u32 %v3623_v47, %v3619_v14  ;;  %v4266_v50 = vsel %vm1801_vm6, %v5682_v52, %v7625_v2  ;;  %v7682_v47 = vpop.f32.mrf.mxu3 }
 0x347   :  { %v4561_v63 = vpack.c.b16 %v4445_v54, %v4440_v37  ;;  %v3631_v42 = vor.u32 %v3630_v24, %v3626_v28  ;;  %v3444_v1 = vunpack.c.l.b16 %v3092_v22  ;;  %v3644_v28 = vrot.slane %v3642_v62, 1 }
 0x348   :  { %3822 = vrot.lane.b32.xlu0 %v3792_v20, %s5687_s0  ;;  %4993 = vmatmul.bf16.vlgmr.msra.gmra.mxu2 %v4529_v9  ;;  %v8247_v20 = vunpack.c.l.b16 %v6974_v40 }
 0x349   :  { %3566 = vrot.lane.b32.xlu1 %v3536_v45, %s5687_s0 }
 0x34a   :  { %4881 = vmatmul.bf16.gmra.mxu3 %v4561_v63  ;;  %v3795_v39 = vpop.permute.xlu0 %3794  ;;  %v3461_v63 = vpack.c.b16 %v8247_v20, %v3445_v17  ;;  %v3095_v17 = vld [vmem:[#allocation2 + $0x28] sm:$0xe] }
 0x34b   :  { %v3539_v3 = vpop.permute.xlu1 %3538  ;;  %v7670_v37 = vpop.permute.xlu2 %3548  ;;  %v4212_v54 = vsel %vm1801_vm6, %v3624_v11, %v3795_v39  ;;  %v3633_v11 = vshrl.u32 %v7222_v4, 16 }
 0x34c   :  { %v4164_v56 = vsel %vm1801_vm6, %v3474_v5, %v3539_v3  ;;  %v4383_v5 = vunpack.c.l.b16 %v4266_v50  ;;  %v4372_v21 = vunpack.c.l.b16 %v4212_v54  ;;  %v3460_v3 = vpack.c.b16 %v8248_v34, %v3444_v1  ;;  %v3094_v50 = vld [vmem:[#allocation2 + $0x20] sm:$0xe] }
 0x34d   :  { %v4371_v0 = vunpack.c.l.b16 %v4164_v56  ;;  %v3477_v31 = vrot.slane %v3461_v63, 1  ;;  %v3635_v56 = vshll.u32 %v7222_v4, 16  ;;  %v3640_v54 = vshrl.u32 %v7228_v55, 16 }
 0x34e   :  { %v3476_v59 = vrot.slane %v3460_v3, 1  ;;  %v3446_v20 = vunpack.c.l.b16 %v3094_v50  ;;  %v8250_v4 = vunpack.c.l.b16 %v7007_v13  ;;  %v3649_v13 = vshll.u32 %v7252_v43, 16 }
 0x34f   :  { %v4527_v41 = vpack.c.b16 %v4376_v6, %v4371_v0  ;;  %v4173_v40 = vsel %vm1801_vm6, %v3477_v31, %v7634_v36  ;;  %v8249_v6 = vpack.c.b16 %v7151_v23, %v7149_v16  ;;  %v3447_v16 = vunpack.c.l.b16 %v3095_v17  ;;  %v3097_v17 = vld [vmem:[#allocation2 + $0x38] sm:$0xe] }
 0x350   :  { %v4386_v22 = vunpack.c.l.b16 %v4173_v40 }
 0x351   :  { %3824 = vrot.lane.b32.xlu1 %v3793_v60, %s5687_s0  ;;  %4895 = vmatmul.bf16.vlgmr.msra.gmra.mxu0 %v4527_v41  ;;  %v3637_v60 = vrot.slane %v3635_v56, 1 }
 0x352   :  { %v4025_v9 = vpop.permute.xlu0 %4024 }
 0x353   :  { %v3797_v45 = vpop.permute.xlu1 %3796  ;;  %v4269_v46 = vsel %vm1801_vm6, %v5683_v35, %v4025_v9  ;;  %v4031_v24 = vpop.permute.xlu2 %4030  ;;  %v3638_v23 = vor.u32 %v3637_v60, %v3633_v11  ;;  %v3645_v9 = vor.u32 %v3644_v28, %v3640_v54  ;;  %v3463_v35 = vpack.c.b16 %v8250_v4, %v3447_v16 }
 0x354   :  { %v4215_v30 = vsel %vm1801_vm6, %v3631_v42, %v3797_v45  ;;  %v4388_v2 = vunpack.c.l.b16 %v4269_v46  ;;  %v5684_v42 = vld [vmem:[#allocation2 + $0x30] sm:$0xf]  ;;  %v3651_v60 = vrot.slane %v3649_v13, 1  ;;  %v4278_v54 = vsel %vm1801_vm6, %v7340_v49, %v4031_v24 }
 0x355   :  { %v4377_v38 = vunpack.c.l.b16 %v4215_v30  ;;  %v4272_v1 = vsel %vm1801_vm6, %v5684_v42, %v7654_v32  ;;  %v3479_v40 = vrot.slane %v3463_v35, 1  ;;  %v4403_v35 = vunpack.c.l.b16 %v4278_v54 }
 0x356   :  { %v4534_v25 = vpack.c.b16 %v4388_v2, %v4383_v5  ;;  %v5685_v5 = vld [vmem:[#allocation2 + $0x38] sm:$0xf]  ;;  %v4393_v55 = vunpack.c.l.b16 %v4272_v1  ;;  %v8254_v49 = vunpack.c.l.b16 %v7023_v10 }
 0x357   :  { %v4528_v39 = vpack.c.b16 %v4377_v38, %v4372_v21  ;;  %v7699_v38 = vpop.f32.mrf.mxu3 }
 0x358   :  { %4998 = vmatmul.bf16.gmra.mxu2 %v4534_v25 }
 0x359   :  { %4944 = vmatmul.bf16.vlgmr.msra.gmra.mxu1 %v4528_v39  ;;  %v8251_v39 = vunpack.c.l.b16 %v6992_v26 }
 0x35a   :  { %5543 = vmatmul.msk.bf16.vlgmr.msra.gmra.mxu3 %vm1801_vm6, %v8249_v6  ;;  %v3799_v14 = vpop.permute.xlu0 %3798  ;;  %v4179_v6 = vsel %vm1801_vm6, %v3479_v40, %v7670_v37  ;;  %v3647_v37 = vshrl.u32 %v7252_v43, 16  ;;  %v8253_v43 = vunpack.c.l.b16 %v7036_v53  ;;  %v3663_v53 = vshll.u32 %v7289_v58, 16 }
 0x35b   :  { %v3543_v0 = vpop.permute.xlu1 %3542  ;;  %v4218_v45 = vsel %vm1801_vm6, %v3638_v23, %v3799_v14  ;;  %v3553_v3 = vpop.permute.xlu2 %3552  ;;  %v3462_v25 = vpack.c.b16 %v8251_v39, %v3446_v20  ;;  %v3654_v23 = vshrl.u32 %v7259_v15, 16 }
 0x35c   :  { %v4170_v41 = vsel %vm1801_vm6, %v3476_v59, %v3543_v0  ;;  %v4382_v2 = vunpack.c.l.b16 %v4218_v45  ;;  %v8252_v59 = vpack.c.b16 %v7328_v27, %v7326_v51  ;;  %v3656_v0 = vshll.u32 %v7259_v15, 16  ;;  %v3096_v51 = vld [vmem:[#allocation2 + $0x30] sm:$0xe] }
 0x35d   :  { %v4381_v36 = vunpack.c.l.b16 %v4170_v41  ;;  %v3478_v62 = vrot.slane %v3462_v25, 1  ;;  %v3449_v27 = vunpack.c.l.b16 %v3097_v17  ;;  %v3652_v16 = vor.u32 %v3651_v60, %v3647_v37 }
 0x35e   :  { %v3658_v28 = vrot.slane %v3656_v0, 1  ;;  %v3448_v45 = vunpack.c.l.b16 %v3096_v51  ;;  %v3665_v13 = vrot.slane %v3663_v53, 1  ;;  %v3668_v60 = vshrl.u32 %v7315_v19, 16 }
 0x35f   :  { %v4532_v52 = vpack.c.b16 %v4386_v22, %v4381_v36  ;;  %v4396_v22 = vunpack.c.l.b16 %v4179_v6  ;;  %v8256_v51 = vunpack.c.l.b16 %v7063_v8 }
 0x360   :  { %v3659_v1 = vor.u32 %v3658_v28, %v3654_v23  ;;  %v3464_v24 = vpack.c.b16 %v8254_v49, %v3448_v45 }
 0x361   :  { %4900 = vmatmul.bf16.gmra.mxu0 %v4532_v52 }
 0x362   :  { %v4029_v30 = vpop.permute.xlu0 %4028  ;;  %v3480_v25 = vrot.slane %v3464_v24, 1 }
 0x363   :  { %v3801_v63 = vpop.permute.xlu1 %3800  ;;  %v4275_v21 = vsel %vm1801_vm6, %v5685_v5, %v4029_v30  ;;  %v4035_v50 = vpop.permute.xlu2 %4034 }
 0x364   :  { %v4221_v46 = vsel %vm1801_vm6, %v3645_v9, %v3801_v63  ;;  %v4398_v32 = vunpack.c.l.b16 %v4275_v21  ;;  %v3465_v63 = vpack.c.b16 %v8253_v43, %v3449_v27  ;;  %v4284_v17 = vsel %vm1801_vm6, %v7401_v57, %v4035_v50 }
 0x365   :  { %v4387_v34 = vunpack.c.l.b16 %v4221_v46 }
 0x366   :  { %v4539_v56 = vpack.c.b16 %v4398_v32, %v4393_v55 }
 0x367   :  { %v4533_v31 = vpack.c.b16 %v4387_v34, %v4382_v2  ;;  %v3481_v34 = vrot.slane %v3465_v63, 1 }
 0x368   :  { %5003 = vmatmul.bf16.gmra.mxu2 %v4539_v56 }
 0x369   :  { %4949 = vmatmul.bf16.gmra.mxu1 %v4533_v31  ;;  %v4185_v32 = vsel %vm1801_vm6, %v3481_v34, %v3553_v3  ;;  %v3670_v31 = vshll.u32 %v7315_v19, 16  ;;  %v3098_v3 = vld [vmem:[#allocation2 + $0x50] sm:$0xe] }
 0x36a   :  { %5544 = vmatmul.msk.bf16.gmra.mxu3 %vm1801_vm6, %v8252_v59  ;;  %v3803_v14 = vpop.permute.xlu0 %3802  ;;  %v4406_v6 = vunpack.c.l.b16 %v4185_v32  ;;  %v3099_v59 = vld [vmem:[#allocation2 + $0x58] sm:$0xe]  ;;  %v8257_v19 = vld [vmem:[#allocation5_spill] sm:$0xff]  ;;  %v3101_v32 = vld [vmem:[#allocation2 + $0x68] sm:$0xe] }
 0x36b   :  { %v3547_v26 = vpop.permute.xlu1 %3546  ;;  %v7712_v11 = vpop.f32.mrf.mxu3  ;;  %v4224_v42 = vsel %vm1801_vm6, %v3652_v16, %v3803_v14  ;;  %v3672_v14 = vrot.slane %v3670_v31, 1  ;;  %v8258_v54 = vunpack.c.l.b16 %v8257_v19 }
 0x36c   :  { %v4176_v41 = vsel %vm1801_vm6, %v3478_v62, %v3547_v26  ;;  %v4392_v15 = vunpack.c.l.b16 %v4224_v42  ;;  %v3557_v39 = vpop.permute.xlu2 %3556  ;;  %v3661_v26 = vshrl.u32 %v7289_v58, 16 }
 0x36d   :  { %v4391_v36 = vunpack.c.l.b16 %v4176_v41  ;;  %v3673_v37 = vor.u32 %v3672_v14, %v3668_v60  ;;  %v8265_v60 = vld [vmem:[#allocation8_spill] sm:$0xff] }
 0x36e   :  { %v3666_v41 = vor.u32 %v3665_v13, %v3661_v26  ;;  %v3453_v13 = vunpack.c.l.b16 %v3101_v32 }
 0x36f   :  { %v4537_v52 = vpack.c.b16 %v4396_v22, %v4391_v36  ;;  %v3450_v22 = vunpack.c.l.b16 %v3098_v3 }
 0x371   :  { %4905 = vmatmul.bf16.gmra.mxu0 %v4537_v52  ;;  %v3466_v42 = vpack.c.b16 %v8258_v54, %v3450_v22  ;;  %v8266_v22 = vunpack.c.l.b16 %v8265_v60 }
 0x372   :  { %v4033_v20 = vpop.permute.xlu0 %4032 }
 0x373   :  { %v3805_v9 = vpop.permute.xlu1 %3804  ;;  %v4281_v4 = vsel %vm1801_vm6, %v7361_v7, %v4033_v20  ;;  %v7724_v21 = vpop.f32.mrf.mxu3  ;;  %v8255_v7 = vpack.c.b16 %v7375_v44, %v7377_v12  ;;  %v3451_v12 = vunpack.c.l.b16 %v3099_v59  ;;  %v3482_v8 = vrot.slane %v3466_v42, 1 }
 0x374   :  { %v4227_v30 = vsel %vm1801_vm6, %v3659_v1, %v3805_v9  ;;  %v4408_v5 = vunpack.c.l.b16 %v4281_v4  ;;  %v4039_v58 = vpop.permute.xlu2 %4038  ;;  %v4413_v1 = vunpack.c.l.b16 %v4284_v17  ;;  %v3469_v17 = vpack.c.b16 %v8266_v22, %v3453_v13  ;;  %v8278_v22 = vld [vmem:[#allocation25_spill] sm:$0xff] }
 0x375   :  { %v4397_v46 = vunpack.c.l.b16 %v4227_v30  ;;  %v3467_v27 = vpack.c.b16 %v8256_v51, %v3451_v12  ;;  %v8259_v30 = vld [vmem:[#allocation7_spill] sm:$0xff] }
 0x376   :  { %v4544_v2 = vpack.c.b16 %v4408_v5, %v4403_v35  ;;  %v3677_v4 = vshll.u32 %v8259_v30, 16  ;;  %v8263_v5 = vld [vmem:[#allocation13_spill] sm:$0xff] }
 0x377   :  { %v4538_v55 = vpack.c.b16 %v4397_v46, %v4392_v15  ;;  %v3483_v63 = vrot.slane %v3467_v27, 1  ;;  %v8261_v15 = vld [vmem:[#allocation33_spill] sm:$0xff]  ;;  %v3684_v49 = vshll.u32 %v8263_v5, 16  ;;  %v3682_v59 = vshrl.u32 %v8263_v5, 16 }
 0x378   :  { %5008 = vmatmul.bf16.gmra.mxu2 %v4544_v2  ;;  %v3679_v34 = vrot.slane %v3677_v4, 1 }
 0x379   :  { %4954 = vmatmul.bf16.gmra.mxu1 %v4538_v55  ;;  %v4191_v35 = vsel %vm1801_vm6, %v3483_v63, %v3557_v39  ;;  %v3675_v39 = vshrl.u32 %v8259_v30, 16  ;;  %v8271_v63 = vld [vmem:[#allocation12_spill] sm:$0xff] }
 0x37a   :  { %5545 = vmatmul.msk.bf16.gmra.mxu3 %vm1801_vm6, %v8255_v7  ;;  %v3807_v56 = vpop.permute.xlu0 %3806  ;;  %v4416_v53 = vunpack.c.l.b16 %v4191_v35  ;;  %v8274_v35 = vld [vmem:[#allocation11_spill] sm:$0xff] }
 0x37b   :  { %v3551_v10 = vpop.permute.xlu1 %3550  ;;  %v7736_v0 = vpop.f32.mrf.mxu3  ;;  %v4230_v36 = vsel %vm1801_vm6, %v3666_v41, %v3807_v56 }
 0x37c   :  { %v4182_v40 = vsel %vm1801_vm6, %v3480_v25, %v3551_v10  ;;  %v4402_v45 = vunpack.c.l.b16 %v4230_v36  ;;  %v3561_v31 = vpop.permute.xlu2 %3560  ;;  %v3686_v10 = vrot.slane %v3684_v49, 1 }
 0x37d   :  { %v4401_v62 = vunpack.c.l.b16 %v4182_v40  ;;  %v3100_v40 = vld [vmem:[#allocation2 + $0x60] sm:$0xe] }
 0x37e   :  { %v3687_v14 = vor.u32 %v3686_v10, %v3682_v59 }
 0x37f   :  { %v4542_v44 = vpack.c.b16 %v4406_v6, %v4401_v62  ;;  %v3680_v6 = vor.u32 %v3679_v34, %v3675_v39  ;;  %v8264_v62 = vld [vmem:[#allocation15_spill] sm:$0xff] }
 0x380   :  { %v4290_v3 = vsel %vm1801_vm6, %v8264_v62, %v4039_v58  ;;  %v8268_v58 = vld [vmem:[#allocation29_spill] sm:$0xff] }
 0x381   :  { %4910 = vmatmul.bf16.gmra.mxu0 %v4542_v44  ;;  %v3452_v44 = vunpack.c.l.b16 %v3100_v40  ;;  %v8269_v19 = vunpack.c.l.b16 %v8268_v58  ;;  %v8275_v40 = vld [vmem:[#allocation21_spill] sm:$0xff] }
 0x382   :  { %v4037_v52 = vpop.permute.xlu0 %4036 }
 0x383   :  { %v3809_v28 = vpop.permute.xlu1 %3808  ;;  %v4287_v23 = vsel %vm1801_vm6, %v7431_v18, %v4037_v52  ;;  %v7750_v9 = vpop.f32.mrf.mxu3  ;;  %v8260_v18 = vld [vmem:[#allocation14_spill] sm:$0xff]  ;;  %v4423_v52 = vunpack.c.l.b16 %v4290_v3  ;;  %v3468_v54 = vpack.c.b16 %v8269_v19, %v3452_v44 }
 0x384   :  { %v4233_v16 = vsel %vm1801_vm6, %v3673_v37, %v3809_v28  ;;  %v4418_v50 = vunpack.c.l.b16 %v4287_v23  ;;  %v8262_v46 = vpack.c.b16 %v8260_v18, %v8261_v15  ;;  %v8267_v37 = vld [vmem:[#allocation20_spill] sm:$0xff]  ;;  %v3698_v18 = vshll.u32 %v8274_v35, 16  ;;  %v8276_v44 = vld [vmem:[#allocation6_spill] sm:$0xff] }
 0x385   :  { %v4407_v57 = vunpack.c.l.b16 %v4233_v16  ;;  %v3484_v4 = vrot.slane %v3468_v54, 1 }
 0x386   :  { %v4549_v43 = vpack.c.b16 %v4418_v50, %v4413_v1  ;;  %v8270_v50 = vld [vmem:[#allocation10_spill] sm:$0xff]  ;;  %v3700_v32 = vrot.slane %v3698_v18, 1 }
 0x387   :  { %v4543_v20 = vpack.c.b16 %v4407_v57, %v4402_v45  ;;  %v3485_v45 = vrot.slane %v3469_v17, 1  ;;  %v4043_v57 = vpop.permute.xlu2 %4042 }
 0x388   :  { %5013 = vmatmul.bf16.gmra.mxu2 %v4549_v43  ;;  %v4296_v13 = vsel %vm1801_vm6, %v8275_v40, %v4043_v57 }
 0x389   :  { %4959 = vmatmul.bf16.gmra.mxu1 %v4543_v20  ;;  %v3691_v20 = vshll.u32 %v8270_v50, 16  ;;  %v4197_v43 = vsel %vm1801_vm6, %v3485_v45, %v3561_v31  ;;  %v3102_v31 = vld [vmem:[#allocation2 + $0x70] sm:$0xe] }
 0x38a   :  { %5546 = vmatmul.msk.bf16.gmra.mxu3 %vm1801_vm6, %v8262_v46  ;;  %v3811_v55 = vpop.permute.xlu0 %3810  ;;  %v3454_v3 = vunpack.c.l.b16 %v3102_v31 }
 0x38b   :  { %v3555_v24 = vpop.permute.xlu1 %3554  ;;  %v7760_v25 = vpop.f32.mrf.mxu3  ;;  %v4236_v26 = vsel %vm1801_vm6, %v3680_v6, %v3811_v55  ;;  %v3693_v49 = vrot.slane %v3691_v20, 1  ;;  %v3103_v55 = vld [vmem:[#allocation2 + $0x78] sm:$0xe]  ;;  %v8283_v20 = vld [vmem:[#allocation23_spill] sm:$0xff] }
 0x38c   :  { %v4188_v2 = vsel %vm1801_vm6, %v3482_v8, %v3555_v24  ;;  %v4412_v51 = vunpack.c.l.b16 %v4236_v26  ;;  %v8272_v8 = vld [vmem:[#allocation17_spill] sm:$0xff]  ;;  %v4426_v24 = vunpack.c.l.b16 %v4197_v43  ;;  %v3455_v39 = vunpack.c.l.b16 %v3103_v55 }
 0x38d   :  { %v4411_v7 = vunpack.c.l.b16 %v4188_v2  ;;  %v8273_v30 = vpack.c.b16 %v8271_v63, %v8272_v8  ;;  %v8285_v8 = vld [vmem:[#allocation18_spill] sm:$0xff] }
 0x38f   :  { %v4547_v56 = vpack.c.b16 %v4416_v53, %v4411_v7  ;;  %v3689_v53 = vshrl.u32 %v8270_v50, 16  ;;  %v3565_v6 = vpop.permute.xlu2 %3564  ;;  %v8282_v50 = vld [vmem:[#allocation19_spill] sm:$0xff] }
 0x390   :  { %v8284_v43 = vpack.c.b16 %v8282_v50, %v8283_v20 }
 0x391   :  { %4915 = vmatmul.bf16.gmra.mxu0 %v4547_v56  ;;  %v3694_v10 = vor.u32 %v3693_v49, %v3689_v53  ;;  %v3696_v56 = vshrl.u32 %v8274_v35, 16  ;;  %v3105_v49 = vld [vmem:[#allocation2 + $0x88] sm:$0xe] }
 0x392   :  { %v4041_v41 = vpop.permute.xlu0 %4040  ;;  %v3457_v31 = vunpack.c.l.b16 %v3105_v49 }
 0x393   :  { %v3813_v12 = vpop.permute.xlu1 %3812  ;;  %v4293_v28 = vsel %vm1801_vm6, %v8267_v37, %v4041_v41  ;;  %v7772_v23 = vpop.f32.mrf.mxu3  ;;  %v3701_v62 = vor.u32 %v3700_v32, %v3696_v56  ;;  %v8286_v56 = vld [vmem:[#allocation30_spill] sm:$0xff] }
 0x394   :  { %v4239_v36 = vsel %vm1801_vm6, %v3687_v14, %v3813_v12  ;;  %v4428_v16 = vunpack.c.l.b16 %v4293_v28  ;;  %v8277_v12 = vunpack.c.l.b16 %v8276_v44 }
 0x395   :  { %v4417_v27 = vunpack.c.l.b16 %v4239_v36  ;;  %v4433_v36 = vunpack.c.l.b16 %v4296_v13 }
 0x396   :  { %v4554_v1 = vpack.c.b16 %v4428_v16, %v4423_v52  ;;  %v3471_v41 = vpack.c.b16 %v8277_v12, %v3455_v39 }
 0x397   :  { %v4548_v42 = vpack.c.b16 %v4417_v27, %v4412_v51  ;;  %v8279_v27 = vld [vmem:[#allocation28_spill] sm:$0xff] }
 0x398   :  { %5018 = vmatmul.bf16.gmra.mxu2 %v4554_v1  ;;  %v8280_v16 = vunpack.c.l.b16 %v8279_v27  ;;  %v8281_v1 = vld [vmem:[#allocation16_spill] sm:$0xff] }
 0x399   :  { %4964 = vmatmul.bf16.gmra.mxu1 %v4548_v42  ;;  %v3487_v42 = vrot.slane %v3471_v41, 1  ;;  %v3705_v45 = vshll.u32 %v8281_v1, 16 }
 0x39a   :  { %5547 = vmatmul.msk.bf16.gmra.mxu3 %vm1801_vm6, %v8273_v30  ;;  %v3815_v46 = vpop.permute.xlu0 %3814  ;;  %v3470_v58 = vpack.c.b16 %v8280_v16, %v3454_v3  ;;  %v3712_v30 = vshll.u32 %v8285_v8, 16 }
 0x39b   :  { %v3559_v15 = vpop.permute.xlu1 %3558  ;;  %v7784_v34 = vpop.f32.mrf.mxu3  ;;  %v4242_v59 = vsel %vm1801_vm6, %v3694_v10, %v3815_v46  ;;  %v4203_v57 = vsel %vm1801_vm6, %v3487_v42, %v3565_v6  ;;  %v3710_v10 = vshrl.u32 %v8285_v8, 16  ;;  %v8291_v42 = vld [vmem:[#allocation24_spill] sm:$0xff] }
 0x39c   :  { %v4194_v5 = vsel %vm1801_vm6, %v3484_v4, %v3559_v15  ;;  %v4422_v37 = vunpack.c.l.b16 %v4242_v59  ;;  %v3486_v63 = vrot.slane %v3470_v58, 1  ;;  %v3707_v15 = vrot.slane %v3705_v45, 1 }
 0x39d   :  { %v4421_v2 = vunpack.c.l.b16 %v4194_v5  ;;  %v4436_v46 = vunpack.c.l.b16 %v4203_v57  ;;  %v4047_v5 = vpop.permute.xlu2 %4046  ;;  %v3714_v53 = vrot.slane %v3712_v30, 1  ;;  %v8293_v57 = vld [vmem:[#allocation26_spill] sm:$0xff] }
 0x39e   :  { %v4302_v40 = vsel %vm1801_vm6, %v8286_v56, %v4047_v5 }
 0x39f   :  { %v4552_v7 = vpack.c.b16 %v4426_v24, %v4421_v2  ;;  %v3703_v2 = vshrl.u32 %v8281_v1, 16  ;;  %v3715_v6 = vor.u32 %v3714_v53, %v3710_v10  ;;  %v3719_v1 = vshll.u32 %v8291_v42, 16 }
 0x3a1   :  { %4920 = vmatmul.bf16.gmra.mxu0 %v4552_v7  ;;  %v3104_v7 = vld [vmem:[#allocation2 + $0x80] sm:$0xe]  ;;  %v3708_v39 = vor.u32 %v3707_v15, %v3703_v2 }
 0x3a2   :  { %v4045_v14 = vpop.permute.xlu0 %4044  ;;  %v3456_v59 = vunpack.c.l.b16 %v3104_v7 }
 0x3a3   :  { %v3817_v26 = vpop.permute.xlu1 %3816  ;;  %v4299_v17 = vsel %vm1801_vm6, %v8278_v22, %v4045_v14  ;;  %v7796_v51 = vpop.f32.mrf.mxu3 }
 0x3a4   :  { %v4245_v60 = vsel %vm1801_vm6, %v3701_v62, %v3817_v26  ;;  %v4438_v52 = vunpack.c.l.b16 %v4299_v17  ;;  %v8287_v26 = vld [vmem:[#allocation9_spill] sm:$0xff] }
 0x3a5   :  { %v4427_v28 = vunpack.c.l.b16 %v4245_v60  ;;  %v8288_v14 = vunpack.c.l.b16 %v8287_v26  ;;  %v4443_v60 = vunpack.c.l.b16 %v4302_v40  ;;  %v3569_v16 = vpop.permute.xlu2 %3568 }
 0x3a6   :  { %v4559_v54 = vpack.c.b16 %v4438_v52, %v4433_v36 }
 0x3a7   :  { %v4553_v19 = vpack.c.b16 %v4427_v28, %v4422_v37  ;;  %v3473_v44 = vpack.c.b16 %v8288_v14, %v3457_v31  ;;  %v8289_v28 = vld [vmem:[#allocation32_spill] sm:$0xff] }
 0x3a8   :  { %5023 = vmatmul.bf16.gmra.mxu2 %v4559_v54  ;;  %v8290_v52 = vunpack.c.l.b16 %v8289_v28 }
 0x3a9   :  { %4969 = vmatmul.bf16.gmra.mxu1 %v4553_v19  ;;  %v3489_v54 = vrot.slane %v3473_v44, 1 }
 0x3aa   :  { %5548 = vmatmul.msk.bf16.gmra.mxu3 %vm1801_vm6, %v8284_v43  ;;  %v3819_v35 = vpop.permute.xlu0 %3818  ;;  %v3472_v27 = vpack.c.b16 %v8290_v52, %v3456_v59  ;;  %v8295_v43 = vld [vmem:[#allocation31_spill] sm:$0xff] }
 0x3ab   :  { %v3563_v4 = vpop.permute.xlu1 %3562  ;;  %v4248_v13 = vsel %vm1801_vm6, %v3708_v39, %v3819_v35  ;;  %v4209_v45 = vsel %vm1801_vm6, %v3489_v54, %v3569_v16  ;;  %v3724_v53 = vshrl.u32 %v8295_v43, 16 }
 0x3ac   :  { %v4200_v18 = vsel %vm1801_vm6, %v3486_v63, %v3563_v4  ;;  %v4432_v22 = vunpack.c.l.b16 %v4248_v13  ;;  %v3488_v20 = vrot.slane %v3472_v27, 1  ;;  %v3726_v63 = vshll.u32 %v8295_v43, 16 }
 0x3ad   :  { %v4431_v24 = vunpack.c.l.b16 %v4200_v18  ;;  %v7808_v55 = vpop.f32.mrf.mxu3  ;;  %v3721_v4 = vrot.slane %v3719_v1, 1  ;;  %v4446_v35 = vunpack.c.l.b16 %v4209_v45 }
 0x3ae   :  { %v3728_v5 = vrot.slane %v3726_v63, 1 }
 0x3af   :  { %v4557_v32 = vpack.c.b16 %v4436_v46, %v4431_v24  ;;  %v3717_v46 = vshrl.u32 %v8291_v42, 16 }
 0x3b0   :  { %v3729_v7 = vor.u32 %v3728_v5, %v3724_v53 }
 0x3b1   :  { %4925 = vmatmul.bf16.gmra.mxu0 %v4557_v32  ;;  %v3722_v2 = vor.u32 %v3721_v4, %v3717_v46 }
 0x3b2   :  { %v4049_v3 = vpop.permute.xlu0 %4048 }
 0x3b3   :  { %v3821_v62 = vpop.permute.xlu1 %3820  ;;  %v4305_v41 = vsel %vm1801_vm6, %v7599_v33, %v4049_v3  ;;  %v8292_v33 = vld [vmem:[#allocation22_spill] sm:$0xff]  ;;  %v7849_v3 = vld [vmem:[%s7941_s8] ss:$0 sm:$0xff] }
 0x3b4   :  { %v4251_v12 = vsel %vm1801_vm6, %v3715_v6, %v3821_v62  ;;  %v4448_v36 = vunpack.c.l.b16 %v4305_v41  ;;  %v8294_v50 = vpack.c.b16 %v8292_v33, %v8293_v57  ;;  %v4848_v26 = vadd.f32 %v7849_v3, %v7682_v47 }
 0x3b5   :  { %v4437_v17 = vunpack.c.l.b16 %v4251_v12  ;;  %v7820_v37 = vpop.f32.mrf.mxu3  ;;  %v4853_v47 = vadd.f32 %v7849_v3, %v7712_v11  ;;  %v4858_v5 = vadd.f32 %v7849_v3, %v7736_v0 }
 0x3b6   :  { %v4564_v19 = vpack.c.b16 %v4448_v36, %v4443_v60 }
 0x3b7   :  { %v4558_v58 = vpack.c.b16 %v4437_v17, %v4432_v22 }
 0x3b8   :  { %5028 = vmatmul.bf16.gmra.mxu2 %v4564_v19 }
 0x3b9   :  { %4974 = vmatmul.bf16.gmra.mxu1 %v4558_v58 }
 0x3ba   :  { %5549 = vmatmul.msk.bf16.gmra.mxu3 %vm1801_vm6, %v8294_v50  ;;  %v3823_v49 = vpop.permute.xlu0 %3822 }
 0x3bb   :  { %v3567_v8 = vpop.permute.xlu1 %3566  ;;  %v4254_v32 = vsel %vm1801_vm6, %v3722_v2, %v3823_v49 }
 0x3bc   :  { %v4206_v30 = vsel %vm1801_vm6, %v3488_v20, %v3567_v8  ;;  %v4442_v10 = vunpack.c.l.b16 %v4254_v32  ;;  %v4855_v20 = vadd.f32 %v7849_v3, %v7724_v21 }
 0x3bd   :  { %v4441_v18 = vunpack.c.l.b16 %v4206_v30  ;;  %v7832_v15 = vpop.f32.mrf.mxu3 }
 0x3bf   :  { %v4562_v24 = vpack.c.b16 %v4446_v35, %v4441_v18 }
 0x3c1   :  { %4930 = vmatmul.bf16.gmra.mxu0 %v4562_v24 }
 0x3c3   :  { %v3825_v31 = vpop.permute.xlu1 %3824 }
 0x3c4   :  { %v4257_v39 = vsel %vm1801_vm6, %v3729_v7, %v3825_v31 }
 0x3c5   :  { %v4447_v56 = vunpack.c.l.b16 %v4257_v39  ;;  %v7838_v40 = vpop.f32.mrf.mxu3 }
 0x3c7   :  { %v4563_v13 = vpack.c.b16 %v4447_v56, %v4442_v10  ;;  %v4860_v10 = vadd.f32 %v7849_v3, %v7750_v9 }
 0x3c9   :  { %4979 = vmatmul.bf16.gmra.mxu1 %v4563_v13 }
 0x3ca   :  { %5550 = vmatmul.msk.bf16.gmra.mxu3 %vm1801_vm6, %v4565_v29  ;;  %v4850_v29 = vadd.f32 %v7849_v3, %v7699_v38 }
 0x3cb   :  { %v4994_v59 = vpop.f32.mrf.mxu2 }
 0x3cd   :  { %v7844_v6 = vpop.f32.mrf.mxu3 }
 0x3ce   :  { %v4896_v62 = vpop.f32.mrf.mxu0 }
 0x3cf   :  { %v4897_v12 = vadd.f32 %v4896_v62, %v4848_v26 }
 0x3d3   :  { %v4996_v44 = vpop.f32.mrf.mxu2 }
 0x3d5   :  { %v7853_v14 = vpop.f32.mrf.mxu3 }
 0x3d6   :  { %v4898_v41 = vpop.f32.mrf.mxu0  ;;  %v4945_v61 = vpop.f32.mrf.mxu1 }
 0x3d7   :  { %v4946_v48 = vadd.f32 %v4945_v61, %v4897_v12  ;;  %v4899_v36 = vadd.f32 %v4898_v41, %v4850_v29  ;;  %v4863_v61 = vadd.f32 %v7849_v3, %v7760_v25 }
 0x3d9   :  { %v4995_v60 = vadd.f32 %v4994_v59, %v4946_v48 }
 0x3db   :  { %v4999_v22 = vpop.f32.mrf.mxu2 }
 0x3dd   :  { %v5043_v17 = vpop.f32.mrf.mxu3 }
 0x3de   :  { %v5044_v28 = vadd.f32 %v5043_v17, %v4995_v60  ;;  %v4901_v52 = vpop.f32.mrf.mxu0  ;;  %v4947_v27 = vpop.f32.mrf.mxu1 }
 0x3df   :  { %v4948_v58 = vadd.f32 %v4947_v27, %v4899_v36  ;;  %v4902_v38 = vadd.f32 %v4901_v52, %v4853_v47  ;;  %v4865_v27 = vadd.f32 %v7849_v3, %v7772_v23 }
 0x3e0   :  { %v5083_v16 = vmax.f32 %v5044_v28, 0.0 }
 0x3e1   :  { %v4997_v19 = vadd.f32 %v4996_v44, %v4948_v58 }
 0x3e2   :  { %5099 = vst [vmem:[%s7942_s9] sm:$0xff] %v5083_v16 }
 0x3e3   :  { %v5001_v54 = vpop.f32.mrf.mxu2 }
 0x3e5   :  { %v5045_v42 = vpop.f32.mrf.mxu3 }
 0x3e6   :  { %v5046_v1 = vadd.f32 %v5045_v42, %v4997_v19  ;;  %v4903_v45 = vpop.f32.mrf.mxu0  ;;  %v4950_v33 = vpop.f32.mrf.mxu1 }
 0x3e7   :  { %v4951_v50 = vadd.f32 %v4950_v33, %v4902_v38  ;;  %v4904_v11 = vadd.f32 %v4903_v45, %v4855_v20  ;;  %v4868_v45 = vadd.f32 %v7849_v3, %v7784_v34 }
 0x3e8   :  { %v5084_v57 = vmax.f32 %v5046_v1, 0.0 }
 0x3e9   :  { %v5000_v43 = vadd.f32 %v4999_v22, %v4951_v50 }
 0x3ea   :  { %5100 = vst [vmem:[%s7942_s9 + $0x8] sm:$0xff] %v5084_v57 }
 0x3eb   :  { %v5004_v63 = vpop.f32.mrf.mxu2 }
 0x3ed   :  { %v5048_v8 = vpop.f32.mrf.mxu3 }
 0x3ee   :  { %v5049_v30 = vadd.f32 %v5048_v8, %v5000_v43  ;;  %v4906_v4 = vpop.f32.mrf.mxu0  ;;  %v4952_v35 = vpop.f32.mrf.mxu1 }
 0x3ef   :  { %v4953_v46 = vadd.f32 %v4952_v35, %v4904_v11  ;;  %v4907_v21 = vadd.f32 %v4906_v4, %v4858_v5 }
 0x3f0   :  { %v5085_v18 = vmax.f32 %v5049_v30, 0.0  ;;  %v4870_v30 = vadd.f32 %v7849_v3, %v7796_v51 }
 0x3f1   :  { %v5002_v49 = vadd.f32 %v5001_v54, %v4953_v46 }
 0x3f2   :  { %5101 = vst [vmem:[%s7942_s9 + $0x10] sm:$0xff] %v5085_v18 }
 0x3f3   :  { %v5006_v24 = vpop.f32.mrf.mxu2 }
 0x3f5   :  { %v5050_v2 = vpop.f32.mrf.mxu3 }
 0x3f6   :  { %v5051_v53 = vadd.f32 %v5050_v2, %v5002_v49  ;;  %v4908_v32 = vpop.f32.mrf.mxu0  ;;  %v4955_v7 = vpop.f32.mrf.mxu1 }
 0x3f7   :  { %v4956_v39 = vadd.f32 %v4955_v7, %v4907_v21  ;;  %v4909_v0 = vadd.f32 %v4908_v32, %v4860_v10  ;;  %v4873_v21 = vadd.f32 %v7849_v3, %v7808_v55 }
 0x3f8   :  { %v5086_v31 = vmax.f32 %v5051_v53, 0.0 }
 0x3f9   :  { %v5005_v56 = vadd.f32 %v5004_v63, %v4956_v39 }
 0x3fa   :  { %5102 = vst [vmem:[%s7942_s9 + $0x18] sm:$0xff] %v5086_v31 }
 0x3fb   :  { %v5009_v13 = vpop.f32.mrf.mxu2 }
 0x3fd   :  { %v5053_v59 = vpop.f32.mrf.mxu3 }
 0x3fe   :  { %v5054_v62 = vadd.f32 %v5053_v59, %v5005_v56  ;;  %v4911_v26 = vpop.f32.mrf.mxu0  ;;  %v4957_v44 = vpop.f32.mrf.mxu1  ;;  %v4875_v59 = vadd.f32 %v7849_v3, %v7820_v37 }
 0x3ff   :  { %v4958_v41 = vadd.f32 %v4957_v44, %v4909_v0  ;;  %v4912_v9 = vadd.f32 %v4911_v26, %v4863_v61 }
 0x400   :  { %v5087_v12 = vmax.f32 %v5054_v62, 0.0 }
 0x401   :  { %v5007_v48 = vadd.f32 %v5006_v24, %v4958_v41 }
 0x402   :  { %5103 = vst [vmem:[%s7942_s9 + $0x20] sm:$0xff] %v5087_v12 }
 0x403   :  { %v5011_v29 = vpop.f32.mrf.mxu2 }
 0x405   :  { %v5055_v60 = vpop.f32.mrf.mxu3 }
 0x406   :  { %v5056_v22 = vadd.f32 %v5055_v60, %v5007_v48  ;;  %v4913_v17 = vpop.f32.mrf.mxu0  ;;  %v4960_v36 = vpop.f32.mrf.mxu1  ;;  %v4878_v48 = vadd.f32 %v7849_v3, %v7832_v15 }
 0x407   :  { %v4961_v52 = vadd.f32 %v4960_v36, %v4912_v9  ;;  %v4914_v25 = vadd.f32 %v4913_v17, %v4865_v27  ;;  %v4880_v27 = vadd.f32 %v7849_v3, %v7838_v40 }
 0x408   :  { %v5088_v28 = vmax.f32 %v5056_v22, 0.0 }
 0x409   :  { %v5010_v16 = vadd.f32 %v5009_v13, %v4961_v52 }
 0x40a   :  { %5104 = vst [vmem:[%s7942_s9 + $0x28] sm:$0xff] %v5088_v28 }
 0x40b   :  { %v5014_v58 = vpop.f32.mrf.mxu2 }
 0x40d   :  { %v5058_v47 = vpop.f32.mrf.mxu3 }
 0x40e   :  { %v5059_v19 = vadd.f32 %v5058_v47, %v5010_v16  ;;  %v4916_v54 = vpop.f32.mrf.mxu0  ;;  %v4962_v42 = vpop.f32.mrf.mxu1 }
 0x40f   :  { %v4963_v1 = vadd.f32 %v4962_v42, %v4914_v25  ;;  %v4917_v50 = vadd.f32 %v4916_v54, %v4868_v45 }
 0x410   :  { %v5089_v38 = vmax.f32 %v5059_v19, 0.0 }
 0x411   :  { %v5012_v33 = vadd.f32 %v5011_v29, %v4963_v1  ;;  %v4883_v1 = vadd.f32 %v7849_v3, %v7844_v6 }
 0x412   :  { %5105 = vst [vmem:[%s7942_s9 + $0x30] sm:$0xff] %v5089_v38 }
 0x413   :  { %v5016_v63 = vpop.f32.mrf.mxu2 }
 0x415   :  { %v5060_v57 = vpop.f32.mrf.mxu3 }
 0x416   :  { %v5061_v23 = vadd.f32 %v5060_v57, %v5012_v33  ;;  %v4918_v20 = vpop.f32.mrf.mxu0  ;;  %v4965_v43 = vpop.f32.mrf.mxu1 }
 0x417   :  { %v4966_v11 = vadd.f32 %v4965_v43, %v4917_v50  ;;  %v4919_v18 = vadd.f32 %v4918_v20, %v4870_v30 }
 0x418   :  { %v5090_v8 = vmax.f32 %v5061_v23, 0.0 }
 0x419   :  { %v5015_v4 = vadd.f32 %v5014_v58, %v4966_v11 }
 0x41a   :  { %5106 = vst [vmem:[%s7942_s9 + $0x38] sm:$0xff] %v5090_v8  ;;  %v4885_v8 = vadd.f32 %v7849_v3, %v7853_v14 }
 0x41b   :  { %v5019_v2 = vpop.f32.mrf.mxu2 }
 0x41d   :  { %v5063_v35 = vpop.f32.mrf.mxu3 }
 0x41e   :  { %v5064_v34 = vadd.f32 %v5063_v35, %v5015_v4  ;;  %v4921_v46 = vpop.f32.mrf.mxu0  ;;  %v4967_v5 = vpop.f32.mrf.mxu1 }
 0x41f   :  { %v4968_v24 = vadd.f32 %v4967_v5, %v4919_v18  ;;  %v4922_v7 = vadd.f32 %v4921_v46, %v4873_v21 }
 0x420   :  { %v5091_v49 = vmax.f32 %v5064_v34, 0.0 }
 0x421   :  { %v5017_v53 = vadd.f32 %v5016_v63, %v4968_v24 }
 0x422   :  { %5107 = vst [vmem:[%s7942_s9 + $0x40] sm:$0xff] %v5091_v49 }
 0x423   :  { %v5021_v13 = vpop.f32.mrf.mxu2 }
 0x425   :  { %v5065_v32 = vpop.f32.mrf.mxu3 }
 0x426   :  { %v5066_v51 = vadd.f32 %v5065_v32, %v5017_v53  ;;  %v4923_v31 = vpop.f32.mrf.mxu0  ;;  %v4970_v39 = vpop.f32.mrf.mxu1 }
 0x427   :  { %v4971_v56 = vadd.f32 %v4970_v39, %v4922_v7  ;;  %v4924_v26 = vadd.f32 %v4923_v31, %v4875_v59 }
 0x428   :  { %v5092_v10 = vmax.f32 %v5066_v51, 0.0 }
 0x429   :  { %v5020_v0 = vadd.f32 %v5019_v2, %v4971_v56 }
 0x42a   :  { %5108 = vst [vmem:[%s7942_s9 + $0x48] sm:$0xff] %v5092_v10 }
 0x42b   :  { %v5024_v60 = vpop.f32.mrf.mxu2 }
 0x42d   :  { %v5068_v62 = vpop.f32.mrf.mxu3 }
 0x42e   :  { %v5069_v55 = vadd.f32 %v5068_v62, %v5020_v0  ;;  %v4926_v44 = vpop.f32.mrf.mxu0  ;;  %v4972_v12 = vpop.f32.mrf.mxu1 }
 0x42f   :  { %v4973_v61 = vadd.f32 %v4972_v12, %v4924_v26  ;;  %v4927_v22 = vadd.f32 %v4926_v44, %v4878_v48 }
 0x430   :  { %v5093_v41 = vmax.f32 %v5069_v55, 0.0 }
 0x431   :  { %v5022_v29 = vadd.f32 %v5021_v13, %v4973_v61 }
 0x432   :  { %5109 = vst [vmem:[%s7942_s9 + $0x50] sm:$0xff] %v5093_v41 }
 0x433   :  { %v5026_v19 = vpop.f32.mrf.mxu2 }
 0x435   :  { %v5070_v9 = vpop.f32.mrf.mxu3 }
 0x436   :  { %v5071_v37 = vadd.f32 %v5070_v9, %v5022_v29  ;;  %v4975_v17 = vpop.f32.mrf.mxu1  ;;  %v4928_v36 = vpop.f32.mrf.mxu0 }
 0x437   :  { %v4976_v52 = vadd.f32 %v4975_v17, %v4927_v22  ;;  %v4929_v47 = vadd.f32 %v4928_v36, %v4880_v27 }
 0x438   :  { %v5094_v28 = vmax.f32 %v5071_v37, 0.0 }
 0x439   :  { %v5025_v16 = vadd.f32 %v5024_v60, %v4976_v52 }
 0x43a   :  { %5110 = vst [vmem:[%s7942_s9 + $0x58] sm:$0xff] %v5094_v28 }
 0x43b   :  { %v5029_v43 = vpop.f32.mrf.mxu2 }
 0x43d   :  { %v5073_v58 = vpop.f32.mrf.mxu3 }
 0x43e   :  { %v5074_v15 = vadd.f32 %v5073_v58, %v5025_v16  ;;  %v4977_v25 = vpop.f32.mrf.mxu1  ;;  %v4931_v38 = vpop.f32.mrf.mxu0 }
 0x43f   :  { %v4978_v42 = vadd.f32 %v4977_v25, %v4929_v47  ;;  %v4932_v57 = vadd.f32 %v4931_v38, %v4883_v1 }
 0x440   :  { %v5095_v54 = vmax.f32 %v5074_v15, 0.0 }
 0x441   :  { %v5027_v45 = vadd.f32 %v5026_v19, %v4978_v42 }
 0x442   :  { %5111 = vst [vmem:[%s7942_s9 + $0x60] sm:$0xff] %v5095_v54 }
 0x443   :  { %v5031_v46 = vpop.f32.mrf.mxu2 }
 0x445   :  { %v5075_v33 = vpop.f32.mrf.mxu3 }
 0x446   :  { %v5076_v40 = vadd.f32 %v5075_v33, %v5027_v45  ;;  %v4980_v50 = vpop.f32.mrf.mxu1  ;;  %v4933_v63 = vpop.f32.mrf.mxu0 }
 0x447   :  { %v4981_v20 = vadd.f32 %v4980_v50, %v4932_v57  ;;  %v4934_v4 = vadd.f32 %v4933_v63, %v4885_v8 }
 0x448   :  { %v5096_v23 = vmax.f32 %v5076_v40, 0.0 }
 0x449   :  { %v5030_v11 = vadd.f32 %v5029_v43, %v4981_v20 }
 0x44a   :  { %5112 = vst [vmem:[%s7942_s9 + $0x68] sm:$0xff] %v5096_v23 }
 0x44d   :  { %v5078_v30 = vpop.f32.mrf.mxu3 }
 0x44e   :  { %v5079_v6 = vadd.f32 %v5078_v30, %v5030_v11  ;;  %v4982_v35 = vpop.f32.mrf.mxu1 }
 0x44f   :  { %v4983_v34 = vadd.f32 %v4982_v35, %v4934_v4 }
 0x450   :  { %v5097_v18 = vmax.f32 %v5079_v6, 0.0 }
 0x451   :  { %v5032_v5 = vadd.f32 %v5031_v46, %v4983_v34 }
 0x452   :  { %5113 = vst [vmem:[%s7942_s9 + $0x70] sm:$0xff] %v5097_v18 }
 0x455   :  { %v5080_v49 = vpop.f32.mrf.mxu3 }
 0x456   :  { %v5081_v24 = vadd.f32 %v5080_v49, %v5032_v5 }
 0x458   :  { %v5098_v2 = vmax.f32 %v5081_v24, 0.0 }
 0x45a   :  { %5114 = vst [vmem:[%s7942_s9 + $0x78] sm:$0xff] %v5098_v2 }

</bundles_post_ra>
